<compile_context>
chip_gen: v7x
topology: tpu7x:2x2x1
jax: 0.10.0
libtpu: 0.0.40
codegen_flags: <defaults>
</compile_context>

<pallas_src>
import numpy as np
import jax
import jax.numpy as jnp
from jax.experimental import pallas as pl
from jax.experimental.pallas import tpu as pltpu

# ---------------- configuration (small synthetic sizes) ----------------
D_L, D_A, D_V = 8, 4, 4                 # input_dims
DH_L, DH_A, DH_V = 8, 8, 8              # h_dims
MEM_DIM = 8                             # memsize
SENTI_DIM = 8                           # sentisize
H_ATT = 16                              # Config['shapes']
H_NN = 16                               # NN{l,a,v,p}Config['shapes']
H_GAMMA = 16                            # Gamma{1,2}Config['shapes']
H_OUT = 16                              # OutConfig['shapes']

D_TOTAL = D_L + D_A + D_V               # 16
TOTAL_H = DH_L + DH_A + DH_V            # 24
GAMMA_IN = SENTI_DIM + MEM_DIM          # 16
FINAL_OUT = TOTAL_H + MEM_DIM           # 32

AS_H = H_ATT + 3 * H_NN                 # fused att+senti hidden width (64)
PG_H = H_NN + 2 * H_GAMMA               # fused p+gamma hidden width (48)

LANE = 128                              # TPU lane width
GATE_W = 4 * LANE                       # [ i | f | o | g ] gate blocks
ASO_W = 6 * LANE                        # [lg_l|lg_a|lg_v|s_l|s_a|s_v] blocks
PGO_W = 3 * LANE                        # [cHat|gamma1|gamma2] blocks
SLAB_W = ASO_W                          # widest packed matrix -> slab width

N_WEIGHTS = 41  # 3 LSTM cells * 3 arrays + 8 two-layer MLPs * 4 arrays


# ---------------- deterministic parameter init (original, unfused) ----------------
def init_params(key):
    keys = iter(jax.random.split(key, 64))

    def lin(in_d, out_d):
        lim = 1.0 / jnp.sqrt(jnp.float32(in_d))
        w = jax.random.uniform(next(keys), (in_d, out_d), jnp.float32, -lim, lim)
        b = jax.random.uniform(next(keys), (1, out_d), jnp.float32, -lim, lim)
        return w, b

    def lstm(in_d, dh):
        lim = 1.0 / jnp.sqrt(jnp.float32(dh))
        wx = jax.random.uniform(next(keys), (in_d, 4 * dh), jnp.float32, -lim, lim)
        wh = jax.random.uniform(next(keys), (dh, 4 * dh), jnp.float32, -lim, lim)
        b = jax.random.uniform(next(keys), (1, 4 * dh), jnp.float32, -lim, lim)
        return wx, wh, b

    params = []
    params += list(lstm(D_L, DH_L))
    params += list(lstm(D_A, DH_A))
    params += list(lstm(D_V, DH_V))
    for (i_d, h_d, o_d) in [
        (TOTAL_H, H_ATT, 3),          # att
        (DH_L, H_NN, SENTI_DIM),      # nn_l
        (DH_A, H_NN, SENTI_DIM),      # nn_a
        (DH_V, H_NN, SENTI_DIM),      # nn_v
        (SENTI_DIM, H_NN, MEM_DIM),   # nn_p (+tanh)
        (GAMMA_IN, H_GAMMA, MEM_DIM), # nn_gmma1 (+sigmoid)
        (GAMMA_IN, H_GAMMA, MEM_DIM), # nn_gmma2 (+sigmoid)
        (FINAL_OUT, H_OUT, 1),        # nn_out
    ]:
        w1, b1 = lin(i_d, h_d)
        w2, b2 = lin(h_d, o_d)
        params += [w1, b1, w2, b2]
    assert len(params) == N_WEIGHTS
    return params


# ---------------- host-side fusion + slab packing ----------------
def pack_params(params):
    (wx_l, wh_l, b_l, wx_a, wh_a, b_a, wx_v, wh_v, b_v,
     att_w1, att_b1, att_w2, att_b2,
     nnl_w1, nnl_b1, nnl_w2, nnl_b2,
     nna_w1, nna_b1, nna_w2, nna_b2,
     nnv_w1, nnv_b1, nnv_w2, nnv_b2,
     nnp_w1, nnp_b1, nnp_w2, nnp_b2,
     g1_w1, g1_b1, g1_w2, g1_b2,
     g2_w1, g2_b1, g2_w2, g2_b2,
     out_w1, out_b1, out_w2, out_b2) = params

    def nf(a):
        return np.asarray(a, np.float32)

    # --- fused block-diagonal LSTM weights, 128-lane-aligned gate blocks:
    #     columns = [ i | f | o | g ] (each 128 lanes); within a block the
    #     three cells occupy lanes [0:8 | 8:16 | 16:24]; rest zero.
    WX = np.zeros((D_TOTAL, GATE_W), np.float32)
    WH = np.zeros((TOTAL_H, GATE_W), np.float32)
    BL = np.zeros((1, GATE_W), np.float32)
    gate_src = (0, 1, 3, 2)   # fused [i,f,o,g] <- reference column order [i,f,g,o]
    r0, c0 = 0, 0
    for wx, wh, b, d, dh in [(wx_l, wh_l, b_l, D_L, DH_L),
                             (wx_a, wh_a, b_a, D_A, DH_A),
                             (wx_v, wh_v, b_v, D_V, DH_V)]:
        wx, wh, b = nf(wx), nf(wh), nf(b)
        for blk, src in enumerate(gate_src):
            WX[r0:r0 + d, blk * LANE + c0:blk * LANE + c0 + dh] = wx[:, src * dh:(src + 1) * dh]
            WH[c0:c0 + dh, blk * LANE + c0:blk * LANE + c0 + dh] = wh[:, src * dh:(src + 1) * dh]
            BL[0, blk * LANE + c0:blk * LANE + c0 + dh] = b[0, src * dh:(src + 1) * dh]
        r0 += d
        c0 += dh

    # --- fused att + 3x senti MLP (input: new cell states, lanes 0:TOTAL_H) ---
    WAS1 = np.zeros((TOTAL_H, AS_H), np.float32)
    BAS1 = np.zeros((1, AS_H), np.float32)
    WAS1[:, :H_ATT] = nf(att_w1)
    BAS1[0, :H_ATT] = nf(att_b1)[0]
    row_in, col_h = 0, H_ATT
    for (w1, b1, dh) in [(nnl_w1, nnl_b1, DH_L),
                         (nna_w1, nna_b1, DH_A),
                         (nnv_w1, nnv_b1, DH_V)]:
        WAS1[row_in:row_in + dh, col_h:col_h + H_NN] = nf(w1)
        BAS1[0, col_h:col_h + H_NN] = nf(b1)[0]
        row_in += dh
        col_h += H_NN

    # Second layer: 6 blocks of 128 lanes.
    #  blocks 0..2 : attention logit k, REPLICATED across all 128 lanes
    #               (softmax + weighted sum become pure elementwise ops)
    #  blocks 3..5 : senti_l / senti_a / senti_v in lanes 0:SENTI_DIM
    WAS2 = np.zeros((AS_H, ASO_W), np.float32)
    BAS2 = np.zeros((1, ASO_W), np.float32)
    aw2, ab2 = nf(att_w2), nf(att_b2)
    for k in range(3):
        WAS2[:H_ATT, k * LANE:(k + 1) * LANE] = aw2[:, k:k + 1]   # replicate column
        BAS2[0, k * LANE:(k + 1) * LANE] = ab2[0, k]
    col_h = H_ATT
    for k, (w2, b2) in enumerate([(nnl_w2, nnl_b2), (nna_w2, nna_b2), (nnv_w2, nnv_b2)]):
        c = (3 + k) * LANE
        WAS2[col_h:col_h + H_NN, c:c + SENTI_DIM] = nf(w2)
        BAS2[0, c:c + SENTI_DIM] = nf(b2)[0]
        col_h += H_NN

    # --- fused nn_p + gamma1 + gamma2; first layer split attended/mem (no concat) ---
    WPG1A = np.zeros((SENTI_DIM, PG_H), np.float32)
    WPG1M = np.zeros((MEM_DIM, PG_H), np.float32)
    BPG1 = np.zeros((1, PG_H), np.float32)
    WPG1A[:, :H_NN] = nf(nnp_w1)
    BPG1[0, :H_NN] = nf(nnp_b1)[0]
    g1w1, g2w1 = nf(g1_w1), nf(g2_w1)
    WPG1A[:, H_NN:H_NN + H_GAMMA] = g1w1[:SENTI_DIM]
    WPG1M[:, H_NN:H_NN + H_GAMMA] = g1w1[SENTI_DIM:]
    BPG1[0, H_NN:H_NN + H_GAMMA] = nf(g1_b1)[0]
    WPG1A[:, H_NN + H_GAMMA:] = g2w1[:SENTI_DIM]
    WPG1M[:, H_NN + H_GAMMA:] = g2w1[SENTI_DIM:]
    BPG1[0, H_NN + H_GAMMA:] = nf(g2_b1)[0]

    # Second layer: 3 blocks of 128 lanes: [ cHat | gamma1 | gamma2 ].
    WPG2 = np.zeros((PG_H, PGO_W), np.float32)
    BPG2 = np.zeros((1, PGO_W), np.float32)
    WPG2[:H_NN, 0:MEM_DIM] = nf(nnp_w2)
    BPG2[0, 0:MEM_DIM] = nf(nnp_b2)[0]
    WPG2[H_NN:H_NN + H_GAMMA, LANE:LANE + MEM_DIM] = nf(g1_w2)
    BPG2[0, LANE:LANE + MEM_DIM] = nf(g1_b2)[0]
    WPG2[H_NN + H_GAMMA:, 2 * LANE:2 * LANE + MEM_DIM] = nf(g2_w2)
    BPG2[0, 2 * LANE:2 * LANE + MEM_DIM] = nf(g2_b2)[0]

    # --- output MLP; first layer split (h-part / mem-part) to avoid concat ---
    ow1 = nf(out_w1)
    OW1H = ow1[:TOTAL_H]
    OW1M = ow1[TOTAL_H:]
    OB1 = nf(out_b1)
    OW2 = nf(out_w2)
    OB2 = nf(out_b2)

    named = [("WX", WX), ("WH", WH), ("BL", BL),
             ("WAS1", WAS1), ("BAS1", BAS1), ("WAS2", WAS2), ("BAS2", BAS2),
             ("WPG1A", WPG1A), ("WPG1M", WPG1M), ("BPG1", BPG1),
             ("WPG2", WPG2), ("BPG2", BPG2),
             ("OW1H", OW1H), ("OW1M", OW1M), ("OB1", OB1),
             ("OW2", OW2), ("OB2", OB2)]

    # Pack into one (rows, SLAB_W) slab; row offsets multiples of 8.
    offs = {}
    row = 0
    for name, a in named:
        offs[name] = (row, a.shape[0], a.shape[1])
        row += ((a.shape[0] + 7) // 8) * 8
    slab = np.zeros((row, SLAB_W), np.float32)
    for name, a in named:
        r, nr, nc = offs[name]
        slab[r:r + nr, :nc] = a
    return jnp.asarray(slab), offs


# ---------------- Pallas kernel + wrapper ----------------
def tman1_forward(x, slab, offs):
    T, N, D = x.shape
    assert D == D_TOTAL
    n_pad = ((N + 7) // 8) * 8            # pad batch to a full sublane tile

    def ld(w_ref, name):
        r, nr, nc = offs[name]            # static python ints -> zero-cost view
        return w_ref[r:r + nr, 0:nc]

    def kernel(x_ref, w_ref, out_ref, xg_ref):
        # --- hoisted input projection + LSTM bias: ONE matmul for all T steps ---
        xg_ref[...] = (jnp.dot(x_ref[...], ld(w_ref, "WX"),
                               preferred_element_type=jnp.float32)
                       + ld(w_ref, "BL"))                 # (T*n_pad, GATE_W)

        def step(t, carry):
            # h_all / c_all / mem are (n_pad, 128); padding lanes stay exactly 0.
            h_all, c_all, mem = carry
            base = pl.multiple_of(t * n_pad, n_pad)
            xg_t = xg_ref[pl.ds(base, n_pad), :]           # (n_pad, GATE_W)

            # --- fused 3-way LSTM: single recurrent matmul, 128-aligned gate blocks ---
            gates = xg_t + jnp.dot(h_all[:, :TOTAL_H], ld(w_ref, "WH"),
                                   preferred_element_type=jnp.float32)
            sfo = jax.nn.sigmoid(gates[:, :3 * LANE])      # one sigmoid for i|f|o
            g = jnp.tanh(gates[:, 3 * LANE:])              # one tanh for g
            i = sfo[:, 0 * LANE:1 * LANE]
            f = sfo[:, 1 * LANE:2 * LANE]
            o = sfo[:, 2 * LANE:3 * LANE]
            c_new = f * c_all + i * g                      # == new_cs in lanes 0:TOTAL_H
            h_new = o * jnp.tanh(c_new)

            # --- fused att + senti MLP (Linear->ReLU->Dropout(id)->Linear) ---
            hid1 = jnp.maximum(
                jnp.dot(c_new[:, :TOTAL_H], ld(w_ref, "WAS1"),
                        preferred_element_type=jnp.float32)
                + ld(w_ref, "BAS1"), 0.0)
            as_out = (jnp.dot(hid1, ld(w_ref, "WAS2"),
                              preferred_element_type=jnp.float32)
                      + ld(w_ref, "BAS2"))                 # (n_pad, 6*128)

            # softmax over the 3 lane-replicated logits -> pure elementwise
            lg_l = as_out[:, 0 * LANE:1 * LANE]
            lg_a = as_out[:, 1 * LANE:2 * LANE]
            lg_v = as_out[:, 2 * LANE:3 * LANE]
            m = jnp.maximum(jnp.maximum(lg_l, lg_a), lg_v)
            e_l = jnp.exp(lg_l - m)
            e_a = jnp.exp(lg_a - m)
            e_v = jnp.exp(lg_v - m)
            inv = pl.reciprocal(e_l + e_a + e_v, approx=True)
            attended = ((e_l * inv) * as_out[:, 3 * LANE:4 * LANE]
                        + (e_a * inv) * as_out[:, 4 * LANE:5 * LANE]
                        + (e_v * inv) * as_out[:, 5 * LANE:6 * LANE])

            # --- fused nn_p + gamma1 + gamma2 (split first layer, no concat) ---
            hid2 = jnp.maximum(
                jnp.dot(attended[:, :SENTI_DIM], ld(w_ref, "WPG1A"),
                        preferred_element_type=jnp.float32)
                + jnp.dot(mem[:, :MEM_DIM], ld(w_ref, "WPG1M"),
                          preferred_element_type=jnp.float32)
                + ld(w_ref, "BPG1"), 0.0)
            pg = (jnp.dot(hid2, ld(w_ref, "WPG2"),
                          preferred_element_type=jnp.float32)
                  + ld(w_ref, "BPG2"))                     # (n_pad, 3*128)
            cHat = jnp.tanh(pg[:, 0:LANE])
            gam = jax.nn.sigmoid(pg[:, LANE:3 * LANE])     # one sigmoid for both gammas
            mem_new = gam[:, 0:LANE] * mem + gam[:, LANE:2 * LANE] * cHat
            return h_new, c_new, mem_new

        z = jnp.zeros((n_pad, LANE), jnp.float32)
        h_all, c_all, mem = jax.lax.fori_loop(0, T, step, (z, z, z), unroll=True)

        # --- final output MLP on [h_l|h_a|h_v|mem] (split, no concat) ---
        hid = jnp.maximum(
            jnp.dot(h_all[:, :TOTAL_H], ld(w_ref, "OW1H"),
                    preferred_element_type=jnp.float32)
            + jnp.dot(mem[:, :MEM_DIM], ld(w_ref, "OW1M"),
                      preferred_element_type=jnp.float32)
            + ld(w_ref, "OB1"), 0.0)
        out_ref[...] = (jnp.dot(hid, ld(w_ref, "OW2"),
                                preferred_element_type=jnp.float32)
                        + ld(w_ref, "OB2"))

    # Pad batch to a sublane tile and flatten (T, n_pad) so the hoisted
    # projection is one plain 2-D matmul in-kernel (reshape here is free).
    x_p = jnp.zeros((T, n_pad, D), jnp.float32).at[:, :N, :].set(x)
    x_flat = x_p.reshape(T * n_pad, D)

    out = pl.pallas_call(
        kernel,
        out_shape=jax.ShapeDtypeStruct((n_pad, 1), jnp.float32),
        in_specs=[pl.BlockSpec(memory_space=pltpu.MemorySpace.VMEM),
                  pl.BlockSpec(memory_space=pltpu.MemorySpace.VMEM)],
        out_specs=pl.BlockSpec(memory_space=pltpu.MemorySpace.VMEM),
        scratch_shapes=[pltpu.VMEM((T * n_pad, GATE_W), jnp.float32)],
    )(x_flat, slab)
    return out[:N]


# ---------------- pure-JAX reference (unfused, mirrors PyTorch module) ----------------
def tman1_ref(x, params):
    (wx_l, wh_l, b_l, wx_a, wh_a, b_a, wx_v, wh_v, b_v,
     att_w1, att_b1, att_w2, att_b2,
     nnl_w1, nnl_b1, nnl_w2, nnl_b2,
     nna_w1, nna_b1, nna_w2, nna_b2,
     nnv_w1, nnv_b1, nnv_w2, nnv_b2,
     nnp_w1, nnp_b1, nnp_w2, nnp_b2,
     g1_w1, g1_b1, g1_w2, g1_b2,
     g2_w1, g2_b1, g2_w2, g2_b2,
     out_w1, out_b1, out_w2, out_b2) = params
    T, N, _ = x.shape

    def mlp(v, w1, b1, w2, b2):
        return jnp.maximum(v @ w1 + b1, 0.0) @ w2 + b2

    def lstm(xx, h, c, wx, wh, b, dh):
        g = xx @ wx + h @ wh + b
        i = jax.nn.sigmoid(g[:, :dh])
        f = jax.nn.sigmoid(g[:, dh:2 * dh])
        gg = jnp.tanh(g[:, 2 * dh:3 * dh])
        o = jax.nn.sigmoid(g[:, 3 * dh:])
        c2 = f * c + i * gg
        return o * jnp.tanh(c2), c2

    h_l = jnp.zeros((N, DH_L)); c_l = jnp.zeros((N, DH_L))
    h_a = jnp.zeros((N, DH_A)); c_a = jnp.zeros((N, DH_A))
    h_v = jnp.zeros((N, DH_V)); c_v = jnp.zeros((N, DH_V))
    mem = jnp.zeros((N, MEM_DIM))
    for t in range(T):
        x_t = x[t]
        x_l = x_t[:, :D_L]; x_a = x_t[:, D_L:D_L + D_A]; x_v = x_t[:, D_L + D_A:]
        h_l, c_l = lstm(x_l, h_l, c_l, wx_l, wh_l, b_l, DH_L)
        h_a, c_a = lstm(x_a, h_a, c_a, wx_a, wh_a, b_a, DH_A)
        h_v, c_v = lstm(x_v, h_v, c_v, wx_v, wh_v, b_v, DH_V)
        new_cs = jnp.concatenate([c_l, c_a, c_v], axis=1)
        att = jax.nn.softmax(mlp(new_cs, att_w1, att_b1, att_w2, att_b2), axis=1)
        s_l = mlp(c_l, nnl_w1, nnl_b1, nnl_w2, nnl_b2)
        s_a = mlp(c_a, nna_w1, nna_b1, nna_w2, nna_b2)
        s_v = mlp(c_v, nnv_w1, nnv_b1, nnv_w2, nnv_b2)
        attended = att[:, 0:1] * s_l + att[:, 1:2] * s_a + att[:, 2:3] * s_v
        cHat = jnp.tanh(mlp(attended, nnp_w1, nnp_b1, nnp_w2, nnp_b2))
        both = jnp.concatenate([attended, mem], axis=1)
        g1 = jax.nn.sigmoid(mlp(both, g1_w1, g1_b1, g1_w2, g1_b2))
        g2 = jax.nn.sigmoid(mlp(both, g2_w1, g2_b1, g2_w2, g2_b2))
        mem = g1 * mem + g2 * cHat
    last_hs = jnp.concatenate([h_l, h_a, h_v, mem], axis=1)
    return mlp(last_hs, out_w1, out_b1, out_w2, out_b2)


if __name__ == "__main__":
    key = jax.random.PRNGKey(0)
    kx, kp = jax.random.split(key)
    T, N = 8, 4                                   # seq len, batch
    x = jax.random.normal(kx, (T, N, D_TOTAL), dtype=jnp.float32)
    params = init_params(kp)
    slab, offs = pack_params(params)

    out = tman1_forward(x, slab, offs)
    out = jax.block_until_ready(out)

    ref = tman1_ref(x, params)
    assert out.shape == (N, 1)
    # approx reciprocal in the in-kernel softmax has ~2^-12 relative error,
    # so compare at 2e-3 (layout/packing bugs would be orders of magnitude larger).
    assert jnp.allclose(out, ref, atol=2e-3, rtol=2e-3), (out, ref)
    print("KERNEL_OK")
</pallas_src>

<mosaic_0001>
module attributes {stable_mosaic.version = 11 : i64} {
  func.func @kernel(%arg0: memref<64x16xf32, #tpu.memory_space<vmem>>, %arg1: memref<296x768xf32, #tpu.memory_space<vmem>>, %arg2: memref<8x1xf32, #tpu.memory_space<vmem>>, %arg3: memref<64x512xf32, #tpu.memory_space<vmem>>) attributes {dimension_semantics = [], scalar_prefetch = 0 : i64, scratch_operands = 1 : i64, tpu.core_type = #tpu.core_type<tc>} {
    %c0 = arith.constant 0 : index
    %c0_0 = arith.constant 0 : index
    %0 = vector.load %arg0[%c0, %c0_0] : memref<64x16xf32, #tpu.memory_space<vmem>>, vector<64x16xf32>
    %c0_1 = arith.constant 0 : index
    %c0_2 = arith.constant 0 : index
    %1 = vector.load %arg1[%c0_1, %c0_2] : memref<296x768xf32, #tpu.memory_space<vmem>>, vector<16x512xf32>
    %cst = arith.constant dense<0.000000e+00> : vector<64x512xf32>
    %2 = tpu.matmul %0, %1, %cst {dimension_numbers = #tpu.dot_dimension_numbers<[1], [0], [0], [1], [0, 0, 1, 1], [], []>} : vector<64x16xf32>, vector<16x512xf32>, vector<64x512xf32> -> vector<64x512xf32>
    %c40 = arith.constant 40 : index
    %c0_3 = arith.constant 0 : index
    %3 = vector.load %arg1[%c40, %c0_3] : memref<296x768xf32, #tpu.memory_space<vmem>>, vector<1x512xf32>
    %4 = vector.broadcast %3 : vector<1x512xf32> to vector<64x512xf32>
    %5 = arith.addf %2, %4 : vector<64x512xf32>
    %c0_4 = arith.constant 0 : index
    %c0_5 = arith.constant 0 : index
    %6 = vector.load %arg3[%c0_4, %c0_5] : memref<64x512xf32, #tpu.memory_space<vmem>>, vector<64x512xf32>
    tpu.vector_store %arg3[%c0_4, %c0_5], %5 {strides = array<i32>} : memref<64x512xf32, #tpu.memory_space<vmem>>, vector<64x512xf32>,
    %cst_6 = arith.constant 0.000000e+00 : f32
    %7 = vector.broadcast %cst_6 : f32 to vector<8x128xf32>
    %c0_i32 = arith.constant 0 : i32
    %c8_i32 = arith.constant 8 : i32
    %8 = arith.muli %c0_i32, %c8_i32 : i32
    %9 = tpu.assume_multiple %8, 8 : i32
    %10 = arith.index_cast %9 : i32 to index
    %c0_7 = arith.constant 0 : index
    %11 = vector.load %arg3[%10, %c0_7] : memref<64x512xf32, #tpu.memory_space<vmem>>, vector<8x512xf32>
    %12 = vector.extract_strided_slice %7 {offsets = [0, 0], sizes = [8, 24], strides = [1, 1]} : vector<8x128xf32> to vector<8x24xf32>
    %c16 = arith.constant 16 : index
    %c0_8 = arith.constant 0 : index
    %13 = vector.load %arg1[%c16, %c0_8] : memref<296x768xf32, #tpu.memory_space<vmem>>, vector<24x512xf32>
    %cst_9 = arith.constant dense<0.000000e+00> : vector<8x512xf32>
    %14 = tpu.matmul %12, %13, %cst_9 {dimension_numbers = #tpu.dot_dimension_numbers<[1], [0], [0], [1], [0, 0, 1, 1], [], []>} : vector<8x24xf32>, vector<24x512xf32>, vector<8x512xf32> -> vector<8x512xf32>
    %15 = arith.addf %11, %14 : vector<8x512xf32>
    %16 = vector.extract_strided_slice %15 {offsets = [0, 0], sizes = [8, 384], strides = [1, 1]} : vector<8x512xf32> to vector<8x384xf32>
    %17 = arith.negf %16 : vector<8x384xf32>
    %18 = math.exp %17 : vector<8x384xf32>
    %cst_10 = arith.constant 1.000000e+00 : f32
    %19 = vector.broadcast %cst_10 : f32 to vector<8x384xf32>
    %20 = arith.addf %19, %18 : vector<8x384xf32>
    %21 = arith.divf %19, %20 : vector<8x384xf32>
    %22 = vector.extract_strided_slice %15 {offsets = [0, 384], sizes = [8, 128], strides = [1, 1]} : vector<8x512xf32> to vector<8x128xf32>
    %23 = math.tanh %22 : vector<8x128xf32>
    %24 = vector.extract_strided_slice %21 {offsets = [0, 0], sizes = [8, 128], strides = [1, 1]} : vector<8x384xf32> to vector<8x128xf32>
    %25 = vector.extract_strided_slice %21 {offsets = [0, 128], sizes = [8, 128], strides = [1, 1]} : vector<8x384xf32> to vector<8x128xf32>
    %26 = vector.extract_strided_slice %21 {offsets = [0, 256], sizes = [8, 128], strides = [1, 1]} : vector<8x384xf32> to vector<8x128xf32>
    %27 = arith.mulf %25, %7 : vector<8x128xf32>
    %28 = arith.mulf %24, %23 : vector<8x128xf32>
    %29 = arith.addf %27, %28 : vector<8x128xf32>
    %30 = math.tanh %29 : vector<8x128xf32>
    %31 = arith.mulf %26, %30 : vector<8x128xf32>
    %32 = vector.extract_strided_slice %29 {offsets = [0, 0], sizes = [8, 24], strides = [1, 1]} : vector<8x128xf32> to vector<8x24xf32>
    %c48 = arith.constant 48 : index
    %c0_11 = arith.constant 0 : index
    %33 = vector.load %arg1[%c48, %c0_11] : memref<296x768xf32, #tpu.memory_space<vmem>>, vector<24x64xf32>
    %cst_12 = arith.constant dense<0.000000e+00> : vector<8x64xf32>
    %34 = tpu.matmul %32, %33, %cst_12 {dimension_numbers = #tpu.dot_dimension_numbers<[1], [0], [0], [1], [0, 0, 1, 1], [], []>} : vector<8x24xf32>, vector<24x64xf32>, vector<8x64xf32> -> vector<8x64xf32>
    %c72 = arith.constant 72 : index
    %c0_13 = arith.constant 0 : index
    %35 = vector.load %arg1[%c72, %c0_13] : memref<296x768xf32, #tpu.memory_space<vmem>>, vector<1x64xf32>
    %36 = vector.broadcast %35 : vector<1x64xf32> to vector<8x64xf32>
    %37 = arith.addf %34, %36 : vector<8x64xf32>
    %cst_14 = arith.constant 0.000000e+00 : f32
    %38 = vector.broadcast %cst_14 : f32 to vector<8x64xf32>
    %39 = arith.maximumf %37, %38 : vector<8x64xf32>
    %c80 = arith.constant 80 : index
    %c0_15 = arith.constant 0 : index
    %40 = vector.load %arg1[%c80, %c0_15] : memref<296x768xf32, #tpu.memory_space<vmem>>, vector<64x768xf32>
    %cst_16 = arith.constant dense<0.000000e+00> : vector<8x768xf32>
    %41 = tpu.matmul %39, %40, %cst_16 {dimension_numbers = #tpu.dot_dimension_numbers<[1], [0], [0], [1], [0, 0, 1, 1], [], []>} : vector<8x64xf32>, vector<64x768xf32>, vector<8x768xf32> -> vector<8x768xf32>
    %c144 = arith.constant 144 : index
    %c0_17 = arith.constant 0 : index
    %42 = vector.load %arg1[%c144, %c0_17] : memref<296x768xf32, #tpu.memory_space<vmem>>, vector<1x768xf32>
    %43 = vector.broadcast %42 : vector<1x768xf32> to vector<8x768xf32>
    %44 = arith.addf %41, %43 : vector<8x768xf32>
    %45 = vector.extract_strided_slice %44 {offsets = [0, 0], sizes = [8, 128], strides = [1, 1]} : vector<8x768xf32> to vector<8x128xf32>
    %46 = vector.extract_strided_slice %44 {offsets = [0, 128], sizes = [8, 128], strides = [1, 1]} : vector<8x768xf32> to vector<8x128xf32>
    %47 = vector.extract_strided_slice %44 {offsets = [0, 256], sizes = [8, 128], strides = [1, 1]} : vector<8x768xf32> to vector<8x128xf32>
    %48 = arith.maximumf %45, %46 : vector<8x128xf32>
    %49 = arith.maximumf %48, %47 : vector<8x128xf32>
    %50 = arith.subf %45, %49 : vector<8x128xf32>
    %51 = math.exp %50 : vector<8x128xf32>
    %52 = arith.subf %46, %49 : vector<8x128xf32>
    %53 = math.exp %52 : vector<8x128xf32>
    %54 = arith.subf %47, %49 : vector<8x128xf32>
    %55 = math.exp %54 : vector<8x128xf32>
    %56 = arith.addf %51, %53 : vector<8x128xf32>
    %57 = arith.addf %56, %55 : vector<8x128xf32>
    %58 = tpu.reciprocal %57 {approx = true} : vector<8x128xf32> -> vector<8x128xf32>
    %59 = arith.mulf %51, %58 : vector<8x128xf32>
    %60 = vector.extract_strided_slice %44 {offsets = [0, 384], sizes = [8, 128], strides = [1, 1]} : vector<8x768xf32> to vector<8x128xf32>
    %61 = arith.mulf %59, %60 : vector<8x128xf32>
    %62 = arith.mulf %53, %58 : vector<8x128xf32>
    %63 = vector.extract_strided_slice %44 {offsets = [0, 512], sizes = [8, 128], strides = [1, 1]} : vector<8x768xf32> to vector<8x128xf32>
    %64 = arith.mulf %62, %63 : vector<8x128xf32>
    %65 = arith.addf %61, %64 : vector<8x128xf32>
    %66 = arith.mulf %55, %58 : vector<8x128xf32>
    %67 = vector.extract_strided_slice %44 {offsets = [0, 640], sizes = [8, 128], strides = [1, 1]} : vector<8x768xf32> to vector<8x128xf32>
    %68 = arith.mulf %66, %67 : vector<8x128xf32>
    %69 = arith.addf %65, %68 : vector<8x128xf32>
    %70 = vector.extract_strided_slice %69 {offsets = [0, 0], sizes = [8, 8], strides = [1, 1]} : vector<8x128xf32> to vector<8x8xf32>
    %c152 = arith.constant 152 : index
    %c0_18 = arith.constant 0 : index
    %71 = vector.load %arg1[%c152, %c0_18] : memref<296x768xf32, #tpu.memory_space<vmem>>, vector<8x48xf32>
    %cst_19 = arith.constant dense<0.000000e+00> : vector<8x48xf32>
    %72 = tpu.matmul %70, %71, %cst_19 {dimension_numbers = #tpu.dot_dimension_numbers<[1], [0], [0], [1], [0, 0, 1, 1], [], []>} : vector<8x8xf32>, vector<8x48xf32>, vector<8x48xf32> -> vector<8x48xf32>
    %73 = vector.extract_strided_slice %7 {offsets = [0, 0], sizes = [8, 8], strides = [1, 1]} : vector<8x128xf32> to vector<8x8xf32>
    %c160 = arith.constant 160 : index
    %c0_20 = arith.constant 0 : index
    %74 = vector.load %arg1[%c160, %c0_20] : memref<296x768xf32, #tpu.memory_space<vmem>>, vector<8x48xf32>
    %cst_21 = arith.constant dense<0.000000e+00> : vector<8x48xf32>
    %75 = tpu.matmul %73, %74, %cst_21 {dimension_numbers = #tpu.dot_dimension_numbers<[1], [0], [0], [1], [0, 0, 1, 1], [], []>} : vector<8x8xf32>, vector<8x48xf32>, vector<8x48xf32> -> vector<8x48xf32>
    %76 = arith.addf %72, %75 : vector<8x48xf32>
    %c168 = arith.constant 168 : index
    %c0_22 = arith.constant 0 : index
    %77 = vector.load %arg1[%c168, %c0_22] : memref<296x768xf32, #tpu.memory_space<vmem>>, vector<1x48xf32>
    %78 = vector.broadcast %77 : vector<1x48xf32> to vector<8x48xf32>
    %79 = arith.addf %76, %78 : vector<8x48xf32>
    %cst_23 = arith.constant 0.000000e+00 : f32
    %80 = vector.broadcast %cst_23 : f32 to vector<8x48xf32>
    %81 = arith.maximumf %79, %80 : vector<8x48xf32>
    %c176 = arith.constant 176 : index
    %c0_24 = arith.constant 0 : index
    %82 = vector.load %arg1[%c176, %c0_24] : memref<296x768xf32, #tpu.memory_space<vmem>>, vector<48x384xf32>
    %cst_25 = arith.constant dense<0.000000e+00> : vector<8x384xf32>
    %83 = tpu.matmul %81, %82, %cst_25 {dimension_numbers = #tpu.dot_dimension_numbers<[1], [0], [0], [1], [0, 0, 1, 1], [], []>} : vector<8x48xf32>, vector<48x384xf32>, vector<8x384xf32> -> vector<8x384xf32>
    %c224 = arith.constant 224 : index
    %c0_26 = arith.constant 0 : index
    %84 = vector.load %arg1[%c224, %c0_26] : memref<296x768xf32, #tpu.memory_space<vmem>>, vector<1x384xf32>
    %85 = vector.broadcast %84 : vector<1x384xf32> to vector<8x384xf32>
    %86 = arith.addf %83, %85 : vector<8x384xf32>
    %87 = vector.extract_strided_slice %86 {offsets = [0, 0], sizes = [8, 128], strides = [1, 1]} : vector<8x384xf32> to vector<8x128xf32>
    %88 = math.tanh %87 : vector<8x128xf32>
    %89 = vector.extract_strided_slice %86 {offsets = [0, 128], sizes = [8, 256], strides = [1, 1]} : vector<8x384xf32> to vector<8x256xf32>
    %90 = arith.negf %89 : vector<8x256xf32>
    %91 = math.exp %90 : vector<8x256xf32>
    %cst_27 = arith.constant 1.000000e+00 : f32
    %92 = vector.broadcast %cst_27 : f32 to vector<8x256xf32>
    %93 = arith.addf %92, %91 : vector<8x256xf32>
    %94 = arith.divf %92, %93 : vector<8x256xf32>
    %95 = vector.extract_strided_slice %94 {offsets = [0, 0], sizes = [8, 128], strides = [1, 1]} : vector<8x256xf32> to vector<8x128xf32>
    %96 = arith.mulf %95, %7 : vector<8x128xf32>
    %97 = vector.extract_strided_slice %94 {offsets = [0, 128], sizes = [8, 128], strides = [1, 1]} : vector<8x256xf32> to vector<8x128xf32>
    %98 = arith.mulf %97, %88 : vector<8x128xf32>
    %99 = arith.addf %96, %98 : vector<8x128xf32>
    %c1_i32 = arith.constant 1 : i32
    %c8_i32_28 = arith.constant 8 : i32
    %100 = arith.muli %c1_i32, %c8_i32_28 : i32
    %101 = tpu.assume_multiple %100, 8 : i32
    %102 = arith.index_cast %101 : i32 to index
    %c0_29 = arith.constant 0 : index
    %103 = vector.load %arg3[%102, %c0_29] : memref<64x512xf32, #tpu.memory_space<vmem>>, vector<8x512xf32>
    %104 = vector.extract_strided_slice %31 {offsets = [0, 0], sizes = [8, 24], strides = [1, 1]} : vector<8x128xf32> to vector<8x24xf32>
    %c16_30 = arith.constant 16 : index
    %c0_31 = arith.constant 0 : index
    %105 = vector.load %arg1[%c16_30, %c0_31] : memref<296x768xf32, #tpu.memory_space<vmem>>, vector<24x512xf32>
    %cst_32 = arith.constant dense<0.000000e+00> : vector<8x512xf32>
    %106 = tpu.matmul %104, %105, %cst_32 {dimension_numbers = #tpu.dot_dimension_numbers<[1], [0], [0], [1], [0, 0, 1, 1], [], []>} : vector<8x24xf32>, vector<24x512xf32>, vector<8x512xf32> -> vector<8x512xf32>
    %107 = arith.addf %103, %106 : vector<8x512xf32>
    %108 = vector.extract_strided_slice %107 {offsets = [0, 0], sizes = [8, 384], strides = [1, 1]} : vector<8x512xf32> to vector<8x384xf32>
    %109 = arith.negf %108 : vector<8x384xf32>
    %110 = math.exp %109 : vector<8x384xf32>
    %cst_33 = arith.constant 1.000000e+00 : f32
    %111 = vector.broadcast %cst_33 : f32 to vector<8x384xf32>
    %112 = arith.addf %111, %110 : vector<8x384xf32>
    %113 = arith.divf %111, %112 : vector<8x384xf32>
    %114 = vector.extract_strided_slice %107 {offsets = [0, 384], sizes = [8, 128], strides = [1, 1]} : vector<8x512xf32> to vector<8x128xf32>
    %115 = math.tanh %114 : vector<8x128xf32>
    %116 = vector.extract_strided_slice %113 {offsets = [0, 0], sizes = [8, 128], strides = [1, 1]} : vector<8x384xf32> to vector<8x128xf32>
    %117 = vector.extract_strided_slice %113 {offsets = [0, 128], sizes = [8, 128], strides = [1, 1]} : vector<8x384xf32> to vector<8x128xf32>
    %118 = vector.extract_strided_slice %113 {offsets = [0, 256], sizes = [8, 128], strides = [1, 1]} : vector<8x384xf32> to vector<8x128xf32>
    %119 = arith.mulf %117, %29 : vector<8x128xf32>
    %120 = arith.mulf %116, %115 : vector<8x128xf32>
    %121 = arith.addf %119, %120 : vector<8x128xf32>
    %122 = math.tanh %121 : vector<8x128xf32>
    %123 = arith.mulf %118, %122 : vector<8x128xf32>
    %124 = vector.extract_strided_slice %121 {offsets = [0, 0], sizes = [8, 24], strides = [1, 1]} : vector<8x128xf32> to vector<8x24xf32>
    %c48_34 = arith.constant 48 : index
    %c0_35 = arith.constant 0 : index
    %125 = vector.load %arg1[%c48_34, %c0_35] : memref<296x768xf32, #tpu.memory_space<vmem>>, vector<24x64xf32>
    %cst_36 = arith.constant dense<0.000000e+00> : vector<8x64xf32>
    %126 = tpu.matmul %124, %125, %cst_36 {dimension_numbers = #tpu.dot_dimension_numbers<[1], [0], [0], [1], [0, 0, 1, 1], [], []>} : vector<8x24xf32>, vector<24x64xf32>, vector<8x64xf32> -> vector<8x64xf32>
    %c72_37 = arith.constant 72 : index
    %c0_38 = arith.constant 0 : index
    %127 = vector.load %arg1[%c72_37, %c0_38] : memref<296x768xf32, #tpu.memory_space<vmem>>, vector<1x64xf32>
    %128 = vector.broadcast %127 : vector<1x64xf32> to vector<8x64xf32>
    %129 = arith.addf %126, %128 : vector<8x64xf32>
    %cst_39 = arith.constant 0.000000e+00 : f32
    %130 = vector.broadcast %cst_39 : f32 to vector<8x64xf32>
    %131 = arith.maximumf %129, %130 : vector<8x64xf32>
    %c80_40 = arith.constant 80 : index
    %c0_41 = arith.constant 0 : index
    %132 = vector.load %arg1[%c80_40, %c0_41] : memref<296x768xf32, #tpu.memory_space<vmem>>, vector<64x768xf32>
    %cst_42 = arith.constant dense<0.000000e+00> : vector<8x768xf32>
    %133 = tpu.matmul %131, %132, %cst_42 {dimension_numbers = #tpu.dot_dimension_numbers<[1], [0], [0], [1], [0, 0, 1, 1], [], []>} : vector<8x64xf32>, vector<64x768xf32>, vector<8x768xf32> -> vector<8x768xf32>
    %c144_43 = arith.constant 144 : index
    %c0_44 = arith.constant 0 : index
    %134 = vector.load %arg1[%c144_43, %c0_44] : memref<296x768xf32, #tpu.memory_space<vmem>>, vector<1x768xf32>
    %135 = vector.broadcast %134 : vector<1x768xf32> to vector<8x768xf32>
    %136 = arith.addf %133, %135 : vector<8x768xf32>
    %137 = vector.extract_strided_slice %136 {offsets = [0, 0], sizes = [8, 128], strides = [1, 1]} : vector<8x768xf32> to vector<8x128xf32>
    %138 = vector.extract_strided_slice %136 {offsets = [0, 128], sizes = [8, 128], strides = [1, 1]} : vector<8x768xf32> to vector<8x128xf32>
    %139 = vector.extract_strided_slice %136 {offsets = [0, 256], sizes = [8, 128], strides = [1, 1]} : vector<8x768xf32> to vector<8x128xf32>
    %140 = arith.maximumf %137, %138 : vector<8x128xf32>
    %141 = arith.maximumf %140, %139 : vector<8x128xf32>
    %142 = arith.subf %137, %141 : vector<8x128xf32>
    %143 = math.exp %142 : vector<8x128xf32>
    %144 = arith.subf %138, %141 : vector<8x128xf32>
    %145 = math.exp %144 : vector<8x128xf32>
    %146 = arith.subf %139, %141 : vector<8x128xf32>
    %147 = math.exp %146 : vector<8x128xf32>
    %148 = arith.addf %143, %145 : vector<8x128xf32>
    %149 = arith.addf %148, %147 : vector<8x128xf32>
    %150 = tpu.reciprocal %149 {approx = true} : vector<8x128xf32> -> vector<8x128xf32>
    %151 = arith.mulf %143, %150 : vector<8x128xf32>
    %152 = vector.extract_strided_slice %136 {offsets = [0, 384], sizes = [8, 128], strides = [1, 1]} : vector<8x768xf32> to vector<8x128xf32>
    %153 = arith.mulf %151, %152 : vector<8x128xf32>
    %154 = arith.mulf %145, %150 : vector<8x128xf32>
    %155 = vector.extract_strided_slice %136 {offsets = [0, 512], sizes = [8, 128], strides = [1, 1]} : vector<8x768xf32> to vector<8x128xf32>
    %156 = arith.mulf %154, %155 : vector<8x128xf32>
    %157 = arith.addf %153, %156 : vector<8x128xf32>
    %158 = arith.mulf %147, %150 : vector<8x128xf32>
    %159 = vector.extract_strided_slice %136 {offsets = [0, 640], sizes = [8, 128], strides = [1, 1]} : vector<8x768xf32> to vector<8x128xf32>
    %160 = arith.mulf %158, %159 : vector<8x128xf32>
    %161 = arith.addf %157, %160 : vector<8x128xf32>
    %162 = vector.extract_strided_slice %161 {offsets = [0, 0], sizes = [8, 8], strides = [1, 1]} : vector<8x128xf32> to vector<8x8xf32>
    %c152_45 = arith.constant 152 : index
    %c0_46 = arith.constant 0 : index
    %163 = vector.load %arg1[%c152_45, %c0_46] : memref<296x768xf32, #tpu.memory_space<vmem>>, vector<8x48xf32>
    %cst_47 = arith.constant dense<0.000000e+00> : vector<8x48xf32>
    %164 = tpu.matmul %162, %163, %cst_47 {dimension_numbers = #tpu.dot_dimension_numbers<[1], [0], [0], [1], [0, 0, 1, 1], [], []>} : vector<8x8xf32>, vector<8x48xf32>, vector<8x48xf32> -> vector<8x48xf32>
    %165 = vector.extract_strided_slice %99 {offsets = [0, 0], sizes = [8, 8], strides = [1, 1]} : vector<8x128xf32> to vector<8x8xf32>
    %c160_48 = arith.constant 160 : index
    %c0_49 = arith.constant 0 : index
    %166 = vector.load %arg1[%c160_48, %c0_49] : memref<296x768xf32, #tpu.memory_space<vmem>>, vector<8x48xf32>
    %cst_50 = arith.constant dense<0.000000e+00> : vector<8x48xf32>
    %167 = tpu.matmul %165, %166, %cst_50 {dimension_numbers = #tpu.dot_dimension_numbers<[1], [0], [0], [1], [0, 0, 1, 1], [], []>} : vector<8x8xf32>, vector<8x48xf32>, vector<8x48xf32> -> vector<8x48xf32>
    %168 = arith.addf %164, %167 : vector<8x48xf32>
    %c168_51 = arith.constant 168 : index
    %c0_52 = arith.constant 0 : index
    %169 = vector.load %arg1[%c168_51, %c0_52] : memref<296x768xf32, #tpu.memory_space<vmem>>, vector<1x48xf32>
    %170 = vector.broadcast %169 : vector<1x48xf32> to vector<8x48xf32>
    %171 = arith.addf %168, %170 : vector<8x48xf32>
    %cst_53 = arith.constant 0.000000e+00 : f32
    %172 = vector.broadcast %cst_53 : f32 to vector<8x48xf32>
    %173 = arith.maximumf %171, %172 : vector<8x48xf32>
    %c176_54 = arith.constant 176 : index
    %c0_55 = arith.constant 0 : index
    %174 = vector.load %arg1[%c176_54, %c0_55] : memref<296x768xf32, #tpu.memory_space<vmem>>, vector<48x384xf32>
    %cst_56 = arith.constant dense<0.000000e+00> : vector<8x384xf32>
    %175 = tpu.matmul %173, %174, %cst_56 {dimension_numbers = #tpu.dot_dimension_numbers<[1], [0], [0], [1], [0, 0, 1, 1], [], []>} : vector<8x48xf32>, vector<48x384xf32>, vector<8x384xf32> -> vector<8x384xf32>
    %c224_57 = arith.constant 224 : index
    %c0_58 = arith.constant 0 : index
    %176 = vector.load %arg1[%c224_57, %c0_58] : memref<296x768xf32, #tpu.memory_space<vmem>>, vector<1x384xf32>
    %177 = vector.broadcast %176 : vector<1x384xf32> to vector<8x384xf32>
    %178 = arith.addf %175, %177 : vector<8x384xf32>
    %179 = vector.extract_strided_slice %178 {offsets = [0, 0], sizes = [8, 128], strides = [1, 1]} : vector<8x384xf32> to vector<8x128xf32>
    %180 = math.tanh %179 : vector<8x128xf32>
    %181 = vector.extract_strided_slice %178 {offsets = [0, 128], sizes = [8, 256], strides = [1, 1]} : vector<8x384xf32> to vector<8x256xf32>
    %182 = arith.negf %181 : vector<8x256xf32>
    %183 = math.exp %182 : vector<8x256xf32>
    %cst_59 = arith.constant 1.000000e+00 : f32
    %184 = vector.broadcast %cst_59 : f32 to vector<8x256xf32>
    %185 = arith.addf %184, %183 : vector<8x256xf32>
    %186 = arith.divf %184, %185 : vector<8x256xf32>
    %187 = vector.extract_strided_slice %186 {offsets = [0, 0], sizes = [8, 128], strides = [1, 1]} : vector<8x256xf32> to vector<8x128xf32>
    %188 = arith.mulf %187, %99 : vector<8x128xf32>
    %189 = vector.extract_strided_slice %186 {offsets = [0, 128], sizes = [8, 128], strides = [1, 1]} : vector<8x256xf32> to vector<8x128xf32>
    %190 = arith.mulf %189, %180 : vector<8x128xf32>
    %191 = arith.addf %188, %190 : vector<8x128xf32>
    %c2_i32 = arith.constant 2 : i32
    %c8_i32_60 = arith.constant 8 : i32
    %192 = arith.muli %c2_i32, %c8_i32_60 : i32
    %193 = tpu.assume_multiple %192, 8 : i32
    %194 = arith.index_cast %193 : i32 to index
    %c0_61 = arith.constant 0 : index
    %195 = vector.load %arg3[%194, %c0_61] : memref<64x512xf32, #tpu.memory_space<vmem>>, vector<8x512xf32>
    %196 = vector.extract_strided_slice %123 {offsets = [0, 0], sizes = [8, 24], strides = [1, 1]} : vector<8x128xf32> to vector<8x24xf32>
    %c16_62 = arith.constant 16 : index
    %c0_63 = arith.constant 0 : index
    %197 = vector.load %arg1[%c16_62, %c0_63] : memref<296x768xf32, #tpu.memory_space<vmem>>, vector<24x512xf32>
    %cst_64 = arith.constant dense<0.000000e+00> : vector<8x512xf32>
    %198 = tpu.matmul %196, %197, %cst_64 {dimension_numbers = #tpu.dot_dimension_numbers<[1], [0], [0], [1], [0, 0, 1, 1], [], []>} : vector<8x24xf32>, vector<24x512xf32>, vector<8x512xf32> -> vector<8x512xf32>
    %199 = arith.addf %195, %198 : vector<8x512xf32>
    %200 = vector.extract_strided_slice %199 {offsets = [0, 0], sizes = [8, 384], strides = [1, 1]} : vector<8x512xf32> to vector<8x384xf32>
    %201 = arith.negf %200 : vector<8x384xf32>
    %202 = math.exp %201 : vector<8x384xf32>
    %cst_65 = arith.constant 1.000000e+00 : f32
    %203 = vector.broadcast %cst_65 : f32 to vector<8x384xf32>
    %204 = arith.addf %203, %202 : vector<8x384xf32>
    %205 = arith.divf %203, %204 : vector<8x384xf32>
    %206 = vector.extract_strided_slice %199 {offsets = [0, 384], sizes = [8, 128], strides = [1, 1]} : vector<8x512xf32> to vector<8x128xf32>
    %207 = math.tanh %206 : vector<8x128xf32>
    %208 = vector.extract_strided_slice %205 {offsets = [0, 0], sizes = [8, 128], strides = [1, 1]} : vector<8x384xf32> to vector<8x128xf32>
    %209 = vector.extract_strided_slice %205 {offsets = [0, 128], sizes = [8, 128], strides = [1, 1]} : vector<8x384xf32> to vector<8x128xf32>
    %210 = vector.extract_strided_slice %205 {offsets = [0, 256], sizes = [8, 128], strides = [1, 1]} : vector<8x384xf32> to vector<8x128xf32>
    %211 = arith.mulf %209, %121 : vector<8x128xf32>
    %212 = arith.mulf %208, %207 : vector<8x128xf32>
    %213 = arith.addf %211, %212 : vector<8x128xf32>
    %214 = math.tanh %213 : vector<8x128xf32>
    %215 = arith.mulf %210, %214 : vector<8x128xf32>
    %216 = vector.extract_strided_slice %213 {offsets = [0, 0], sizes = [8, 24], strides = [1, 1]} : vector<8x128xf32> to vector<8x24xf32>
    %c48_66 = arith.constant 48 : index
    %c0_67 = arith.constant 0 : index
    %217 = vector.load %arg1[%c48_66, %c0_67] : memref<296x768xf32, #tpu.memory_space<vmem>>, vector<24x64xf32>
    %cst_68 = arith.constant dense<0.000000e+00> : vector<8x64xf32>
    %218 = tpu.matmul %216, %217, %cst_68 {dimension_numbers = #tpu.dot_dimension_numbers<[1], [0], [0], [1], [0, 0, 1, 1], [], []>} : vector<8x24xf32>, vector<24x64xf32>, vector<8x64xf32> -> vector<8x64xf32>
    %c72_69 = arith.constant 72 : index
    %c0_70 = arith.constant 0 : index
    %219 = vector.load %arg1[%c72_69, %c0_70] : memref<296x768xf32, #tpu.memory_space<vmem>>, vector<1x64xf32>
    %220 = vector.broadcast %219 : vector<1x64xf32> to vector<8x64xf32>
    %221 = arith.addf %218, %220 : vector<8x64xf32>
    %cst_71 = arith.constant 0.000000e+00 : f32
    %222 = vector.broadcast %cst_71 : f32 to vector<8x64xf32>
    %223 = arith.maximumf %221, %222 : vector<8x64xf32>
    %c80_72 = arith.constant 80 : index
    %c0_73 = arith.constant 0 : index
    %224 = vector.load %arg1[%c80_72, %c0_73] : memref<296x768xf32, #tpu.memory_space<vmem>>, vector<64x768xf32>
    %cst_74 = arith.constant dense<0.000000e+00> : vector<8x768xf32>
    %225 = tpu.matmul %223, %224, %cst_74 {dimension_numbers = #tpu.dot_dimension_numbers<[1], [0], [0], [1], [0, 0, 1, 1], [], []>} : vector<8x64xf32>, vector<64x768xf32>, vector<8x768xf32> -> vector<8x768xf32>
    %c144_75 = arith.constant 144 : index
    %c0_76 = arith.constant 0 : index
    %226 = vector.load %arg1[%c144_75, %c0_76] : memref<296x768xf32, #tpu.memory_space<vmem>>, vector<1x768xf32>
    %227 = vector.broadcast %226 : vector<1x768xf32> to vector<8x768xf32>
    %228 = arith.addf %225, %227 : vector<8x768xf32>
    %229 = vector.extract_strided_slice %228 {offsets = [0, 0], sizes = [8, 128], strides = [1, 1]} : vector<8x768xf32> to vector<8x128xf32>
    %230 = vector.extract_strided_slice %228 {offsets = [0, 128], sizes = [8, 128], strides = [1, 1]} : vector<8x768xf32> to vector<8x128xf32>
    %231 = vector.extract_strided_slice %228 {offsets = [0, 256], sizes = [8, 128], strides = [1, 1]} : vector<8x768xf32> to vector<8x128xf32>
    %232 = arith.maximumf %229, %230 : vector<8x128xf32>
    %233 = arith.maximumf %232, %231 : vector<8x128xf32>
    %234 = arith.subf %229, %233 : vector<8x128xf32>
    %235 = math.exp %234 : vector<8x128xf32>
    %236 = arith.subf %230, %233 : vector<8x128xf32>
    %237 = math.exp %236 : vector<8x128xf32>
    %238 = arith.subf %231, %233 : vector<8x128xf32>
    %239 = math.exp %238 : vector<8x128xf32>
    %240 = arith.addf %235, %237 : vector<8x128xf32>
    %241 = arith.addf %240, %239 : vector<8x128xf32>
    %242 = tpu.reciprocal %241 {approx = true} : vector<8x128xf32> -> vector<8x128xf32>
    %243 = arith.mulf %235, %242 : vector<8x128xf32>
    %244 = vector.extract_strided_slice %228 {offsets = [0, 384], sizes = [8, 128], strides = [1, 1]} : vector<8x768xf32> to vector<8x128xf32>
    %245 = arith.mulf %243, %244 : vector<8x128xf32>
    %246 = arith.mulf %237, %242 : vector<8x128xf32>
    %247 = vector.extract_strided_slice %228 {offsets = [0, 512], sizes = [8, 128], strides = [1, 1]} : vector<8x768xf32> to vector<8x128xf32>
    %248 = arith.mulf %246, %247 : vector<8x128xf32>
    %249 = arith.addf %245, %248 : vector<8x128xf32>
    %250 = arith.mulf %239, %242 : vector<8x128xf32>
    %251 = vector.extract_strided_slice %228 {offsets = [0, 640], sizes = [8, 128], strides = [1, 1]} : vector<8x768xf32> to vector<8x128xf32>
    %252 = arith.mulf %250, %251 : vector<8x128xf32>
    %253 = arith.addf %249, %252 : vector<8x128xf32>
    %254 = vector.extract_strided_slice %253 {offsets = [0, 0], sizes = [8, 8], strides = [1, 1]} : vector<8x128xf32> to vector<8x8xf32>
    %c152_77 = arith.constant 152 : index
    %c0_78 = arith.constant 0 : index
    %255 = vector.load %arg1[%c152_77, %c0_78] : memref<296x768xf32, #tpu.memory_space<vmem>>, vector<8x48xf32>
    %cst_79 = arith.constant dense<0.000000e+00> : vector<8x48xf32>
    %256 = tpu.matmul %254, %255, %cst_79 {dimension_numbers = #tpu.dot_dimension_numbers<[1], [0], [0], [1], [0, 0, 1, 1], [], []>} : vector<8x8xf32>, vector<8x48xf32>, vector<8x48xf32> -> vector<8x48xf32>
    %257 = vector.extract_strided_slice %191 {offsets = [0, 0], sizes = [8, 8], strides = [1, 1]} : vector<8x128xf32> to vector<8x8xf32>
    %c160_80 = arith.constant 160 : index
    %c0_81 = arith.constant 0 : index
    %258 = vector.load %arg1[%c160_80, %c0_81] : memref<296x768xf32, #tpu.memory_space<vmem>>, vector<8x48xf32>
    %cst_82 = arith.constant dense<0.000000e+00> : vector<8x48xf32>
    %259 = tpu.matmul %257, %258, %cst_82 {dimension_numbers = #tpu.dot_dimension_numbers<[1], [0], [0], [1], [0, 0, 1, 1], [], []>} : vector<8x8xf32>, vector<8x48xf32>, vector<8x48xf32> -> vector<8x48xf32>
    %260 = arith.addf %256, %259 : vector<8x48xf32>
    %c168_83 = arith.constant 168 : index
    %c0_84 = arith.constant 0 : index
    %261 = vector.load %arg1[%c168_83, %c0_84] : memref<296x768xf32, #tpu.memory_space<vmem>>, vector<1x48xf32>
    %262 = vector.broadcast %261 : vector<1x48xf32> to vector<8x48xf32>
    %263 = arith.addf %260, %262 : vector<8x48xf32>
    %cst_85 = arith.constant 0.000000e+00 : f32
    %264 = vector.broadcast %cst_85 : f32 to vector<8x48xf32>
    %265 = arith.maximumf %263, %264 : vector<8x48xf32>
    %c176_86 = arith.constant 176 : index
    %c0_87 = arith.constant 0 : index
    %266 = vector.load %arg1[%c176_86, %c0_87] : memref<296x768xf32, #tpu.memory_space<vmem>>, vector<48x384xf32>
    %cst_88 = arith.constant dense<0.000000e+00> : vector<8x384xf32>
    %267 = tpu.matmul %265, %266, %cst_88 {dimension_numbers = #tpu.dot_dimension_numbers<[1], [0], [0], [1], [0, 0, 1, 1], [], []>} : vector<8x48xf32>, vector<48x384xf32>, vector<8x384xf32> -> vector<8x384xf32>
    %c224_89 = arith.constant 224 : index
    %c0_90 = arith.constant 0 : index
    %268 = vector.load %arg1[%c224_89, %c0_90] : memref<296x768xf32, #tpu.memory_space<vmem>>, vector<1x384xf32>
    %269 = vector.broadcast %268 : vector<1x384xf32> to vector<8x384xf32>
    %270 = arith.addf %267, %269 : vector<8x384xf32>
    %271 = vector.extract_strided_slice %270 {offsets = [0, 0], sizes = [8, 128], strides = [1, 1]} : vector<8x384xf32> to vector<8x128xf32>
    %272 = math.tanh %271 : vector<8x128xf32>
    %273 = vector.extract_strided_slice %270 {offsets = [0, 128], sizes = [8, 256], strides = [1, 1]} : vector<8x384xf32> to vector<8x256xf32>
    %274 = arith.negf %273 : vector<8x256xf32>
    %275 = math.exp %274 : vector<8x256xf32>
    %cst_91 = arith.constant 1.000000e+00 : f32
    %276 = vector.broadcast %cst_91 : f32 to vector<8x256xf32>
    %277 = arith.addf %276, %275 : vector<8x256xf32>
    %278 = arith.divf %276, %277 : vector<8x256xf32>
    %279 = vector.extract_strided_slice %278 {offsets = [0, 0], sizes = [8, 128], strides = [1, 1]} : vector<8x256xf32> to vector<8x128xf32>
    %280 = arith.mulf %279, %191 : vector<8x128xf32>
    %281 = vector.extract_strided_slice %278 {offsets = [0, 128], sizes = [8, 128], strides = [1, 1]} : vector<8x256xf32> to vector<8x128xf32>
    %282 = arith.mulf %281, %272 : vector<8x128xf32>
    %283 = arith.addf %280, %282 : vector<8x128xf32>
    %c3_i32 = arith.constant 3 : i32
    %c8_i32_92 = arith.constant 8 : i32
    %284 = arith.muli %c3_i32, %c8_i32_92 : i32
    %285 = tpu.assume_multiple %284, 8 : i32
    %286 = arith.index_cast %285 : i32 to index
    %c0_93 = arith.constant 0 : index
    %287 = vector.load %arg3[%286, %c0_93] : memref<64x512xf32, #tpu.memory_space<vmem>>, vector<8x512xf32>
    %288 = vector.extract_strided_slice %215 {offsets = [0, 0], sizes = [8, 24], strides = [1, 1]} : vector<8x128xf32> to vector<8x24xf32>
    %c16_94 = arith.constant 16 : index
    %c0_95 = arith.constant 0 : index
    %289 = vector.load %arg1[%c16_94, %c0_95] : memref<296x768xf32, #tpu.memory_space<vmem>>, vector<24x512xf32>
    %cst_96 = arith.constant dense<0.000000e+00> : vector<8x512xf32>
    %290 = tpu.matmul %288, %289, %cst_96 {dimension_numbers = #tpu.dot_dimension_numbers<[1], [0], [0], [1], [0, 0, 1, 1], [], []>} : vector<8x24xf32>, vector<24x512xf32>, vector<8x512xf32> -> vector<8x512xf32>
    %291 = arith.addf %287, %290 : vector<8x512xf32>
    %292 = vector.extract_strided_slice %291 {offsets = [0, 0], sizes = [8, 384], strides = [1, 1]} : vector<8x512xf32> to vector<8x384xf32>
    %293 = arith.negf %292 : vector<8x384xf32>
    %294 = math.exp %293 : vector<8x384xf32>
    %cst_97 = arith.constant 1.000000e+00 : f32
    %295 = vector.broadcast %cst_97 : f32 to vector<8x384xf32>
    %296 = arith.addf %295, %294 : vector<8x384xf32>
    %297 = arith.divf %295, %296 : vector<8x384xf32>
    %298 = vector.extract_strided_slice %291 {offsets = [0, 384], sizes = [8, 128], strides = [1, 1]} : vector<8x512xf32> to vector<8x128xf32>
    %299 = math.tanh %298 : vector<8x128xf32>
    %300 = vector.extract_strided_slice %297 {offsets = [0, 0], sizes = [8, 128], strides = [1, 1]} : vector<8x384xf32> to vector<8x128xf32>
    %301 = vector.extract_strided_slice %297 {offsets = [0, 128], sizes = [8, 128], strides = [1, 1]} : vector<8x384xf32> to vector<8x128xf32>
    %302 = vector.extract_strided_slice %297 {offsets = [0, 256], sizes = [8, 128], strides = [1, 1]} : vector<8x384xf32> to vector<8x128xf32>
    %303 = arith.mulf %301, %213 : vector<8x128xf32>
    %304 = arith.mulf %300, %299 : vector<8x128xf32>
    %305 = arith.addf %303, %304 : vector<8x128xf32>
    %306 = math.tanh %305 : vector<8x128xf32>
    %307 = arith.mulf %302, %306 : vector<8x128xf32>
    %308 = vector.extract_strided_slice %305 {offsets = [0, 0], sizes = [8, 24], strides = [1, 1]} : vector<8x128xf32> to vector<8x24xf32>
    %c48_98 = arith.constant 48 : index
    %c0_99 = arith.constant 0 : index
    %309 = vector.load %arg1[%c48_98, %c0_99] : memref<296x768xf32, #tpu.memory_space<vmem>>, vector<24x64xf32>
    %cst_100 = arith.constant dense<0.000000e+00> : vector<8x64xf32>
    %310 = tpu.matmul %308, %309, %cst_100 {dimension_numbers = #tpu.dot_dimension_numbers<[1], [0], [0], [1], [0, 0, 1, 1], [], []>} : vector<8x24xf32>, vector<24x64xf32>, vector<8x64xf32> -> vector<8x64xf32>
    %c72_101 = arith.constant 72 : index
    %c0_102 = arith.constant 0 : index
    %311 = vector.load %arg1[%c72_101, %c0_102] : memref<296x768xf32, #tpu.memory_space<vmem>>, vector<1x64xf32>
    %312 = vector.broadcast %311 : vector<1x64xf32> to vector<8x64xf32>
    %313 = arith.addf %310, %312 : vector<8x64xf32>
    %cst_103 = arith.constant 0.000000e+00 : f32
    %314 = vector.broadcast %cst_103 : f32 to vector<8x64xf32>
    %315 = arith.maximumf %313, %314 : vector<8x64xf32>
    %c80_104 = arith.constant 80 : index
    %c0_105 = arith.constant 0 : index
    %316 = vector.load %arg1[%c80_104, %c0_105] : memref<296x768xf32, #tpu.memory_space<vmem>>, vector<64x768xf32>
    %cst_106 = arith.constant dense<0.000000e+00> : vector<8x768xf32>
    %317 = tpu.matmul %315, %316, %cst_106 {dimension_numbers = #tpu.dot_dimension_numbers<[1], [0], [0], [1], [0, 0, 1, 1], [], []>} : vector<8x64xf32>, vector<64x768xf32>, vector<8x768xf32> -> vector<8x768xf32>
    %c144_107 = arith.constant 144 : index
    %c0_108 = arith.constant 0 : index
    %318 = vector.load %arg1[%c144_107, %c0_108] : memref<296x768xf32, #tpu.memory_space<vmem>>, vector<1x768xf32>
    %319 = vector.broadcast %318 : vector<1x768xf32> to vector<8x768xf32>
    %320 = arith.addf %317, %319 : vector<8x768xf32>
    %321 = vector.extract_strided_slice %320 {offsets = [0, 0], sizes = [8, 128], strides = [1, 1]} : vector<8x768xf32> to vector<8x128xf32>
    %322 = vector.extract_strided_slice %320 {offsets = [0, 128], sizes = [8, 128], strides = [1, 1]} : vector<8x768xf32> to vector<8x128xf32>
    %323 = vector.extract_strided_slice %320 {offsets = [0, 256], sizes = [8, 128], strides = [1, 1]} : vector<8x768xf32> to vector<8x128xf32>
    %324 = arith.maximumf %321, %322 : vector<8x128xf32>
    %325 = arith.maximumf %324, %323 : vector<8x128xf32>
    %326 = arith.subf %321, %325 : vector<8x128xf32>
    %327 = math.exp %326 : vector<8x128xf32>
    %328 = arith.subf %322, %325 : vector<8x128xf32>
    %329 = math.exp %328 : vector<8x128xf32>
    %330 = arith.subf %323, %325 : vector<8x128xf32>
    %331 = math.exp %330 : vector<8x128xf32>
    %332 = arith.addf %327, %329 : vector<8x128xf32>
    %333 = arith.addf %332, %331 : vector<8x128xf32>
    %334 = tpu.reciprocal %333 {approx = true} : vector<8x128xf32> -> vector<8x128xf32>
    %335 = arith.mulf %327, %334 : vector<8x128xf32>
    %336 = vector.extract_strided_slice %320 {offsets = [0, 384], sizes = [8, 128], strides = [1, 1]} : vector<8x768xf32> to vector<8x128xf32>
    %337 = arith.mulf %335, %336 : vector<8x128xf32>
    %338 = arith.mulf %329, %334 : vector<8x128xf32>
    %339 = vector.extract_strided_slice %320 {offsets = [0, 512], sizes = [8, 128], strides = [1, 1]} : vector<8x768xf32> to vector<8x128xf32>
    %340 = arith.mulf %338, %339 : vector<8x128xf32>
    %341 = arith.addf %337, %340 : vector<8x128xf32>
    %342 = arith.mulf %331, %334 : vector<8x128xf32>
    %343 = vector.extract_strided_slice %320 {offsets = [0, 640], sizes = [8, 128], strides = [1, 1]} : vector<8x768xf32> to vector<8x128xf32>
    %344 = arith.mulf %342, %343 : vector<8x128xf32>
    %345 = arith.addf %341, %344 : vector<8x128xf32>
    %346 = vector.extract_strided_slice %345 {offsets = [0, 0], sizes = [8, 8], strides = [1, 1]} : vector<8x128xf32> to vector<8x8xf32>
    %c152_109 = arith.constant 152 : index
    %c0_110 = arith.constant 0 : index
    %347 = vector.load %arg1[%c152_109, %c0_110] : memref<296x768xf32, #tpu.memory_space<vmem>>, vector<8x48xf32>
    %cst_111 = arith.constant dense<0.000000e+00> : vector<8x48xf32>
    %348 = tpu.matmul %346, %347, %cst_111 {dimension_numbers = #tpu.dot_dimension_numbers<[1], [0], [0], [1], [0, 0, 1, 1], [], []>} : vector<8x8xf32>, vector<8x48xf32>, vector<8x48xf32> -> vector<8x48xf32>
    %349 = vector.extract_strided_slice %283 {offsets = [0, 0], sizes = [8, 8], strides = [1, 1]} : vector<8x128xf32> to vector<8x8xf32>
    %c160_112 = arith.constant 160 : index
    %c0_113 = arith.constant 0 : index
    %350 = vector.load %arg1[%c160_112, %c0_113] : memref<296x768xf32, #tpu.memory_space<vmem>>, vector<8x48xf32>
    %cst_114 = arith.constant dense<0.000000e+00> : vector<8x48xf32>
    %351 = tpu.matmul %349, %350, %cst_114 {dimension_numbers = #tpu.dot_dimension_numbers<[1], [0], [0], [1], [0, 0, 1, 1], [], []>} : vector<8x8xf32>, vector<8x48xf32>, vector<8x48xf32> -> vector<8x48xf32>
    %352 = arith.addf %348, %351 : vector<8x48xf32>
    %c168_115 = arith.constant 168 : index
    %c0_116 = arith.constant 0 : index
    %353 = vector.load %arg1[%c168_115, %c0_116] : memref<296x768xf32, #tpu.memory_space<vmem>>, vector<1x48xf32>
    %354 = vector.broadcast %353 : vector<1x48xf32> to vector<8x48xf32>
    %355 = arith.addf %352, %354 : vector<8x48xf32>
    %cst_117 = arith.constant 0.000000e+00 : f32
    %356 = vector.broadcast %cst_117 : f32 to vector<8x48xf32>
    %357 = arith.maximumf %355, %356 : vector<8x48xf32>
    %c176_118 = arith.constant 176 : index
    %c0_119 = arith.constant 0 : index
    %358 = vector.load %arg1[%c176_118, %c0_119] : memref<296x768xf32, #tpu.memory_space<vmem>>, vector<48x384xf32>
    %cst_120 = arith.constant dense<0.000000e+00> : vector<8x384xf32>
    %359 = tpu.matmul %357, %358, %cst_120 {dimension_numbers = #tpu.dot_dimension_numbers<[1], [0], [0], [1], [0, 0, 1, 1], [], []>} : vector<8x48xf32>, vector<48x384xf32>, vector<8x384xf32> -> vector<8x384xf32>
    %c224_121 = arith.constant 224 : index
    %c0_122 = arith.constant 0 : index
    %360 = vector.load %arg1[%c224_121, %c0_122] : memref<296x768xf32, #tpu.memory_space<vmem>>, vector<1x384xf32>
    %361 = vector.broadcast %360 : vector<1x384xf32> to vector<8x384xf32>
    %362 = arith.addf %359, %361 : vector<8x384xf32>
    %363 = vector.extract_strided_slice %362 {offsets = [0, 0], sizes = [8, 128], strides = [1, 1]} : vector<8x384xf32> to vector<8x128xf32>
    %364 = math.tanh %363 : vector<8x128xf32>
    %365 = vector.extract_strided_slice %362 {offsets = [0, 128], sizes = [8, 256], strides = [1, 1]} : vector<8x384xf32> to vector<8x256xf32>
    %366 = arith.negf %365 : vector<8x256xf32>
    %367 = math.exp %366 : vector<8x256xf32>
    %cst_123 = arith.constant 1.000000e+00 : f32
    %368 = vector.broadcast %cst_123 : f32 to vector<8x256xf32>
    %369 = arith.addf %368, %367 : vector<8x256xf32>
    %370 = arith.divf %368, %369 : vector<8x256xf32>
    %371 = vector.extract_strided_slice %370 {offsets = [0, 0], sizes = [8, 128], strides = [1, 1]} : vector<8x256xf32> to vector<8x128xf32>
    %372 = arith.mulf %371, %283 : vector<8x128xf32>
    %373 = vector.extract_strided_slice %370 {offsets = [0, 128], sizes = [8, 128], strides = [1, 1]} : vector<8x256xf32> to vector<8x128xf32>
    %374 = arith.mulf %373, %364 : vector<8x128xf32>
    %375 = arith.addf %372, %374 : vector<8x128xf32>
    %c4_i32 = arith.constant 4 : i32
    %c8_i32_124 = arith.constant 8 : i32
    %376 = arith.muli %c4_i32, %c8_i32_124 : i32
    %377 = tpu.assume_multiple %376, 8 : i32
    %378 = arith.index_cast %377 : i32 to index
    %c0_125 = arith.constant 0 : index
    %379 = vector.load %arg3[%378, %c0_125] : memref<64x512xf32, #tpu.memory_space<vmem>>, vector<8x512xf32>
    %380 = vector.extract_strided_slice %307 {offsets = [0, 0], sizes = [8, 24], strides = [1, 1]} : vector<8x128xf32> to vector<8x24xf32>
    %c16_126 = arith.constant 16 : index
    %c0_127 = arith.constant 0 : index
    %381 = vector.load %arg1[%c16_126, %c0_127] : memref<296x768xf32, #tpu.memory_space<vmem>>, vector<24x512xf32>
    %cst_128 = arith.constant dense<0.000000e+00> : vector<8x512xf32>
    %382 = tpu.matmul %380, %381, %cst_128 {dimension_numbers = #tpu.dot_dimension_numbers<[1], [0], [0], [1], [0, 0, 1, 1], [], []>} : vector<8x24xf32>, vector<24x512xf32>, vector<8x512xf32> -> vector<8x512xf32>
    %383 = arith.addf %379, %382 : vector<8x512xf32>
    %384 = vector.extract_strided_slice %383 {offsets = [0, 0], sizes = [8, 384], strides = [1, 1]} : vector<8x512xf32> to vector<8x384xf32>
    %385 = arith.negf %384 : vector<8x384xf32>
    %386 = math.exp %385 : vector<8x384xf32>
    %cst_129 = arith.constant 1.000000e+00 : f32
    %387 = vector.broadcast %cst_129 : f32 to vector<8x384xf32>
    %388 = arith.addf %387, %386 : vector<8x384xf32>
    %389 = arith.divf %387, %388 : vector<8x384xf32>
    %390 = vector.extract_strided_slice %383 {offsets = [0, 384], sizes = [8, 128], strides = [1, 1]} : vector<8x512xf32> to vector<8x128xf32>
    %391 = math.tanh %390 : vector<8x128xf32>
    %392 = vector.extract_strided_slice %389 {offsets = [0, 0], sizes = [8, 128], strides = [1, 1]} : vector<8x384xf32> to vector<8x128xf32>
    %393 = vector.extract_strided_slice %389 {offsets = [0, 128], sizes = [8, 128], strides = [1, 1]} : vector<8x384xf32> to vector<8x128xf32>
    %394 = vector.extract_strided_slice %389 {offsets = [0, 256], sizes = [8, 128], strides = [1, 1]} : vector<8x384xf32> to vector<8x128xf32>
    %395 = arith.mulf %393, %305 : vector<8x128xf32>
    %396 = arith.mulf %392, %391 : vector<8x128xf32>
    %397 = arith.addf %395, %396 : vector<8x128xf32>
    %398 = math.tanh %397 : vector<8x128xf32>
    %399 = arith.mulf %394, %398 : vector<8x128xf32>
    %400 = vector.extract_strided_slice %397 {offsets = [0, 0], sizes = [8, 24], strides = [1, 1]} : vector<8x128xf32> to vector<8x24xf32>
    %c48_130 = arith.constant 48 : index
    %c0_131 = arith.constant 0 : index
    %401 = vector.load %arg1[%c48_130, %c0_131] : memref<296x768xf32, #tpu.memory_space<vmem>>, vector<24x64xf32>
    %cst_132 = arith.constant dense<0.000000e+00> : vector<8x64xf32>
    %402 = tpu.matmul %400, %401, %cst_132 {dimension_numbers = #tpu.dot_dimension_numbers<[1], [0], [0], [1], [0, 0, 1, 1], [], []>} : vector<8x24xf32>, vector<24x64xf32>, vector<8x64xf32> -> vector<8x64xf32>
    %c72_133 = arith.constant 72 : index
    %c0_134 = arith.constant 0 : index
    %403 = vector.load %arg1[%c72_133, %c0_134] : memref<296x768xf32, #tpu.memory_space<vmem>>, vector<1x64xf32>
    %404 = vector.broadcast %403 : vector<1x64xf32> to vector<8x64xf32>
    %405 = arith.addf %402, %404 : vector<8x64xf32>
    %cst_135 = arith.constant 0.000000e+00 : f32
    %406 = vector.broadcast %cst_135 : f32 to vector<8x64xf32>
    %407 = arith.maximumf %405, %406 : vector<8x64xf32>
    %c80_136 = arith.constant 80 : index
    %c0_137 = arith.constant 0 : index
    %408 = vector.load %arg1[%c80_136, %c0_137] : memref<296x768xf32, #tpu.memory_space<vmem>>, vector<64x768xf32>
    %cst_138 = arith.constant dense<0.000000e+00> : vector<8x768xf32>
    %409 = tpu.matmul %407, %408, %cst_138 {dimension_numbers = #tpu.dot_dimension_numbers<[1], [0], [0], [1], [0, 0, 1, 1], [], []>} : vector<8x64xf32>, vector<64x768xf32>, vector<8x768xf32> -> vector<8x768xf32>
    %c144_139 = arith.constant 144 : index
    %c0_140 = arith.constant 0 : index
    %410 = vector.load %arg1[%c144_139, %c0_140] : memref<296x768xf32, #tpu.memory_space<vmem>>, vector<1x768xf32>
    %411 = vector.broadcast %410 : vector<1x768xf32> to vector<8x768xf32>
    %412 = arith.addf %409, %411 : vector<8x768xf32>
    %413 = vector.extract_strided_slice %412 {offsets = [0, 0], sizes = [8, 128], strides = [1, 1]} : vector<8x768xf32> to vector<8x128xf32>
    %414 = vector.extract_strided_slice %412 {offsets = [0, 128], sizes = [8, 128], strides = [1, 1]} : vector<8x768xf32> to vector<8x128xf32>
    %415 = vector.extract_strided_slice %412 {offsets = [0, 256], sizes = [8, 128], strides = [1, 1]} : vector<8x768xf32> to vector<8x128xf32>
    %416 = arith.maximumf %413, %414 : vector<8x128xf32>
    %417 = arith.maximumf %416, %415 : vector<8x128xf32>
    %418 = arith.subf %413, %417 : vector<8x128xf32>
    %419 = math.exp %418 : vector<8x128xf32>
    %420 = arith.subf %414, %417 : vector<8x128xf32>
    %421 = math.exp %420 : vector<8x128xf32>
    %422 = arith.subf %415, %417 : vector<8x128xf32>
    %423 = math.exp %422 : vector<8x128xf32>
    %424 = arith.addf %419, %421 : vector<8x128xf32>
    %425 = arith.addf %424, %423 : vector<8x128xf32>
    %426 = tpu.reciprocal %425 {approx = true} : vector<8x128xf32> -> vector<8x128xf32>
    %427 = arith.mulf %419, %426 : vector<8x128xf32>
    %428 = vector.extract_strided_slice %412 {offsets = [0, 384], sizes = [8, 128], strides = [1, 1]} : vector<8x768xf32> to vector<8x128xf32>
    %429 = arith.mulf %427, %428 : vector<8x128xf32>
    %430 = arith.mulf %421, %426 : vector<8x128xf32>
    %431 = vector.extract_strided_slice %412 {offsets = [0, 512], sizes = [8, 128], strides = [1, 1]} : vector<8x768xf32> to vector<8x128xf32>
    %432 = arith.mulf %430, %431 : vector<8x128xf32>
    %433 = arith.addf %429, %432 : vector<8x128xf32>
    %434 = arith.mulf %423, %426 : vector<8x128xf32>
    %435 = vector.extract_strided_slice %412 {offsets = [0, 640], sizes = [8, 128], strides = [1, 1]} : vector<8x768xf32> to vector<8x128xf32>
    %436 = arith.mulf %434, %435 : vector<8x128xf32>
    %437 = arith.addf %433, %436 : vector<8x128xf32>
    %438 = vector.extract_strided_slice %437 {offsets = [0, 0], sizes = [8, 8], strides = [1, 1]} : vector<8x128xf32> to vector<8x8xf32>
    %c152_141 = arith.constant 152 : index
    %c0_142 = arith.constant 0 : index
    %439 = vector.load %arg1[%c152_141, %c0_142] : memref<296x768xf32, #tpu.memory_space<vmem>>, vector<8x48xf32>
    %cst_143 = arith.constant dense<0.000000e+00> : vector<8x48xf32>
    %440 = tpu.matmul %438, %439, %cst_143 {dimension_numbers = #tpu.dot_dimension_numbers<[1], [0], [0], [1], [0, 0, 1, 1], [], []>} : vector<8x8xf32>, vector<8x48xf32>, vector<8x48xf32> -> vector<8x48xf32>
    %441 = vector.extract_strided_slice %375 {offsets = [0, 0], sizes = [8, 8], strides = [1, 1]} : vector<8x128xf32> to vector<8x8xf32>
    %c160_144 = arith.constant 160 : index
    %c0_145 = arith.constant 0 : index
    %442 = vector.load %arg1[%c160_144, %c0_145] : memref<296x768xf32, #tpu.memory_space<vmem>>, vector<8x48xf32>
    %cst_146 = arith.constant dense<0.000000e+00> : vector<8x48xf32>
    %443 = tpu.matmul %441, %442, %cst_146 {dimension_numbers = #tpu.dot_dimension_numbers<[1], [0], [0], [1], [0, 0, 1, 1], [], []>} : vector<8x8xf32>, vector<8x48xf32>, vector<8x48xf32> -> vector<8x48xf32>
    %444 = arith.addf %440, %443 : vector<8x48xf32>
    %c168_147 = arith.constant 168 : index
    %c0_148 = arith.constant 0 : index
    %445 = vector.load %arg1[%c168_147, %c0_148] : memref<296x768xf32, #tpu.memory_space<vmem>>, vector<1x48xf32>
    %446 = vector.broadcast %445 : vector<1x48xf32> to vector<8x48xf32>
    %447 = arith.addf %444, %446 : vector<8x48xf32>
    %cst_149 = arith.constant 0.000000e+00 : f32
    %448 = vector.broadcast %cst_149 : f32 to vector<8x48xf32>
    %449 = arith.maximumf %447, %448 : vector<8x48xf32>
    %c176_150 = arith.constant 176 : index
    %c0_151 = arith.constant 0 : index
    %450 = vector.load %arg1[%c176_150, %c0_151] : memref<296x768xf32, #tpu.memory_space<vmem>>, vector<48x384xf32>
    %cst_152 = arith.constant dense<0.000000e+00> : vector<8x384xf32>
    %451 = tpu.matmul %449, %450, %cst_152 {dimension_numbers = #tpu.dot_dimension_numbers<[1], [0], [0], [1], [0, 0, 1, 1], [], []>} : vector<8x48xf32>, vector<48x384xf32>, vector<8x384xf32> -> vector<8x384xf32>
    %c224_153 = arith.constant 224 : index
    %c0_154 = arith.constant 0 : index
    %452 = vector.load %arg1[%c224_153, %c0_154] : memref<296x768xf32, #tpu.memory_space<vmem>>, vector<1x384xf32>
    %453 = vector.broadcast %452 : vector<1x384xf32> to vector<8x384xf32>
    %454 = arith.addf %451, %453 : vector<8x384xf32>
    %455 = vector.extract_strided_slice %454 {offsets = [0, 0], sizes = [8, 128], strides = [1, 1]} : vector<8x384xf32> to vector<8x128xf32>
    %456 = math.tanh %455 : vector<8x128xf32>
    %457 = vector.extract_strided_slice %454 {offsets = [0, 128], sizes = [8, 256], strides = [1, 1]} : vector<8x384xf32> to vector<8x256xf32>
    %458 = arith.negf %457 : vector<8x256xf32>
    %459 = math.exp %458 : vector<8x256xf32>
    %cst_155 = arith.constant 1.000000e+00 : f32
    %460 = vector.broadcast %cst_155 : f32 to vector<8x256xf32>
    %461 = arith.addf %460, %459 : vector<8x256xf32>
    %462 = arith.divf %460, %461 : vector<8x256xf32>
    %463 = vector.extract_strided_slice %462 {offsets = [0, 0], sizes = [8, 128], strides = [1, 1]} : vector<8x256xf32> to vector<8x128xf32>
    %464 = arith.mulf %463, %375 : vector<8x128xf32>
    %465 = vector.extract_strided_slice %462 {offsets = [0, 128], sizes = [8, 128], strides = [1, 1]} : vector<8x256xf32> to vector<8x128xf32>
    %466 = arith.mulf %465, %456 : vector<8x128xf32>
    %467 = arith.addf %464, %466 : vector<8x128xf32>
    %c5_i32 = arith.constant 5 : i32
    %c8_i32_156 = arith.constant 8 : i32
    %468 = arith.muli %c5_i32, %c8_i32_156 : i32
    %469 = tpu.assume_multiple %468, 8 : i32
    %470 = arith.index_cast %469 : i32 to index
    %c0_157 = arith.constant 0 : index
    %471 = vector.load %arg3[%470, %c0_157] : memref<64x512xf32, #tpu.memory_space<vmem>>, vector<8x512xf32>
    %472 = vector.extract_strided_slice %399 {offsets = [0, 0], sizes = [8, 24], strides = [1, 1]} : vector<8x128xf32> to vector<8x24xf32>
    %c16_158 = arith.constant 16 : index
    %c0_159 = arith.constant 0 : index
    %473 = vector.load %arg1[%c16_158, %c0_159] : memref<296x768xf32, #tpu.memory_space<vmem>>, vector<24x512xf32>
    %cst_160 = arith.constant dense<0.000000e+00> : vector<8x512xf32>
    %474 = tpu.matmul %472, %473, %cst_160 {dimension_numbers = #tpu.dot_dimension_numbers<[1], [0], [0], [1], [0, 0, 1, 1], [], []>} : vector<8x24xf32>, vector<24x512xf32>, vector<8x512xf32> -> vector<8x512xf32>
    %475 = arith.addf %471, %474 : vector<8x512xf32>
    %476 = vector.extract_strided_slice %475 {offsets = [0, 0], sizes = [8, 384], strides = [1, 1]} : vector<8x512xf32> to vector<8x384xf32>
    %477 = arith.negf %476 : vector<8x384xf32>
    %478 = math.exp %477 : vector<8x384xf32>
    %cst_161 = arith.constant 1.000000e+00 : f32
    %479 = vector.broadcast %cst_161 : f32 to vector<8x384xf32>
    %480 = arith.addf %479, %478 : vector<8x384xf32>
    %481 = arith.divf %479, %480 : vector<8x384xf32>
    %482 = vector.extract_strided_slice %475 {offsets = [0, 384], sizes = [8, 128], strides = [1, 1]} : vector<8x512xf32> to vector<8x128xf32>
    %483 = math.tanh %482 : vector<8x128xf32>
    %484 = vector.extract_strided_slice %481 {offsets = [0, 0], sizes = [8, 128], strides = [1, 1]} : vector<8x384xf32> to vector<8x128xf32>
    %485 = vector.extract_strided_slice %481 {offsets = [0, 128], sizes = [8, 128], strides = [1, 1]} : vector<8x384xf32> to vector<8x128xf32>
    %486 = vector.extract_strided_slice %481 {offsets = [0, 256], sizes = [8, 128], strides = [1, 1]} : vector<8x384xf32> to vector<8x128xf32>
    %487 = arith.mulf %485, %397 : vector<8x128xf32>
    %488 = arith.mulf %484, %483 : vector<8x128xf32>
    %489 = arith.addf %487, %488 : vector<8x128xf32>
    %490 = math.tanh %489 : vector<8x128xf32>
    %491 = arith.mulf %486, %490 : vector<8x128xf32>
    %492 = vector.extract_strided_slice %489 {offsets = [0, 0], sizes = [8, 24], strides = [1, 1]} : vector<8x128xf32> to vector<8x24xf32>
    %c48_162 = arith.constant 48 : index
    %c0_163 = arith.constant 0 : index
    %493 = vector.load %arg1[%c48_162, %c0_163] : memref<296x768xf32, #tpu.memory_space<vmem>>, vector<24x64xf32>
    %cst_164 = arith.constant dense<0.000000e+00> : vector<8x64xf32>
    %494 = tpu.matmul %492, %493, %cst_164 {dimension_numbers = #tpu.dot_dimension_numbers<[1], [0], [0], [1], [0, 0, 1, 1], [], []>} : vector<8x24xf32>, vector<24x64xf32>, vector<8x64xf32> -> vector<8x64xf32>
    %c72_165 = arith.constant 72 : index
    %c0_166 = arith.constant 0 : index
    %495 = vector.load %arg1[%c72_165, %c0_166] : memref<296x768xf32, #tpu.memory_space<vmem>>, vector<1x64xf32>
    %496 = vector.broadcast %495 : vector<1x64xf32> to vector<8x64xf32>
    %497 = arith.addf %494, %496 : vector<8x64xf32>
    %cst_167 = arith.constant 0.000000e+00 : f32
    %498 = vector.broadcast %cst_167 : f32 to vector<8x64xf32>
    %499 = arith.maximumf %497, %498 : vector<8x64xf32>
    %c80_168 = arith.constant 80 : index
    %c0_169 = arith.constant 0 : index
    %500 = vector.load %arg1[%c80_168, %c0_169] : memref<296x768xf32, #tpu.memory_space<vmem>>, vector<64x768xf32>
    %cst_170 = arith.constant dense<0.000000e+00> : vector<8x768xf32>
    %501 = tpu.matmul %499, %500, %cst_170 {dimension_numbers = #tpu.dot_dimension_numbers<[1], [0], [0], [1], [0, 0, 1, 1], [], []>} : vector<8x64xf32>, vector<64x768xf32>, vector<8x768xf32> -> vector<8x768xf32>
    %c144_171 = arith.constant 144 : index
    %c0_172 = arith.constant 0 : index
    %502 = vector.load %arg1[%c144_171, %c0_172] : memref<296x768xf32, #tpu.memory_space<vmem>>, vector<1x768xf32>
    %503 = vector.broadcast %502 : vector<1x768xf32> to vector<8x768xf32>
    %504 = arith.addf %501, %503 : vector<8x768xf32>
    %505 = vector.extract_strided_slice %504 {offsets = [0, 0], sizes = [8, 128], strides = [1, 1]} : vector<8x768xf32> to vector<8x128xf32>
    %506 = vector.extract_strided_slice %504 {offsets = [0, 128], sizes = [8, 128], strides = [1, 1]} : vector<8x768xf32> to vector<8x128xf32>
    %507 = vector.extract_strided_slice %504 {offsets = [0, 256], sizes = [8, 128], strides = [1, 1]} : vector<8x768xf32> to vector<8x128xf32>
    %508 = arith.maximumf %505, %506 : vector<8x128xf32>
    %509 = arith.maximumf %508, %507 : vector<8x128xf32>
    %510 = arith.subf %505, %509 : vector<8x128xf32>
    %511 = math.exp %510 : vector<8x128xf32>
    %512 = arith.subf %506, %509 : vector<8x128xf32>
    %513 = math.exp %512 : vector<8x128xf32>
    %514 = arith.subf %507, %509 : vector<8x128xf32>
    %515 = math.exp %514 : vector<8x128xf32>
    %516 = arith.addf %511, %513 : vector<8x128xf32>
    %517 = arith.addf %516, %515 : vector<8x128xf32>
    %518 = tpu.reciprocal %517 {approx = true} : vector<8x128xf32> -> vector<8x128xf32>
    %519 = arith.mulf %511, %518 : vector<8x128xf32>
    %520 = vector.extract_strided_slice %504 {offsets = [0, 384], sizes = [8, 128], strides = [1, 1]} : vector<8x768xf32> to vector<8x128xf32>
    %521 = arith.mulf %519, %520 : vector<8x128xf32>
    %522 = arith.mulf %513, %518 : vector<8x128xf32>
    %523 = vector.extract_strided_slice %504 {offsets = [0, 512], sizes = [8, 128], strides = [1, 1]} : vector<8x768xf32> to vector<8x128xf32>
    %524 = arith.mulf %522, %523 : vector<8x128xf32>
    %525 = arith.addf %521, %524 : vector<8x128xf32>
    %526 = arith.mulf %515, %518 : vector<8x128xf32>
    %527 = vector.extract_strided_slice %504 {offsets = [0, 640], sizes = [8, 128], strides = [1, 1]} : vector<8x768xf32> to vector<8x128xf32>
    %528 = arith.mulf %526, %527 : vector<8x128xf32>
    %529 = arith.addf %525, %528 : vector<8x128xf32>
    %530 = vector.extract_strided_slice %529 {offsets = [0, 0], sizes = [8, 8], strides = [1, 1]} : vector<8x128xf32> to vector<8x8xf32>
    %c152_173 = arith.constant 152 : index
    %c0_174 = arith.constant 0 : index
    %531 = vector.load %arg1[%c152_173, %c0_174] : memref<296x768xf32, #tpu.memory_space<vmem>>, vector<8x48xf32>
    %cst_175 = arith.constant dense<0.000000e+00> : vector<8x48xf32>
    %532 = tpu.matmul %530, %531, %cst_175 {dimension_numbers = #tpu.dot_dimension_numbers<[1], [0], [0], [1], [0, 0, 1, 1], [], []>} : vector<8x8xf32>, vector<8x48xf32>, vector<8x48xf32> -> vector<8x48xf32>
    %533 = vector.extract_strided_slice %467 {offsets = [0, 0], sizes = [8, 8], strides = [1, 1]} : vector<8x128xf32> to vector<8x8xf32>
    %c160_176 = arith.constant 160 : index
    %c0_177 = arith.constant 0 : index
    %534 = vector.load %arg1[%c160_176, %c0_177] : memref<296x768xf32, #tpu.memory_space<vmem>>, vector<8x48xf32>
    %cst_178 = arith.constant dense<0.000000e+00> : vector<8x48xf32>
    %535 = tpu.matmul %533, %534, %cst_178 {dimension_numbers = #tpu.dot_dimension_numbers<[1], [0], [0], [1], [0, 0, 1, 1], [], []>} : vector<8x8xf32>, vector<8x48xf32>, vector<8x48xf32> -> vector<8x48xf32>
    %536 = arith.addf %532, %535 : vector<8x48xf32>
    %c168_179 = arith.constant 168 : index
    %c0_180 = arith.constant 0 : index
    %537 = vector.load %arg1[%c168_179, %c0_180] : memref<296x768xf32, #tpu.memory_space<vmem>>, vector<1x48xf32>
    %538 = vector.broadcast %537 : vector<1x48xf32> to vector<8x48xf32>
    %539 = arith.addf %536, %538 : vector<8x48xf32>
    %cst_181 = arith.constant 0.000000e+00 : f32
    %540 = vector.broadcast %cst_181 : f32 to vector<8x48xf32>
    %541 = arith.maximumf %539, %540 : vector<8x48xf32>
    %c176_182 = arith.constant 176 : index
    %c0_183 = arith.constant 0 : index
    %542 = vector.load %arg1[%c176_182, %c0_183] : memref<296x768xf32, #tpu.memory_space<vmem>>, vector<48x384xf32>
    %cst_184 = arith.constant dense<0.000000e+00> : vector<8x384xf32>
    %543 = tpu.matmul %541, %542, %cst_184 {dimension_numbers = #tpu.dot_dimension_numbers<[1], [0], [0], [1], [0, 0, 1, 1], [], []>} : vector<8x48xf32>, vector<48x384xf32>, vector<8x384xf32> -> vector<8x384xf32>
    %c224_185 = arith.constant 224 : index
    %c0_186 = arith.constant 0 : index
    %544 = vector.load %arg1[%c224_185, %c0_186] : memref<296x768xf32, #tpu.memory_space<vmem>>, vector<1x384xf32>
    %545 = vector.broadcast %544 : vector<1x384xf32> to vector<8x384xf32>
    %546 = arith.addf %543, %545 : vector<8x384xf32>
    %547 = vector.extract_strided_slice %546 {offsets = [0, 0], sizes = [8, 128], strides = [1, 1]} : vector<8x384xf32> to vector<8x128xf32>
    %548 = math.tanh %547 : vector<8x128xf32>
    %549 = vector.extract_strided_slice %546 {offsets = [0, 128], sizes = [8, 256], strides = [1, 1]} : vector<8x384xf32> to vector<8x256xf32>
    %550 = arith.negf %549 : vector<8x256xf32>
    %551 = math.exp %550 : vector<8x256xf32>
    %cst_187 = arith.constant 1.000000e+00 : f32
    %552 = vector.broadcast %cst_187 : f32 to vector<8x256xf32>
    %553 = arith.addf %552, %551 : vector<8x256xf32>
    %554 = arith.divf %552, %553 : vector<8x256xf32>
    %555 = vector.extract_strided_slice %554 {offsets = [0, 0], sizes = [8, 128], strides = [1, 1]} : vector<8x256xf32> to vector<8x128xf32>
    %556 = arith.mulf %555, %467 : vector<8x128xf32>
    %557 = vector.extract_strided_slice %554 {offsets = [0, 128], sizes = [8, 128], strides = [1, 1]} : vector<8x256xf32> to vector<8x128xf32>
    %558 = arith.mulf %557, %548 : vector<8x128xf32>
    %559 = arith.addf %556, %558 : vector<8x128xf32>
    %c6_i32 = arith.constant 6 : i32
    %c8_i32_188 = arith.constant 8 : i32
    %560 = arith.muli %c6_i32, %c8_i32_188 : i32
    %561 = tpu.assume_multiple %560, 8 : i32
    %562 = arith.index_cast %561 : i32 to index
    %c0_189 = arith.constant 0 : index
    %563 = vector.load %arg3[%562, %c0_189] : memref<64x512xf32, #tpu.memory_space<vmem>>, vector<8x512xf32>
    %564 = vector.extract_strided_slice %491 {offsets = [0, 0], sizes = [8, 24], strides = [1, 1]} : vector<8x128xf32> to vector<8x24xf32>
    %c16_190 = arith.constant 16 : index
    %c0_191 = arith.constant 0 : index
    %565 = vector.load %arg1[%c16_190, %c0_191] : memref<296x768xf32, #tpu.memory_space<vmem>>, vector<24x512xf32>
    %cst_192 = arith.constant dense<0.000000e+00> : vector<8x512xf32>
    %566 = tpu.matmul %564, %565, %cst_192 {dimension_numbers = #tpu.dot_dimension_numbers<[1], [0], [0], [1], [0, 0, 1, 1], [], []>} : vector<8x24xf32>, vector<24x512xf32>, vector<8x512xf32> -> vector<8x512xf32>
    %567 = arith.addf %563, %566 : vector<8x512xf32>
    %568 = vector.extract_strided_slice %567 {offsets = [0, 0], sizes = [8, 384], strides = [1, 1]} : vector<8x512xf32> to vector<8x384xf32>
    %569 = arith.negf %568 : vector<8x384xf32>
    %570 = math.exp %569 : vector<8x384xf32>
    %cst_193 = arith.constant 1.000000e+00 : f32
    %571 = vector.broadcast %cst_193 : f32 to vector<8x384xf32>
    %572 = arith.addf %571, %570 : vector<8x384xf32>
    %573 = arith.divf %571, %572 : vector<8x384xf32>
    %574 = vector.extract_strided_slice %567 {offsets = [0, 384], sizes = [8, 128], strides = [1, 1]} : vector<8x512xf32> to vector<8x128xf32>
    %575 = math.tanh %574 : vector<8x128xf32>
    %576 = vector.extract_strided_slice %573 {offsets = [0, 0], sizes = [8, 128], strides = [1, 1]} : vector<8x384xf32> to vector<8x128xf32>
    %577 = vector.extract_strided_slice %573 {offsets = [0, 128], sizes = [8, 128], strides = [1, 1]} : vector<8x384xf32> to vector<8x128xf32>
    %578 = vector.extract_strided_slice %573 {offsets = [0, 256], sizes = [8, 128], strides = [1, 1]} : vector<8x384xf32> to vector<8x128xf32>
    %579 = arith.mulf %577, %489 : vector<8x128xf32>
    %580 = arith.mulf %576, %575 : vector<8x128xf32>
    %581 = arith.addf %579, %580 : vector<8x128xf32>
    %582 = math.tanh %581 : vector<8x128xf32>
    %583 = arith.mulf %578, %582 : vector<8x128xf32>
    %584 = vector.extract_strided_slice %581 {offsets = [0, 0], sizes = [8, 24], strides = [1, 1]} : vector<8x128xf32> to vector<8x24xf32>
    %c48_194 = arith.constant 48 : index
    %c0_195 = arith.constant 0 : index
    %585 = vector.load %arg1[%c48_194, %c0_195] : memref<296x768xf32, #tpu.memory_space<vmem>>, vector<24x64xf32>
    %cst_196 = arith.constant dense<0.000000e+00> : vector<8x64xf32>
    %586 = tpu.matmul %584, %585, %cst_196 {dimension_numbers = #tpu.dot_dimension_numbers<[1], [0], [0], [1], [0, 0, 1, 1], [], []>} : vector<8x24xf32>, vector<24x64xf32>, vector<8x64xf32> -> vector<8x64xf32>
    %c72_197 = arith.constant 72 : index
    %c0_198 = arith.constant 0 : index
    %587 = vector.load %arg1[%c72_197, %c0_198] : memref<296x768xf32, #tpu.memory_space<vmem>>, vector<1x64xf32>
    %588 = vector.broadcast %587 : vector<1x64xf32> to vector<8x64xf32>
    %589 = arith.addf %586, %588 : vector<8x64xf32>
    %cst_199 = arith.constant 0.000000e+00 : f32
    %590 = vector.broadcast %cst_199 : f32 to vector<8x64xf32>
    %591 = arith.maximumf %589, %590 : vector<8x64xf32>
    %c80_200 = arith.constant 80 : index
    %c0_201 = arith.constant 0 : index
    %592 = vector.load %arg1[%c80_200, %c0_201] : memref<296x768xf32, #tpu.memory_space<vmem>>, vector<64x768xf32>
    %cst_202 = arith.constant dense<0.000000e+00> : vector<8x768xf32>
    %593 = tpu.matmul %591, %592, %cst_202 {dimension_numbers = #tpu.dot_dimension_numbers<[1], [0], [0], [1], [0, 0, 1, 1], [], []>} : vector<8x64xf32>, vector<64x768xf32>, vector<8x768xf32> -> vector<8x768xf32>
    %c144_203 = arith.constant 144 : index
    %c0_204 = arith.constant 0 : index
    %594 = vector.load %arg1[%c144_203, %c0_204] : memref<296x768xf32, #tpu.memory_space<vmem>>, vector<1x768xf32>
    %595 = vector.broadcast %594 : vector<1x768xf32> to vector<8x768xf32>
    %596 = arith.addf %593, %595 : vector<8x768xf32>
    %597 = vector.extract_strided_slice %596 {offsets = [0, 0], sizes = [8, 128], strides = [1, 1]} : vector<8x768xf32> to vector<8x128xf32>
    %598 = vector.extract_strided_slice %596 {offsets = [0, 128], sizes = [8, 128], strides = [1, 1]} : vector<8x768xf32> to vector<8x128xf32>
    %599 = vector.extract_strided_slice %596 {offsets = [0, 256], sizes = [8, 128], strides = [1, 1]} : vector<8x768xf32> to vector<8x128xf32>
    %600 = arith.maximumf %597, %598 : vector<8x128xf32>
    %601 = arith.maximumf %600, %599 : vector<8x128xf32>
    %602 = arith.subf %597, %601 : vector<8x128xf32>
    %603 = math.exp %602 : vector<8x128xf32>
    %604 = arith.subf %598, %601 : vector<8x128xf32>
    %605 = math.exp %604 : vector<8x128xf32>
    %606 = arith.subf %599, %601 : vector<8x128xf32>
    %607 = math.exp %606 : vector<8x128xf32>
    %608 = arith.addf %603, %605 : vector<8x128xf32>
    %609 = arith.addf %608, %607 : vector<8x128xf32>
    %610 = tpu.reciprocal %609 {approx = true} : vector<8x128xf32> -> vector<8x128xf32>
    %611 = arith.mulf %603, %610 : vector<8x128xf32>
    %612 = vector.extract_strided_slice %596 {offsets = [0, 384], sizes = [8, 128], strides = [1, 1]} : vector<8x768xf32> to vector<8x128xf32>
    %613 = arith.mulf %611, %612 : vector<8x128xf32>
    %614 = arith.mulf %605, %610 : vector<8x128xf32>
    %615 = vector.extract_strided_slice %596 {offsets = [0, 512], sizes = [8, 128], strides = [1, 1]} : vector<8x768xf32> to vector<8x128xf32>
    %616 = arith.mulf %614, %615 : vector<8x128xf32>
    %617 = arith.addf %613, %616 : vector<8x128xf32>
    %618 = arith.mulf %607, %610 : vector<8x128xf32>
    %619 = vector.extract_strided_slice %596 {offsets = [0, 640], sizes = [8, 128], strides = [1, 1]} : vector<8x768xf32> to vector<8x128xf32>
    %620 = arith.mulf %618, %619 : vector<8x128xf32>
    %621 = arith.addf %617, %620 : vector<8x128xf32>
    %622 = vector.extract_strided_slice %621 {offsets = [0, 0], sizes = [8, 8], strides = [1, 1]} : vector<8x128xf32> to vector<8x8xf32>
    %c152_205 = arith.constant 152 : index
    %c0_206 = arith.constant 0 : index
    %623 = vector.load %arg1[%c152_205, %c0_206] : memref<296x768xf32, #tpu.memory_space<vmem>>, vector<8x48xf32>
    %cst_207 = arith.constant dense<0.000000e+00> : vector<8x48xf32>
    %624 = tpu.matmul %622, %623, %cst_207 {dimension_numbers = #tpu.dot_dimension_numbers<[1], [0], [0], [1], [0, 0, 1, 1], [], []>} : vector<8x8xf32>, vector<8x48xf32>, vector<8x48xf32> -> vector<8x48xf32>
    %625 = vector.extract_strided_slice %559 {offsets = [0, 0], sizes = [8, 8], strides = [1, 1]} : vector<8x128xf32> to vector<8x8xf32>
    %c160_208 = arith.constant 160 : index
    %c0_209 = arith.constant 0 : index
    %626 = vector.load %arg1[%c160_208, %c0_209] : memref<296x768xf32, #tpu.memory_space<vmem>>, vector<8x48xf32>
    %cst_210 = arith.constant dense<0.000000e+00> : vector<8x48xf32>
    %627 = tpu.matmul %625, %626, %cst_210 {dimension_numbers = #tpu.dot_dimension_numbers<[1], [0], [0], [1], [0, 0, 1, 1], [], []>} : vector<8x8xf32>, vector<8x48xf32>, vector<8x48xf32> -> vector<8x48xf32>
    %628 = arith.addf %624, %627 : vector<8x48xf32>
    %c168_211 = arith.constant 168 : index
    %c0_212 = arith.constant 0 : index
    %629 = vector.load %arg1[%c168_211, %c0_212] : memref<296x768xf32, #tpu.memory_space<vmem>>, vector<1x48xf32>
    %630 = vector.broadcast %629 : vector<1x48xf32> to vector<8x48xf32>
    %631 = arith.addf %628, %630 : vector<8x48xf32>
    %cst_213 = arith.constant 0.000000e+00 : f32
    %632 = vector.broadcast %cst_213 : f32 to vector<8x48xf32>
    %633 = arith.maximumf %631, %632 : vector<8x48xf32>
    %c176_214 = arith.constant 176 : index
    %c0_215 = arith.constant 0 : index
    %634 = vector.load %arg1[%c176_214, %c0_215] : memref<296x768xf32, #tpu.memory_space<vmem>>, vector<48x384xf32>
    %cst_216 = arith.constant dense<0.000000e+00> : vector<8x384xf32>
    %635 = tpu.matmul %633, %634, %cst_216 {dimension_numbers = #tpu.dot_dimension_numbers<[1], [0], [0], [1], [0, 0, 1, 1], [], []>} : vector<8x48xf32>, vector<48x384xf32>, vector<8x384xf32> -> vector<8x384xf32>
    %c224_217 = arith.constant 224 : index
    %c0_218 = arith.constant 0 : index
    %636 = vector.load %arg1[%c224_217, %c0_218] : memref<296x768xf32, #tpu.memory_space<vmem>>, vector<1x384xf32>
    %637 = vector.broadcast %636 : vector<1x384xf32> to vector<8x384xf32>
    %638 = arith.addf %635, %637 : vector<8x384xf32>
    %639 = vector.extract_strided_slice %638 {offsets = [0, 0], sizes = [8, 128], strides = [1, 1]} : vector<8x384xf32> to vector<8x128xf32>
    %640 = math.tanh %639 : vector<8x128xf32>
    %641 = vector.extract_strided_slice %638 {offsets = [0, 128], sizes = [8, 256], strides = [1, 1]} : vector<8x384xf32> to vector<8x256xf32>
    %642 = arith.negf %641 : vector<8x256xf32>
    %643 = math.exp %642 : vector<8x256xf32>
    %cst_219 = arith.constant 1.000000e+00 : f32
    %644 = vector.broadcast %cst_219 : f32 to vector<8x256xf32>
    %645 = arith.addf %644, %643 : vector<8x256xf32>
    %646 = arith.divf %644, %645 : vector<8x256xf32>
    %647 = vector.extract_strided_slice %646 {offsets = [0, 0], sizes = [8, 128], strides = [1, 1]} : vector<8x256xf32> to vector<8x128xf32>
    %648 = arith.mulf %647, %559 : vector<8x128xf32>
    %649 = vector.extract_strided_slice %646 {offsets = [0, 128], sizes = [8, 128], strides = [1, 1]} : vector<8x256xf32> to vector<8x128xf32>
    %650 = arith.mulf %649, %640 : vector<8x128xf32>
    %651 = arith.addf %648, %650 : vector<8x128xf32>
    %c7_i32 = arith.constant 7 : i32
    %c8_i32_220 = arith.constant 8 : i32
    %652 = arith.muli %c7_i32, %c8_i32_220 : i32
    %653 = tpu.assume_multiple %652, 8 : i32
    %654 = arith.index_cast %653 : i32 to index
    %c0_221 = arith.constant 0 : index
    %655 = vector.load %arg3[%654, %c0_221] : memref<64x512xf32, #tpu.memory_space<vmem>>, vector<8x512xf32>
    %656 = vector.extract_strided_slice %583 {offsets = [0, 0], sizes = [8, 24], strides = [1, 1]} : vector<8x128xf32> to vector<8x24xf32>
    %c16_222 = arith.constant 16 : index
    %c0_223 = arith.constant 0 : index
    %657 = vector.load %arg1[%c16_222, %c0_223] : memref<296x768xf32, #tpu.memory_space<vmem>>, vector<24x512xf32>
    %cst_224 = arith.constant dense<0.000000e+00> : vector<8x512xf32>
    %658 = tpu.matmul %656, %657, %cst_224 {dimension_numbers = #tpu.dot_dimension_numbers<[1], [0], [0], [1], [0, 0, 1, 1], [], []>} : vector<8x24xf32>, vector<24x512xf32>, vector<8x512xf32> -> vector<8x512xf32>
    %659 = arith.addf %655, %658 : vector<8x512xf32>
    %660 = vector.extract_strided_slice %659 {offsets = [0, 0], sizes = [8, 384], strides = [1, 1]} : vector<8x512xf32> to vector<8x384xf32>
    %661 = arith.negf %660 : vector<8x384xf32>
    %662 = math.exp %661 : vector<8x384xf32>
    %cst_225 = arith.constant 1.000000e+00 : f32
    %663 = vector.broadcast %cst_225 : f32 to vector<8x384xf32>
    %664 = arith.addf %663, %662 : vector<8x384xf32>
    %665 = arith.divf %663, %664 : vector<8x384xf32>
    %666 = vector.extract_strided_slice %659 {offsets = [0, 384], sizes = [8, 128], strides = [1, 1]} : vector<8x512xf32> to vector<8x128xf32>
    %667 = math.tanh %666 : vector<8x128xf32>
    %668 = vector.extract_strided_slice %665 {offsets = [0, 0], sizes = [8, 128], strides = [1, 1]} : vector<8x384xf32> to vector<8x128xf32>
    %669 = vector.extract_strided_slice %665 {offsets = [0, 128], sizes = [8, 128], strides = [1, 1]} : vector<8x384xf32> to vector<8x128xf32>
    %670 = vector.extract_strided_slice %665 {offsets = [0, 256], sizes = [8, 128], strides = [1, 1]} : vector<8x384xf32> to vector<8x128xf32>
    %671 = arith.mulf %669, %581 : vector<8x128xf32>
    %672 = arith.mulf %668, %667 : vector<8x128xf32>
    %673 = arith.addf %671, %672 : vector<8x128xf32>
    %674 = math.tanh %673 : vector<8x128xf32>
    %675 = arith.mulf %670, %674 : vector<8x128xf32>
    %676 = vector.extract_strided_slice %673 {offsets = [0, 0], sizes = [8, 24], strides = [1, 1]} : vector<8x128xf32> to vector<8x24xf32>
    %c48_226 = arith.constant 48 : index
    %c0_227 = arith.constant 0 : index
    %677 = vector.load %arg1[%c48_226, %c0_227] : memref<296x768xf32, #tpu.memory_space<vmem>>, vector<24x64xf32>
    %cst_228 = arith.constant dense<0.000000e+00> : vector<8x64xf32>
    %678 = tpu.matmul %676, %677, %cst_228 {dimension_numbers = #tpu.dot_dimension_numbers<[1], [0], [0], [1], [0, 0, 1, 1], [], []>} : vector<8x24xf32>, vector<24x64xf32>, vector<8x64xf32> -> vector<8x64xf32>
    %c72_229 = arith.constant 72 : index
    %c0_230 = arith.constant 0 : index
    %679 = vector.load %arg1[%c72_229, %c0_230] : memref<296x768xf32, #tpu.memory_space<vmem>>, vector<1x64xf32>
    %680 = vector.broadcast %679 : vector<1x64xf32> to vector<8x64xf32>
    %681 = arith.addf %678, %680 : vector<8x64xf32>
    %cst_231 = arith.constant 0.000000e+00 : f32
    %682 = vector.broadcast %cst_231 : f32 to vector<8x64xf32>
    %683 = arith.maximumf %681, %682 : vector<8x64xf32>
    %c80_232 = arith.constant 80 : index
    %c0_233 = arith.constant 0 : index
    %684 = vector.load %arg1[%c80_232, %c0_233] : memref<296x768xf32, #tpu.memory_space<vmem>>, vector<64x768xf32>
    %cst_234 = arith.constant dense<0.000000e+00> : vector<8x768xf32>
    %685 = tpu.matmul %683, %684, %cst_234 {dimension_numbers = #tpu.dot_dimension_numbers<[1], [0], [0], [1], [0, 0, 1, 1], [], []>} : vector<8x64xf32>, vector<64x768xf32>, vector<8x768xf32> -> vector<8x768xf32>
    %c144_235 = arith.constant 144 : index
    %c0_236 = arith.constant 0 : index
    %686 = vector.load %arg1[%c144_235, %c0_236] : memref<296x768xf32, #tpu.memory_space<vmem>>, vector<1x768xf32>
    %687 = vector.broadcast %686 : vector<1x768xf32> to vector<8x768xf32>
    %688 = arith.addf %685, %687 : vector<8x768xf32>
    %689 = vector.extract_strided_slice %688 {offsets = [0, 0], sizes = [8, 128], strides = [1, 1]} : vector<8x768xf32> to vector<8x128xf32>
    %690 = vector.extract_strided_slice %688 {offsets = [0, 128], sizes = [8, 128], strides = [1, 1]} : vector<8x768xf32> to vector<8x128xf32>
    %691 = vector.extract_strided_slice %688 {offsets = [0, 256], sizes = [8, 128], strides = [1, 1]} : vector<8x768xf32> to vector<8x128xf32>
    %692 = arith.maximumf %689, %690 : vector<8x128xf32>
    %693 = arith.maximumf %692, %691 : vector<8x128xf32>
    %694 = arith.subf %689, %693 : vector<8x128xf32>
    %695 = math.exp %694 : vector<8x128xf32>
    %696 = arith.subf %690, %693 : vector<8x128xf32>
    %697 = math.exp %696 : vector<8x128xf32>
    %698 = arith.subf %691, %693 : vector<8x128xf32>
    %699 = math.exp %698 : vector<8x128xf32>
    %700 = arith.addf %695, %697 : vector<8x128xf32>
    %701 = arith.addf %700, %699 : vector<8x128xf32>
    %702 = tpu.reciprocal %701 {approx = true} : vector<8x128xf32> -> vector<8x128xf32>
    %703 = arith.mulf %695, %702 : vector<8x128xf32>
    %704 = vector.extract_strided_slice %688 {offsets = [0, 384], sizes = [8, 128], strides = [1, 1]} : vector<8x768xf32> to vector<8x128xf32>
    %705 = arith.mulf %703, %704 : vector<8x128xf32>
    %706 = arith.mulf %697, %702 : vector<8x128xf32>
    %707 = vector.extract_strided_slice %688 {offsets = [0, 512], sizes = [8, 128], strides = [1, 1]} : vector<8x768xf32> to vector<8x128xf32>
    %708 = arith.mulf %706, %707 : vector<8x128xf32>
    %709 = arith.addf %705, %708 : vector<8x128xf32>
    %710 = arith.mulf %699, %702 : vector<8x128xf32>
    %711 = vector.extract_strided_slice %688 {offsets = [0, 640], sizes = [8, 128], strides = [1, 1]} : vector<8x768xf32> to vector<8x128xf32>
    %712 = arith.mulf %710, %711 : vector<8x128xf32>
    %713 = arith.addf %709, %712 : vector<8x128xf32>
    %714 = vector.extract_strided_slice %713 {offsets = [0, 0], sizes = [8, 8], strides = [1, 1]} : vector<8x128xf32> to vector<8x8xf32>
    %c152_237 = arith.constant 152 : index
    %c0_238 = arith.constant 0 : index
    %715 = vector.load %arg1[%c152_237, %c0_238] : memref<296x768xf32, #tpu.memory_space<vmem>>, vector<8x48xf32>
    %cst_239 = arith.constant dense<0.000000e+00> : vector<8x48xf32>
    %716 = tpu.matmul %714, %715, %cst_239 {dimension_numbers = #tpu.dot_dimension_numbers<[1], [0], [0], [1], [0, 0, 1, 1], [], []>} : vector<8x8xf32>, vector<8x48xf32>, vector<8x48xf32> -> vector<8x48xf32>
    %717 = vector.extract_strided_slice %651 {offsets = [0, 0], sizes = [8, 8], strides = [1, 1]} : vector<8x128xf32> to vector<8x8xf32>
    %c160_240 = arith.constant 160 : index
    %c0_241 = arith.constant 0 : index
    %718 = vector.load %arg1[%c160_240, %c0_241] : memref<296x768xf32, #tpu.memory_space<vmem>>, vector<8x48xf32>
    %cst_242 = arith.constant dense<0.000000e+00> : vector<8x48xf32>
    %719 = tpu.matmul %717, %718, %cst_242 {dimension_numbers = #tpu.dot_dimension_numbers<[1], [0], [0], [1], [0, 0, 1, 1], [], []>} : vector<8x8xf32>, vector<8x48xf32>, vector<8x48xf32> -> vector<8x48xf32>
    %720 = arith.addf %716, %719 : vector<8x48xf32>
    %c168_243 = arith.constant 168 : index
    %c0_244 = arith.constant 0 : index
    %721 = vector.load %arg1[%c168_243, %c0_244] : memref<296x768xf32, #tpu.memory_space<vmem>>, vector<1x48xf32>
    %722 = vector.broadcast %721 : vector<1x48xf32> to vector<8x48xf32>
    %723 = arith.addf %720, %722 : vector<8x48xf32>
    %cst_245 = arith.constant 0.000000e+00 : f32
    %724 = vector.broadcast %cst_245 : f32 to vector<8x48xf32>
    %725 = arith.maximumf %723, %724 : vector<8x48xf32>
    %c176_246 = arith.constant 176 : index
    %c0_247 = arith.constant 0 : index
    %726 = vector.load %arg1[%c176_246, %c0_247] : memref<296x768xf32, #tpu.memory_space<vmem>>, vector<48x384xf32>
    %cst_248 = arith.constant dense<0.000000e+00> : vector<8x384xf32>
    %727 = tpu.matmul %725, %726, %cst_248 {dimension_numbers = #tpu.dot_dimension_numbers<[1], [0], [0], [1], [0, 0, 1, 1], [], []>} : vector<8x48xf32>, vector<48x384xf32>, vector<8x384xf32> -> vector<8x384xf32>
    %c224_249 = arith.constant 224 : index
    %c0_250 = arith.constant 0 : index
    %728 = vector.load %arg1[%c224_249, %c0_250] : memref<296x768xf32, #tpu.memory_space<vmem>>, vector<1x384xf32>
    %729 = vector.broadcast %728 : vector<1x384xf32> to vector<8x384xf32>
    %730 = arith.addf %727, %729 : vector<8x384xf32>
    %731 = vector.extract_strided_slice %730 {offsets = [0, 0], sizes = [8, 128], strides = [1, 1]} : vector<8x384xf32> to vector<8x128xf32>
    %732 = math.tanh %731 : vector<8x128xf32>
    %733 = vector.extract_strided_slice %730 {offsets = [0, 128], sizes = [8, 256], strides = [1, 1]} : vector<8x384xf32> to vector<8x256xf32>
    %734 = arith.negf %733 : vector<8x256xf32>
    %735 = math.exp %734 : vector<8x256xf32>
    %cst_251 = arith.constant 1.000000e+00 : f32
    %736 = vector.broadcast %cst_251 : f32 to vector<8x256xf32>
    %737 = arith.addf %736, %735 : vector<8x256xf32>
    %738 = arith.divf %736, %737 : vector<8x256xf32>
    %739 = vector.extract_strided_slice %738 {offsets = [0, 0], sizes = [8, 128], strides = [1, 1]} : vector<8x256xf32> to vector<8x128xf32>
    %740 = arith.mulf %739, %651 : vector<8x128xf32>
    %741 = vector.extract_strided_slice %738 {offsets = [0, 128], sizes = [8, 128], strides = [1, 1]} : vector<8x256xf32> to vector<8x128xf32>
    %742 = arith.mulf %741, %732 : vector<8x128xf32>
    %743 = arith.addf %740, %742 : vector<8x128xf32>
    %c8_i32_252 = arith.constant 8 : i32
    %744 = vector.extract_strided_slice %675 {offsets = [0, 0], sizes = [8, 24], strides = [1, 1]} : vector<8x128xf32> to vector<8x24xf32>
    %c232 = arith.constant 232 : index
    %c0_253 = arith.constant 0 : index
    %745 = vector.load %arg1[%c232, %c0_253] : memref<296x768xf32, #tpu.memory_space<vmem>>, vector<24x16xf32>
    %cst_254 = arith.constant dense<0.000000e+00> : vector<8x16xf32>
    %746 = tpu.matmul %744, %745, %cst_254 {dimension_numbers = #tpu.dot_dimension_numbers<[1], [0], [0], [1], [0, 0, 1, 1], [], []>} : vector<8x24xf32>, vector<24x16xf32>, vector<8x16xf32> -> vector<8x16xf32>
    %747 = vector.extract_strided_slice %743 {offsets = [0, 0], sizes = [8, 8], strides = [1, 1]} : vector<8x128xf32> to vector<8x8xf32>
    %c256 = arith.constant 256 : index
    %c0_255 = arith.constant 0 : index
    %748 = vector.load %arg1[%c256, %c0_255] : memref<296x768xf32, #tpu.memory_space<vmem>>, vector<8x16xf32>
    %cst_256 = arith.constant dense<0.000000e+00> : vector<8x16xf32>
    %749 = tpu.matmul %747, %748, %cst_256 {dimension_numbers = #tpu.dot_dimension_numbers<[1], [0], [0], [1], [0, 0, 1, 1], [], []>} : vector<8x8xf32>, vector<8x16xf32>, vector<8x16xf32> -> vector<8x16xf32>
    %750 = arith.addf %746, %749 : vector<8x16xf32>
    %c264 = arith.constant 264 : index
    %c0_257 = arith.constant 0 : index
    %751 = vector.load %arg1[%c264, %c0_257] : memref<296x768xf32, #tpu.memory_space<vmem>>, vector<1x16xf32>
    %752 = vector.broadcast %751 : vector<1x16xf32> to vector<8x16xf32>
    %753 = arith.addf %750, %752 : vector<8x16xf32>
    %cst_258 = arith.constant 0.000000e+00 : f32
    %754 = vector.broadcast %cst_258 : f32 to vector<8x16xf32>
    %755 = arith.maximumf %753, %754 : vector<8x16xf32>
    %c272 = arith.constant 272 : index
    %c0_259 = arith.constant 0 : index
    %756 = vector.load %arg1[%c272, %c0_259] : memref<296x768xf32, #tpu.memory_space<vmem>>, vector<16x1xf32>
    %cst_260 = arith.constant dense<0.000000e+00> : vector<8x1xf32>
    %757 = tpu.matmul %755, %756, %cst_260 {dimension_numbers = #tpu.dot_dimension_numbers<[1], [0], [0], [1], [0, 0, 1, 1], [], []>} : vector<8x16xf32>, vector<16x1xf32>, vector<8x1xf32> -> vector<8x1xf32>
    %c288 = arith.constant 288 : index
    %c0_261 = arith.constant 0 : index
    %758 = vector.load %arg1[%c288, %c0_261] : memref<296x768xf32, #tpu.memory_space<vmem>>, vector<1x1xf32>
    %759 = vector.broadcast %758 : vector<1x1xf32> to vector<8x1xf32>
    %760 = arith.addf %757, %759 : vector<8x1xf32>
    %c0_262 = arith.constant 0 : index
    %c0_263 = arith.constant 0 : index
    %761 = vector.load %arg2[%c0_262, %c0_263] : memref<8x1xf32, #tpu.memory_space<vmem>>, vector<8x1xf32>
    tpu.vector_store %arg2[%c0_262, %c0_263], %760 {strides = array<i32>} : memref<8x1xf32, #tpu.memory_space<vmem>>, vector<8x1xf32>,
    return
  }
}

</mosaic_0001>

<bundles_post_ra>
// kernel: tpu_custom_call.1
= control target key start
LH: loop header
LB: loop body
LE: loop exit
PB: predicated region body
PF: predicated region fallthrough
CT: control target
= control target key end

     0   :  { %7 = vsyncpa [#allocation4], 0  ;;  %s8727_s9 = smov [#allocation3]   ;;  %s9836_s0 = inlined_call_operand.vmem [shape: f32[64,16], index: 0, kind: input, shape index: {}]   ;;  %s9837_s1 = inlined_call_operand.hbm [shape: f32[296,768], index: 1, kind: input, shape index: {}]   ;;  %s9838_s2 = inlined_call_operand.vmem [shape: f32[8,1], index: 2, kind: output, shape index: {}]  }
   0x1   :  { %s15_s10 = sshll.u32 %s8727_s9, 4  ;;  %s8703_s13 = scalar_lea.hbm %s9837_s1, 28416  ;;  %s16_s10 = int_to_ptr.vmem [resolvable:$true] %s15_s10 }
   0x2   :  { %p8704_p0 = scmp.ne.s32.totalorder %s9837_s1, %s8703_s13  ;;  %p8707_p1 = scmp.lt.u32.totalorder %s8703_s13, %s9837_s1 }
   0x4   :  { %p8709_p2 = pnand %p8707_p1, %p8704_p0 }
   0x6   :  { %8712 = shalt.err (!%p8709_p2)
}
   0x7   :  { %s8713_s18 = scalar_lea.vmem %s16_s10, 28416  ;;  %p8718_p4 = scmp.lt.s32.totalorder %s16_s10, %s16_s10 }
   0x8   :  { %p8714_p3 = scmp.ne.s32.totalorder %s16_s10, %s8713_s18  ;;  %p8719_p5 = scmp.lt.s32.totalorder %s8713_s18, %s8713_s18 }
   0xa   :  { %p8720_p6 = por %p8719_p5, %p8718_p4 }
   0xc   :  { %p8721_p7 = pnand %p8720_p6, %p8714_p3 }
   0xe   :  { %8724 = shalt.err (!%p8721_p7)
}
   0xf   :  { %s8728_s19 = smov 768   ;;  %s8729_s20 = smov 48  }
  0x10   :  { %21 = dma.hbm_to_vmem [thread:$0]  %s9837_s1, 28416, %s16_s10, [#allocation4], %s8728_s19, %s8728_s19, %s8729_s20  }
  0x11   :  { %8725 = dma.done.wait [#allocation4], 28416  }
  0x12   :  { %8726 = vsyncadd [#allocation4], 4294938880  ;;  %v9839_v0 = vmov 0.0   ;;  %v34_v1 = vld [vmem:[#allocation3 + $0x8] sm:$0xff]  ;;  %v38_v2 = vld [vmem:[#allocation3 + $0x38] sm:$0xff]  ;;  %vm64_vm0 = vcmask 130048   ;;  %v44_v63 = vlaneseq }
  0x13   :  { %153 = vmatprep.mubr.f32.mxu0 %v9839_v0  ;;  %266 = vmatprep.mubr.f32.mxu1 %v9839_v0  ;;  %v36_v3 = vld [vmem:[#allocation3 + $0x18] sm:$0xff]  ;;  %v7689_v4 = vpack.c.bf16 %v38_v2, %v34_v1  ;;  %v40_v5 = vld [vmem:[#allocation3 + $0x48] sm:$0xff]  ;;  %v33_v6 = vld [vmem:[#allocation3] sm:$0xff]  ;;  %v9842_v40 = vmov 0.0|0.0   ;;  %vm8732_vm1 = vmmov 0   ;;  %vm366_vm2 = vcmask 195584  }
  0x14   :  { %v37_v7 = vld [vmem:[#allocation3 + $0x30] sm:$0xff]  ;;  %v7693_v8 = vpack.c.bf16 %v40_v5, %v36_v3  ;;  %v39_v11 = vld [vmem:[#allocation3 + $0x40] sm:$0xff]  ;;  %v355_v13 = vld [vmem:[#allocation3 + $0x68] sm:$0xff]  ;;  %v8876_v1 = vshrl.u32 %v44_v63, 7  ;;  %vm701_vm3 = vcmask 523264   ;;  %vm942_vm4 = vcmask 64512  }
  0x15   :  { %v7691_v9 = vpack.c.bf16 %v37_v7, %v33_v6  ;;  %v35_v10 = vld [vmem:[#allocation3 + $0x10] sm:$0xff]  ;;  %7690 = vmatprep.subr.bf16.mxu0 %v7689_v4  ;;  %v359_v14 = vld [vmem:[#allocation3 + $0x98] sm:$0xff]  ;;  %v354_v15 = vld [vmem:[#allocation3 + $0x60] sm:$0xff]  ;;  %vm1127_vm5 = vcmask 392192   ;;  %vm7117_vm6 = vcmask 7168  }
  0x16   :  { %v7695_v12 = vpack.c.bf16 %v39_v11, %v35_v10  ;;  %7694 = vmatprep.subr.bf16.mxu1 %v7693_v8  ;;  %v25_v16 = vld [vmem:[%s9836_s0] sm:$0xff]  ;;  %v8765_v17 = vpack.c.bf16 %v359_v14, %v355_v13  ;;  %v358_v18 = vld [vmem:[#allocation3 + $0x90] sm:$0xff]  ;;  %v357_v20 = vld [vmem:[#allocation3 + $0x78] sm:$0xff]  ;;  %v8879_v2 = vsub.s32 0, %v8876_v1  ;;  %v8884_v4 = vsub.s32 1, %v8876_v1 }
  0x17   :  { %7692 = vmatpush1.bf16.msra.mxu0 %v7691_v9  ;;  %v8767_v19 = vpack.c.bf16 %v358_v18, %v354_v15  ;;  %v361_v21 = vld [vmem:[#allocation3 + $0xa8] sm:$0xff]  ;;  %v356_v23 = vld [vmem:[#allocation3 + $0x70] sm:$0xff]  ;;  %v360_v25 = vld [vmem:[#allocation3 + $0xa0] sm:$0xff]  ;;  %v9841_v15 = vsub.s32 3, %v8876_v1 }
  0x18   :  { %9906 = vst [vmem:[#allocation6_spill] sm:$0xff] %v8765_v17  ;;  %7696 = vmatpush1.bf16.msra.mxu1 %v7695_v12  ;;  %7698 = vmatprep.subr.bf16.mxu0 %v8765_v17  ;;  %v8770_v22 = vpack.c.bf16 %v361_v21, %v357_v20  ;;  %v8773_v24 = vld [vmem:[#allocation3 + $0xc8] sm:$0xff]  ;;  %v8780_v27 = vpack.c.bf16 %v360_v25, %v356_v23  ;;  %v8786_v28 = vld [vmem:[#allocation3 + $0xc0] sm:$0xff]  ;;  %v8790_v29 = vld [vmem:[#allocation3 + $0xd8] sm:$0xff] }
  0x19   :  { %v26_v26 = vld [vmem:[%s9836_s0 + $0x8] sm:$0xff]  ;;  %v27_v30 = vld [vmem:[%s9836_s0 + $0x10] sm:$0xff]  ;;  %v28_v32 = vld [vmem:[%s9836_s0 + $0x18] sm:$0xff] }
  0x1a   :  { %9907 = vst [vmem:[#allocation7_spill] sm:$0xff] %v8770_v22  ;;  %7131 = vmatmul.mubr.msk.f32.vlgmr.msra.gmra.mrb[0].mxu0 %vm64_vm0, %v25_v16  ;;  %7702 = vmatprep.subr.bf16.mxu1 %v8770_v22  ;;  %v8797_v31 = vld [vmem:[#allocation3 + $0xd0] sm:$0xff]  ;;  %v29_v33 = vld [vmem:[%s9836_s0 + $0x20] sm:$0xff]  ;;  %v30_v34 = vld [vmem:[%s9836_s0 + $0x28] sm:$0xff] }
  0x1b   :  { %7139 = vmatmul.mubr.msk.f32.vlgmr.msra.gmra.mrb[0].mxu1 %vm64_vm0, %v25_v16  ;;  %7700 = vmatpush1.bf16.msra.mxu0 %v8767_v19  ;;  %v31_v35 = vld [vmem:[%s9836_s0 + $0x30] sm:$0xff]  ;;  %v32_v36 = vld [vmem:[%s9836_s0 + $0x38] sm:$0xff]  ;;  %v540_v37 = vld [vmem:[#allocation3 + $0x120] sm:$0xff] }
  0x1c   :  { %159 = vmatprep.mubr.f32.mxu0 %v9839_v0  ;;  %272 = vmatprep.mubr.f32.mxu1 %v9839_v0  ;;  %v541_v38 = vld [vmem:[#allocation3 + $0x150] sm:$0xff]  ;;  %v8852_v41 = vld [vmem:[#allocation3 + $0x180] sm:$0xff]  ;;  %v619_v42 = vld [vmem:[#allocation3 + $0x1e8] sm:$0xff] }
  0x1d   :  { %374 = vmatprep.subr.mxu0 %v8773_v24  ;;  %7704 = vmatpush1.bf16.msra.mxu1 %v8780_v27  ;;  %v8845_v39 = vpack.c.bf16 %v541_v38, %v540_v37  ;;  %v625_v43 = vld [vmem:[#allocation3 + $0x218] sm:$0xff]  ;;  %v618_v44 = vld [vmem:[#allocation3 + $0x1e0] sm:$0xff]  ;;  %v624_v46 = vld [vmem:[#allocation3 + $0x210] sm:$0xff] }
  0x1e   :  { %7132 = vmatmul.mubr.msk.f32.gmra.mrb[2].mxu0 %vm64_vm0, %v26_v26  ;;  %445 = vmatprep.subr.mxu1 %v8790_v29  ;;  %v8854_v45 = vpack.c.bf16 %v625_v43, %v619_v42  ;;  %v621_v47 = vld [vmem:[#allocation3 + $0x1f8] sm:$0xff]  ;;  %v627_v48 = vld [vmem:[#allocation3 + $0x228] sm:$0xff]  ;;  %v8857_v49 = vpack.c.bf16 %v624_v46, %v618_v44  ;;  %v630_v53 = vld [vmem:[#allocation3 + $0x240] sm:$0xff] }
  0x1f   :  { %7140 = vmatmul.mubr.msk.f32.gmra.mrb[2].mxu1 %vm64_vm0, %v26_v26  ;;  %165 = vmatprep.mubr.f32.mxu0 %v9839_v0  ;;  %v8859_v50 = vpack.c.bf16 %v627_v48, %v621_v47  ;;  %v631_v51 = vld [vmem:[#allocation3 + $0x248] sm:$0xff]  ;;  %v637_v52 = vld [vmem:[#allocation3 + $0x278] sm:$0xff]  ;;  %v636_v54 = vld [vmem:[#allocation3 + $0x270] sm:$0xff] }
  0x20   :  { %278 = vmatprep.mubr.f32.mxu1 %v9839_v0  ;;  %375 = vmatpush1.msra.mxu0 %v8786_v28  ;;  %v8864_v55 = vpack.c.bf16 %v637_v52, %v631_v51  ;;  %v8866_v56 = vpack.c.bf16 %v636_v54, %v630_v53  ;;  %v643_v57 = vld [vmem:[#allocation3 + $0x2a8] sm:$0xff]  ;;  %v649_v58 = vld [vmem:[#allocation3 + $0x2d8] sm:$0xff]  ;;  %v642_v60 = vld [vmem:[#allocation3 + $0x2a0] sm:$0xff] }
  0x21   :  { %446 = vmatpush1.msra.mxu1 %v8797_v31  ;;  %7705 = vmatprep.subr.bf16.mxu0 %v9842_v40  ;;  %v8869_v59 = vpack.c.bf16 %v649_v58, %v643_v57  ;;  %v648_v61 = vld [vmem:[#allocation3 + $0x2d0] sm:$0xff]  ;;  %v639_v37 = vld [vmem:[#allocation3 + $0x288] sm:$0xff]  ;;  %v638_v47 = vld [vmem:[#allocation3 + $0x280] sm:$0xff] }
  0x22   :  { %7133 = vmatmul.mubr.msk.f32.gmra.mrb[4].mxu0 %vm64_vm0, %v27_v30  ;;  %7709 = vmatprep.subr.bf16.mxu1 %v8854_v45  ;;  %v8872_v62 = vpack.c.bf16 %v648_v61, %v642_v60  ;;  %v8881_v3 = vld [vmem:[#allocation3 + $0xf0] ss:$8 sm:$0xf] }
  0x23   :  { %7141 = vmatmul.mubr.msk.f32.gmra.mrb[4].mxu1 %vm64_vm0, %v27_v30  ;;  %171 = vmatprep.mubr.f32.mxu0 %v9839_v0  ;;  %v8888_v5 = vrot.slane %v8881_v3, %v8879_v2  ;;  %v8892_v6 = vrot.slane %v8881_v3, %v8884_v4  ;;  %v8902_v16 = vrot.slane %v8881_v3, %v9841_v15  ;;  %v632_v46 = vld [vmem:[#allocation3 + $0x250] sm:$0xff]  ;;  %v645_v48 = vld [vmem:[#allocation3 + $0x2b8] sm:$0xff]  ;;  %v651_v51 = vld [vmem:[#allocation3 + $0x2e8] sm:$0xff] }
  0x24   :  { %284 = vmatprep.mubr.f32.mxu1 %v9839_v0  ;;  %v8914_v52 = vpack.c.bf16 %v638_v47, %v632_v46  ;;  %v8918_v53 = vpack.c.bf16 %v651_v51, %v645_v48  ;;  %v644_v54 = vld [vmem:[#allocation3 + $0x2b0] sm:$0xff]  ;;  %v650_v57 = vld [vmem:[#allocation3 + $0x2e0] sm:$0xff]  ;;  %v655_v60 = vld [vmem:[#allocation3 + $0x308] sm:$0xff] }
  0x25   :  { %v8921_v58 = vpack.c.bf16 %v650_v57, %v644_v54  ;;  %v661_v61 = vld [vmem:[#allocation3 + $0x338] sm:$0xff]  ;;  %v634_v48 = vld [vmem:[#allocation3 + $0x260] sm:$0xff]  ;;  %v640_v51 = vld [vmem:[#allocation3 + $0x290] sm:$0xff] }
  0x26   :  { %7134 = vmatmul.mubr.msk.f32.gmra.mrb[6].mxu0 %vm64_vm0, %v28_v32  ;;  %v8925_v63 = vpack.c.bf16 %v661_v61, %v655_v60  ;;  %v647_v54 = vld [vmem:[#allocation3 + $0x2c8] sm:$0xff]  ;;  %v653_v57 = vld [vmem:[#allocation3 + $0x2f8] sm:$0xff]  ;;  %v8951_v60 = vpack.c.bf16 %v640_v51, %v634_v48  ;;  %v1102_v15 = vld [vmem:[#allocation3 + $0x4c0] sm:$0xff] }
  0x27   :  { %7142 = vmatmul.mubr.msk.f32.gmra.mrb[6].mxu1 %vm64_vm0, %v28_v32  ;;  %177 = vmatprep.mubr.f32.mxu0 %v9839_v0  ;;  %9908 = vst [vmem:[#allocation8_spill] sm:$0xff] %v8921_v58  ;;  %v8955_v61 = vpack.c.bf16 %v653_v57, %v647_v54  ;;  %v8991_v54 = vsub.s32 2, %v8876_v1 }
  0x28   :  { %290 = vmatprep.mubr.f32.mxu1 %v9839_v0  ;;  %9909 = vst [vmem:[#allocation9_spill] sm:$0xff] %v8925_v63  ;;  %9917 = vst [vmem:[#allocation17_spill] sm:$0xff] %v8951_v60 }
  0x29   :  { %9918 = vst [vmem:[#allocation18_spill] sm:$0xff] %v8955_v61 }
  0x2a   :  { %7135 = vmatmul.mubr.msk.f32.gmra.mrb[8].mxu0 %vm64_vm0, %v29_v33 }
  0x2b   :  { %7143 = vmatmul.mubr.msk.f32.gmra.mrb[8].mxu1 %vm64_vm0, %v29_v33  ;;  %183 = vmatprep.mubr.f32.mxu0 %v9839_v0  ;;  %v620_v33 = vld [vmem:[#allocation3 + $0x1f0] sm:$0xff] }
  0x2c   :  { %296 = vmatprep.mubr.f32.mxu1 %v9839_v0 }
  0x2e   :  { %7136 = vmatmul.mubr.msk.f32.gmra.mrb[10].mxu0 %vm64_vm0, %v30_v34 }
  0x2f   :  { %7144 = vmatmul.mubr.msk.f32.gmra.mrb[10].mxu1 %vm64_vm0, %v30_v34  ;;  %189 = vmatprep.mubr.f32.mxu0 %v9839_v0  ;;  %v626_v34 = vld [vmem:[#allocation3 + $0x220] sm:$0xff] }
  0x30   :  { %302 = vmatprep.mubr.f32.mxu1 %v9839_v0  ;;  %v8905_v42 = vpack.c.bf16 %v626_v34, %v620_v33  ;;  %v635_v34 = vld [vmem:[#allocation3 + $0x268] sm:$0xff] }
  0x32   :  { %7137 = vmatmul.mubr.msk.f32.gmra.mrb[12].mxu0 %vm64_vm0, %v31_v35 }
  0x33   :  { %7145 = vmatmul.mubr.msk.f32.gmra.mrb[12].mxu1 %vm64_vm0, %v31_v35  ;;  %195 = vmatprep.mubr.f32.mxu0 %v9839_v0 }
  0x34   :  { %308 = vmatprep.mubr.f32.mxu1 %v9839_v0 }
  0x36   :  { %7138 = vmatmul.mubr.msk.f32.gmra.mrb[14].mxu0 %vm64_vm0, %v32_v36 }
  0x37   :  { %7146 = vmatmul.mubr.msk.f32.gmra.mrb[14].mxu1 %vm64_vm0, %v32_v36  ;;  %434 = vmatprep.mubr.f32.mxu0 %v9839_v0  ;;  %v633_v36 = vld [vmem:[#allocation3 + $0x258] sm:$0xff] }
  0x38   :  { %505 = vmatprep.mubr.f32.mxu1 %v9839_v0  ;;  %v8909_v44 = vpack.c.bf16 %v639_v37, %v633_v36 }
  0x3a   :  { %435 = vmatmul.mubr.f32.vlgmr.msra.gmra.mrb[0].mxu0 %v9839_v0 }
  0x3b   :  { %506 = vmatmul.mubr.f32.vlgmr.msra.gmra.mrb[0].mxu1 %v9839_v0  ;;  %7402 = vmatprep.mubr.msk.f32.mxu0 %vm8732_vm1, %v9839_v0 }
  0x3c   :  { %769 = vmatprep.mubr.f32.mxu1 %v9839_v0  ;;  %7707 = vmatpush3.bf16.msra.mxu0 %v8845_v39 }
  0x3d   :  { %7400 = vmatprep.subr.mxu0 %v9839_v0  ;;  %7711 = vmatpush1.bf16.msra.mxu1 %v8857_v49 }
  0x3e   :  { %7713 = vmatprep.subr.bf16.mxu1 %v8864_v55 }
  0x40   :  { %7401 = vmatpush3.msra.mxu0 %v8852_v41 }
  0x41   :  { %7725 = vmatprep.subr.bf16.mxu0 %v8859_v50  ;;  %7715 = vmatpush1.bf16.msra.mxu1 %v8866_v56 }
  0x42   :  { %7717 = vmatprep.subr.bf16.mxu1 %v8869_v59 }
  0x45   :  { %7719 = vmatpush1.bf16.msra.mxu1 %v8872_v62 }
  0x46   :  { %7721 = vmatprep.subr.bf16.mxu1 %v8925_v63 }
 0x10d   :  { %v436_v7 = vpop.f32.mrb[0].mxu0 }
 0x10e   :  { %v8343_v8 = vadd.f32 %v436_v7, %v8888_v5  ;;  %v8895_v9 = vpop.f32.mrb[0].mxu1  ;;  %v438_v10 = vpop.f32.mrb[1].mxu0  ;;  %v654_v7 = vld [vmem:[#allocation3 + $0x300] sm:$0xff] }
 0x10f   :  { %v8344_v11 = vadd.f32 %v438_v10, %v8892_v6  ;;  %v509_v12 = vpop.f32.mrb[1].mxu1  ;;  %v657_v10 = vld [vmem:[#allocation3 + $0x318] sm:$0xff] }
 0x110   :  { %v7147_v13 = vmul.f32 -1.442695, %v8343_v8  ;;  %v8360_v18 = vadd.f32 %v509_v12, %v8902_v16  ;;  %v660_v8 = vld [vmem:[#allocation3 + $0x330] sm:$0xff]  ;;  %v663_v12 = vld [vmem:[#allocation3 + $0x348] sm:$0xff] }
 0x111   :  { %v7148_v14 = vmul.f32 -1.442695, %v8344_v11  ;;  %v8927_v11 = vpack.c.bf16 %v660_v8, %v654_v7  ;;  %v646_v7 = vld [vmem:[#allocation3 + $0x2c0] sm:$0xff]  ;;  %v652_v8 = vld [vmem:[#allocation3 + $0x2f0] sm:$0xff] }
 0x112   :  { %8413 = vpow2.f32 %v7147_v13  ;;  %v656_v13 = vld [vmem:[#allocation3 + $0x310] sm:$0xff] }
 0x113   :  { %8415 = vpow2.f32 %v7148_v14  ;;  %9910 = vst [vmem:[#allocation10_spill] sm:$0xff] %v8927_v11  ;;  %v662_v14 = vld [vmem:[#allocation3 + $0x340] sm:$0xff]  ;;  %7723 = vmatpush1.bf16.msra.mxu1 %v8927_v11 }
 0x114   :  { %8417 = vtanh.f32 %v8360_v18  ;;  %v8930_v18 = vpack.c.bf16 %v663_v12, %v657_v10  ;;  %v659_v10 = vld [vmem:[#allocation3 + $0x328] sm:$0xff]  ;;  %v665_v12 = vld [vmem:[#allocation3 + $0x358] sm:$0xff] }
 0x116   :  { %9911 = vst [vmem:[#allocation11_spill] sm:$0xff] %v8930_v18 }
 0x11c   :  { %v8414_v20 = vpop.eup %8413 }
 0x11d   :  { %v525_v21 = vadd.f32 1.0, %v8414_v20  ;;  %v8416_v23 = vpop.eup %8415  ;;  %v8932_v20 = vpack.c.bf16 %v662_v14, %v656_v13  ;;  %v8960_v13 = vpack.c.bf16 %v652_v8, %v646_v7  ;;  %v8963_v14 = vpack.c.bf16 %v665_v12, %v659_v10  ;;  %v1093_v7 = vld [vmem:[#allocation3 + $0x430] sm:$0xff] }
 0x11e   :  { %v526_v25 = vadd.f32 1.0, %v8416_v23  ;;  %v8418_v26 = vpop.eup %8417  ;;  %v629_v23 = vld [vmem:[#allocation3 + $0x238] sm:$0xff] }
 0x11f   :  { %8419 = vrcp.f32 %v525_v21  ;;  %9912 = vst [vmem:[#allocation12_spill] sm:$0xff] %v8932_v20  ;;  %v623_v21 = vld [vmem:[#allocation3 + $0x208] sm:$0xff]  ;;  %9919 = vst [vmem:[#allocation19_spill] sm:$0xff] %v8960_v13 }
 0x120   :  { %8421 = vrcp.f32 %v526_v25  ;;  %v8935_v25 = vpack.c.bf16 %v629_v23, %v623_v21  ;;  %9920 = vst [vmem:[#allocation20_spill] sm:$0xff] %v8963_v14  ;;  %v658_v21 = vld [vmem:[#allocation3 + $0x320] sm:$0xff]  ;;  %v664_v23 = vld [vmem:[#allocation3 + $0x350] sm:$0xff] }
 0x122   :  { %9913 = vst [vmem:[#allocation13_spill] sm:$0xff] %v8935_v25  ;;  %7741 = vmatprep.subr.bf16.mxu1 %v8935_v25 }
 0x129   :  { %v8420_v30 = vpop.eup %8419 }
 0x12a   :  { %v536_v32 = vmul.f32 %v8420_v30, %v8418_v26  ;;  %v8422_v35 = vpop.eup %8421  ;;  %v8941_v26 = vld [vmem:[#allocation3 + $0x1b0] ss:$0 sm:$0xff]  ;;  %v622_v30 = vld [vmem:[#allocation3 + $0x200] sm:$0xff] }
 0x12b   :  { %v535_v38 = vmul.f32 0.0, %v8422_v35  ;;  %9914 = vst [vmem:[#allocation14_spill] sm:$0xff] %v8941_v26  ;;  %v641_v35 = vld [vmem:[#allocation3 + $0x298] sm:$0xff] }
 0x12c   :  { %v8946_v47 = vpack.c.bf16 %v641_v35, %v635_v34  ;;  %v1092_v34 = vld [vmem:[#allocation3 + $0x428] sm:$0xff]  ;;  %v1095_v35 = vld [vmem:[#allocation3 + $0x458] sm:$0xff] }
 0x12d   :  { %v8907_v43 = vadd.f32 %v536_v32, %v535_v38  ;;  %v628_v32 = vld [vmem:[#allocation3 + $0x230] sm:$0xff] }
 0x12e   :  { %v8944_v38 = vpack.c.bf16 %v628_v32, %v622_v30  ;;  %9916 = vst [vmem:[#allocation16_spill] sm:$0xff] %v8946_v47  ;;  %v8966_v30 = vpack.c.bf16 %v664_v23, %v658_v21  ;;  %v8974_v32 = vld [vmem:[#allocation3 + $0x3c0] sm:$0xff] }
 0x12f   :  { %7403 = vmatmul.mubr.msk.f32.vlgmr.msra.gmra.mrb[16].mxu0 %vm366_vm2, %v8907_v43  ;;  %9922 = vst [vmem:[#allocation22_spill] sm:$0xff] %v8974_v32  ;;  %v1096_v21 = vld [vmem:[#allocation3 + $0x460] sm:$0xff] }
 0x130   :  { %7727 = vmatpush1.bf16.msra.mxu0 %v8905_v42  ;;  %840 = vmatprep.mubr.f32.mxu0 %v9839_v0  ;;  %9915 = vst [vmem:[#allocation15_spill] sm:$0xff] %v8944_v38  ;;  %9921 = vst [vmem:[#allocation21_spill] sm:$0xff] %v8966_v30 }
 0x131   :  { %7729 = vmatprep.subr.bf16.mxu0 %v8909_v44 }
 0x134   :  { %7731 = vmatpush1.bf16.msra.mxu0 %v8914_v52 }
 0x135   :  { %7733 = vmatprep.subr.bf16.mxu0 %v8918_v53 }
 0x138   :  { %7735 = vmatpush1.bf16.msra.mxu0 %v8921_v58 }
 0x139   :  { %7737 = vmatprep.subr.bf16.mxu0 %v8930_v18 }
 0x13c   :  { %7739 = vmatpush1.bf16.msra.mxu0 %v8932_v20 }
 0x13d   :  { %7405 = vmatprep.subr.mxu0 %v9839_v0 }
 0x202   :  { %v613_v33 = vpop.f32.mrb[16].mxu0 }
 0x203   :  { %v614_v36 = vadd.f32 %v613_v33, %v8941_v26  ;;  %v7404_v37 = vpop.f32.mrb[17].mxu0  ;;  %v8979_v33 = vld [vmem:[#allocation3 + $0x390] sm:$0xff] }
 0x204   :  { %9923 = vst [vmem:[#allocation23_spill] sm:$0xff] %v8979_v33  ;;  %v667_v37 = vld [vmem:[#allocation3 + $0x360] ss:$8 sm:$0xf] }
 0x205   :  { %v617_v46 = vmax.f32 %v614_v36, 0.0  ;;  %v8984_v36 = vpack.c.bf16 %v1095_v35, %v1092_v34 }
 0x207   :  { %7151 = vmatmul.mubr.msk.f32.vlgmr.msra.gmra.mrb[16].mxu1 %vm701_vm3, %v617_v46  ;;  %7152 = vmatmul.mubr.msk.f32.vlgmr.msra.gmra.mrb[18].mxu0 %vm701_vm3, %v617_v46  ;;  %9924 = vst [vmem:[#allocation24_spill] sm:$0xff] %v8984_v36 }
 0x208   :  { %7743 = vmatpush1.bf16.msra.mxu1 %v8944_v38  ;;  %911 = vmatprep.mubr.f32.mxu1 %v9839_v0 }
 0x209   :  { %7745 = vmatprep.subr.bf16.mxu1 %v8946_v47  ;;  %7407 = vmatprep.mubr.msk.f32.mxu0 %vm8732_vm1, %v9839_v0 }
 0x20a   :  { %7406 = vmatpush3.msra.mxu0 %v8974_v32  ;;  %v1098_v32 = vld [vmem:[#allocation3 + $0x488] sm:$0xff] }
 0x20b   :  { %7408 = vmatmul.mubr.f32.vlgmr.msra.gmra.mrb[20].mxu0 %v9839_v0  ;;  %7410 = vmatprep.subr.mxu0 %v9839_v0 }
 0x20c   :  { %7747 = vmatpush1.bf16.msra.mxu1 %v8951_v60  ;;  %7412 = vmatprep.mubr.msk.f32.mxu0 %vm8732_vm1, %v9839_v0 }
 0x20d   :  { %7749 = vmatprep.subr.bf16.mxu1 %v8955_v61  ;;  %7411 = vmatpush3.msra.mxu0 %v8979_v33 }
 0x20e   :  { %7757 = vmatprep.subr.bf16.mxu0 %v8984_v36 }
 0x210   :  { %7751 = vmatpush1.bf16.msra.mxu1 %v8960_v13  ;;  %v9930_v13 = vmov 0.0|0.0  }
 0x211   :  { %7753 = vmatprep.subr.bf16.mxu1 %v8963_v14 }
 0x214   :  { %7755 = vmatpush1.bf16.msra.mxu1 %v8966_v30 }
 0x215   :  { %7768 = vmatprep.subr.bf16.mxu1 %v9842_v40 }
 0x217   :  { %7153 = vmatmul.mubr.msk.f32.vlgmr.msra.gmra.mrb[18].mxu1 %vm701_vm3, %v617_v46  ;;  %v668_v46 = vld [vmem:[#allocation3 + $0x360] ss:$8 sm:$0x30] }
 0x218   :  { %7427 = vmatprep.mubr.msk.f32.mxu1 %vm8732_vm1, %v9839_v0  ;;  %v669_v48 = vor.u32 %v668_v46, %v667_v37  ;;  %v9000_v37 = vpack.c.bf16 %v1096_v21, %v1093_v7  ;;  %v1099_v46 = vld [vmem:[#allocation3 + $0x490] sm:$0xff] }
 0x219   :  { %v9004_v40 = vpack.c.bf16 %v1102_v15, %v1099_v46 }
 0x21a   :  { %v8988_v51 = vrot.slane %v669_v48, %v8879_v2  ;;  %v8994_v57 = vrot.slane %v669_v48, %v8884_v4  ;;  %v8997_v10 = vrot.slane %v669_v48, %v8991_v54  ;;  %9928 = vst [vmem:[#allocation28_spill] sm:$0xff] %v9000_v37  ;;  %7770 = vmatpush3.bf16.msra.mxu1 %v9000_v37 }
 0x21b   :  { %9929 = vst [vmem:[#allocation29_spill] sm:$0xff] %v9004_v40  ;;  %7771 = vmatprep.subr.bf16.mxu1 %v9930_v13 }
 0x21c   :  { %9925 = vst [vmem:[#allocation25_spill] sm:$0xff] %v8988_v51  ;;  %9926 = vst [vmem:[#allocation26_spill] sm:$0xff] %v8994_v57 }
 0x21d   :  { %9927 = vst [vmem:[#allocation27_spill] sm:$0xff] %v8997_v10 }
 0x21e   :  { %7773 = vmatpush3.bf16.msra.mxu1 %v9004_v40 }
 0x21f   :  { %7774 = vmatprep.subr.bf16.mxu1 %v9930_v13 }
 0x2da   :  { %v771_v8 = vpop.f32.mrb[16].mxu1  ;;  %v842_v12 = vpop.f32.mrb[18].mxu0 }
 0x2db   :  { %v772_v23 = vadd.f32 %v771_v8, %v8988_v51  ;;  %v773_v34 = vpop.f32.mrb[17].mxu1  ;;  %v844_v35 = vpop.f32.mrb[19].mxu0  ;;  %v843_v30 = vadd.f32 %v842_v12, %v8997_v10 }
 0x2dc   :  { %v774_v0 = vadd.f32 %v773_v34, %v8994_v57 }
 0x2de   :  { %v918_v14 = vmax.f32 %v772_v23, %v774_v0 }
 0x2e0   :  { %v919_v36 = vmax.f32 %v918_v14, %v843_v30 }
 0x2e2   :  { %v920_v8 = vsub.f32 %v772_v23, %v919_v36  ;;  %v923_v51 = vsub.f32 %v774_v0, %v919_v36  ;;  %v926_v7 = vsub.f32 %v843_v30, %v919_v36  ;;  %v689_v23 = vsub.s32 4, %v8876_v1 }
 0x2e3   :  { %v693_v0 = vsub.s32 5, %v8876_v1  ;;  %v9931_v30 = vsub.s32 3, %v8876_v1  ;;  %v1091_v1 = vld [vmem:[#allocation3 + $0x420] sm:$0xff] }
 0x2e4   :  { %v921_v21 = vmul.f32 1.442695, %v920_v8  ;;  %v924_v34 = vmul.f32 1.442695, %v923_v51  ;;  %v927_v57 = vmul.f32 1.442695, %v926_v7  ;;  %v9016_v51 = vrot.slane %v669_v48, %v689_v23 }
 0x2e5   :  { %v9014_v36 = vrot.slane %v669_v48, %v9931_v30  ;;  %v9018_v8 = vrot.slane %v669_v48, %v693_v0  ;;  %v1094_v30 = vld [vmem:[#allocation3 + $0x450] sm:$0xff]  ;;  %v1101_v23 = vld [vmem:[#allocation3 + $0x4b8] sm:$0xff] }
 0x2e6   :  { %8423 = vpow2.f32 %v921_v21  ;;  %v9023_v48 = vpack.c.bf16 %v1094_v30, %v1091_v1 }
 0x2e7   :  { %8425 = vpow2.f32 %v924_v34  ;;  %v845_v7 = vadd.f32 %v844_v35, %v9014_v36  ;;  %v9025_v35 = vpack.c.bf16 %v1101_v23, %v1098_v32  ;;  %v1103_v32 = vld [vmem:[#allocation3 + $0x4e0] sm:$0xff] }
 0x2e8   :  { %8427 = vpow2.f32 %v927_v57 }
 0x2ea   :  { %v913_v15 = vpop.f32.mrb[18].mxu1 }
 0x2eb   :  { %v915_v46 = vpop.f32.mrb[19].mxu1  ;;  %v914_v21 = vadd.f32 %v913_v15, %v9016_v51  ;;  %v1097_v15 = vld [vmem:[#allocation3 + $0x480] sm:$0xff] }
 0x2f0   :  { %v8424_v12 = vpop.eup %8423 }
 0x2f1   :  { %v8426_v10 = vpop.eup %8425 }
 0x2f2   :  { %v929_v37 = vadd.f32 %v8426_v10, %v8424_v12  ;;  %v8428_v61 = vpop.eup %8427 }
 0x2f4   :  { %v930_v14 = vadd.f32 %v8428_v61, %v929_v37 }
 0x2f6   :  { %8429 = vrcp.f32 %v930_v14  ;;  %v916_v14 = vadd.f32 %v915_v46, %v9018_v8  ;;  %v1106_v46 = vld [vmem:[#allocation3 + $0x510] sm:$0xff] }
 0x300   :  { %v8430_v57 = vpop.eup %8429 }
 0x301   :  { %v932_v34 = vmul.f32 %v8430_v57, %v8424_v12  ;;  %v934_v37 = vmul.f32 %v8430_v57, %v8426_v10  ;;  %v937_v40 = vmul.f32 %v8430_v57, %v8428_v61  ;;  %v1100_v12 = vld [vmem:[#allocation3 + $0x4b0] sm:$0xff]  ;;  %v1104_v10 = vld [vmem:[#allocation3 + $0x4e8] sm:$0xff] }
 0x302   :  { %v9029_v61 = vpack.c.bf16 %v1100_v12, %v1097_v15  ;;  %v1105_v57 = vld [vmem:[#allocation3 + $0x4f0] sm:$0xff] }
 0x303   :  { %v933_v33 = vmul.f32 %v932_v34, %v845_v7  ;;  %v935_v60 = vmul.f32 %v934_v37, %v914_v21  ;;  %v938_v47 = vmul.f32 %v937_v40, %v916_v14  ;;  %v9932_v40 = vmov 0.0   ;;  %v1108_v21 = vld [vmem:[#allocation3 + $0x520] sm:$0xff]  ;;  %v9052_v15 = vld [vmem:[#allocation3 + $0x3f0] ss:$0 sm:$0xff] }
 0x304   :  { %v9036_v7 = vpack.c.bf16 %v1106_v46, %v1103_v32  ;;  %v9039_v34 = vpack.c.bf16 %v1108_v21, %v1105_v57  ;;  %v9047_v37 = vrot.slane %v8881_v3, %v8991_v54 }
 0x305   :  { %v936_v38 = vadd.f32 %v935_v60, %v933_v33  ;;  %v1011_v60 = vpop.f32.mrb[20].mxu0 }
 0x306   :  { %v7409_v33 = vpop.f32.mrb[21].mxu0  ;;  %9933 = vst [vmem:[#allocation30_spill] sm:$0xff] %v9039_v34  ;;  %7776 = vmatpush3.bf16.msra.mxu1 %v9039_v34  ;;  %v8359_v14 = vadd.f32 %v8895_v9, %v9047_v37 }
 0x307   :  { %v939_v0 = vadd.f32 %v938_v47, %v936_v38  ;;  %v1107_v38 = vld [vmem:[#allocation3 + $0x518] sm:$0xff]  ;;  %7782 = vmatprep.subr.bf16.mxu1 %v8770_v22 }
 0x308   :  { %v9034_v47 = vpack.c.bf16 %v1107_v38, %v1104_v10  ;;  %v7149_v1 = vmul.f32 -1.442695, %v8359_v14 }
 0x309   :  { %7413 = vmatmul.mubr.msk.f32.vlgmr.msra.gmra.mrb[22].mxu0 %vm942_vm4, %v939_v0 }
 0x30a   :  { %7759 = vmatpush1.bf16.msra.mxu0 %v9023_v48  ;;  %1195 = vmatprep.mubr.f32.mxu0 %v9932_v40  ;;  %8431 = vpow2.f32 %v7149_v1 }
 0x30b   :  { %7761 = vmatprep.subr.bf16.mxu0 %v9025_v35  ;;  %8433 = vtanh.f32 %v8907_v43 }
 0x30e   :  { %7763 = vmatpush1.bf16.msra.mxu0 %v9029_v61 }
 0x30f   :  { %7765 = vmatprep.subr.bf16.mxu0 %v9034_v47 }
 0x312   :  { %7767 = vmatpush1.bf16.msra.mxu0 %v9036_v7 }
 0x313   :  { %7778 = vmatprep.subr.bf16.mxu0 %v8765_v17 }
 0x314   :  { %v8432_v30 = vpop.eup %8431 }
 0x315   :  { %v527_v23 = vadd.f32 1.0, %v8432_v30  ;;  %v8434_v9 = vpop.eup %8433 }
 0x317   :  { %8435 = vrcp.f32 %v527_v23 }
 0x321   :  { %v8436_v38 = vpop.eup %8435 }
 0x3dc   :  { %v1084_v0 = vpop.f32.mrb[22].mxu0 }
 0x3dd   :  { %v1085_v12 = vadd.f32 %v1084_v0, %v1011_v60  ;;  %v7414_v33 = vpop.f32.mrb[23].mxu0  ;;  %v539_v60 = vmul.f32 %v8436_v38, %v8434_v9 }
 0x3df   :  { %v1089_v10 = vadd.f32 %v9052_v15, %v1085_v12 }
 0x3e1   :  { %v1090_v3 = vmax.f32 %v1089_v10, 0.0 }
 0x3e3   :  { %7155 = vmatmul.mubr.msk.f32.vlgmr.msra.gmra.mrb[24].mxu0 %vm1127_vm5, %v1090_v3  ;;  %7428 = vmatmul.mubr.msk.f32.vlgmr.msra.gmra.mrb[20].mxu1 %vm1127_vm5, %v1090_v3 }
 0x3e4   :  { %7780 = vmatpush1.bf16.msra.mxu0 %v8767_v19  ;;  %7784 = vmatpush1.bf16.msra.mxu1 %v8780_v27 }
 0x3e5   :  { %1302 = vmatprep.subr.mxu0 %v8773_v24  ;;  %1373 = vmatprep.subr.mxu1 %v8790_v29  ;;  %v1110_v24 = vld [vmem:[#allocation3 + $0x540] ss:$8 sm:$0x7] }
 0x3e6   :  { %1362 = vmatprep.mubr.f32.mxu0 %v9932_v40  ;;  %1433 = vmatprep.mubr.f32.mxu1 %v9932_v40  ;;  %v9088_v32 = vrot.slane %v1110_v24, %v8884_v4  ;;  %v9097_v9 = vrot.slane %v1110_v24, %v8879_v2 }
 0x3e8   :  { %1303 = vmatpush1.msra.mxu0 %v8786_v28  ;;  %1374 = vmatpush1.msra.mxu1 %v8797_v31  ;;  %v9085_v28 = vrot.slane %v1110_v24, %v8991_v54 }
 0x3e9   :  { %7159 = vmatmul.mubr.msk.f32.vlgmr.msra.gmra.mrb[2].mxu0 %vm366_vm2, %v539_v60  ;;  %7160 = vmatmul.mubr.msk.f32.vlgmr.msra.gmra.mrb[2].mxu1 %vm366_vm2, %v539_v60 }
 0x3ea   :  { %7785 = vmatprep.subr.bf16.mxu0 %v9930_v13  ;;  %7436 = vmatprep.mubr.msk.f32.mxu0 %vm8732_vm1, %v9932_v40 }
 0x3eb   :  { %7787 = vmatpush3.bf16.msra.mxu0 %v8845_v39  ;;  %7789 = vmatprep.subr.bf16.mxu1 %v8854_v45 }
 0x3ec   :  { %7434 = vmatprep.subr.mxu0 %v9932_v40  ;;  %7791 = vmatpush1.bf16.msra.mxu1 %v8857_v49 }
 0x3ed   :  { %7793 = vmatprep.subr.bf16.mxu1 %v8864_v55  ;;  %1609 = vmatprep.mubr.f32.mxu1 %v9932_v40 }
 0x3ef   :  { %7435 = vmatpush3.msra.mxu0 %v8852_v41 }
 0x3f0   :  { %7805 = vmatprep.subr.bf16.mxu0 %v8859_v50  ;;  %7795 = vmatpush1.bf16.msra.mxu1 %v8866_v56 }
 0x3f1   :  { %7797 = vmatprep.subr.bf16.mxu1 %v8869_v59 }
 0x3f4   :  { %7799 = vmatpush1.bf16.msra.mxu1 %v8872_v62 }
 0x3f5   :  { %7801 = vmatprep.subr.bf16.mxu1 %v8925_v63 }
 0x3f8   :  { %7803 = vmatpush1.bf16.msra.mxu1 %v8927_v11 }
 0x3f9   :  { %7821 = vmatprep.subr.bf16.mxu1 %v8935_v25 }
 0x4b6   :  { %v1197_v46 = vpop.f32.mrb[24].mxu0  ;;  %v1268_v57 = vpop.f32.mrb[20].mxu1 }
 0x4b7   :  { %v1269_v21 = vadd.f32 %v1268_v57, %v9085_v28  ;;  %v1199_v14 = vpop.f32.mrb[25].mxu0  ;;  %v7429_v1 = vpop.f32.mrb[21].mxu1  ;;  %v1198_v57 = vadd.f32 %v1197_v46, %v9097_v9 }
 0x4b8   :  { %v1200_v30 = vadd.f32 %v1199_v14, %v9088_v32 }
 0x4b9   :  { %v7158_v23 = vmul.f32 -1.442695, %v1269_v21 }
 0x4ba   :  { %v7157_v0 = vmul.f32 -1.442695, %v1200_v30 }
 0x4bb   :  { %8437 = vpow2.f32 %v7158_v23 }
 0x4bc   :  { %8439 = vpow2.f32 %v7157_v0  ;;  %v1364_v12 = vpop.f32.mrb[2].mxu0  ;;  %v9092_v33 = vpop.f32.mrb[2].mxu1 }
 0x4bd   :  { %v8345_v54 = vadd.f32 %v1364_v12, %v8888_v5  ;;  %v1366_v10 = vpop.f32.mrb[3].mxu0  ;;  %v1437_v4 = vpop.f32.mrb[3].mxu1 }
 0x4be   :  { %v8346_v3 = vadd.f32 %v1366_v10, %v8892_v6  ;;  %v8362_v23 = vadd.f32 %v1437_v4, %v8902_v16 }
 0x4bf   :  { %v7161_v38 = vmul.f32 -1.442695, %v8345_v54 }
 0x4c0   :  { %v7162_v60 = vmul.f32 -1.442695, %v8346_v3 }
 0x4c1   :  { %8441 = vpow2.f32 %v7161_v38 }
 0x4c2   :  { %8443 = vpow2.f32 %v7162_v60 }
 0x4c3   :  { %8445 = vtanh.f32 %v1198_v57 }
 0x4c5   :  { %v8438_v21 = vpop.eup %8437 }
 0x4c6   :  { %v8440_v14 = vpop.eup %8439  ;;  %v1280_v1 = vadd.f32 1.0, %v8438_v21 }
 0x4c7   :  { %v1279_v30 = vadd.f32 1.0, %v8440_v14 }
 0x4c8   :  { %8447 = vrcp.f32 %v1280_v1 }
 0x4c9   :  { %8449 = vrcp.f32 %v1279_v30 }
 0x4ca   :  { %8451 = vtanh.f32 %v8362_v23 }
 0x4cb   :  { %v8442_v0 = vpop.eup %8441 }
 0x4cc   :  { %v1453_v12 = vadd.f32 1.0, %v8442_v0  ;;  %v8444_v10 = vpop.eup %8443 }
 0x4cd   :  { %v1454_v2 = vadd.f32 1.0, %v8444_v10  ;;  %v8446_v24 = vpop.eup %8445  ;;  %v9934_v10 = vld [vmem:[#allocation15_spill] sm:$0xff] }
 0x4ce   :  { %8453 = vrcp.f32 %v1453_v12 }
 0x4cf   :  { %8455 = vrcp.f32 %v1454_v2  ;;  %v9935_v2 = vld [vmem:[#allocation22_spill] sm:$0xff] }
 0x4d2   :  { %v8448_v54 = vpop.eup %8447 }
 0x4d3   :  { %v8450_v46 = vpop.eup %8449  ;;  %v1286_v3 = vmul.f32 %v8448_v54, %v8446_v24  ;;  %v9936_v24 = vld [vmem:[#allocation16_spill] sm:$0xff]  ;;  %v9937_v54 = vld [vmem:[#allocation17_spill] sm:$0xff] }
 0x4d4   :  { %v1285_v38 = vmul.f32 0.0, %v8450_v46  ;;  %v8452_v57 = vpop.eup %8451  ;;  %v9938_v46 = vld [vmem:[#allocation23_spill] sm:$0xff] }
 0x4d6   :  { %v9101_v60 = vadd.f32 %v1286_v3, %v1285_v38  ;;  %v9939_v3 = vld [vmem:[#allocation18_spill] sm:$0xff]  ;;  %v9940_v38 = vld [vmem:[#allocation24_spill] sm:$0xff] }
 0x4d8   :  { %v8454_v21 = vpop.eup %8453 }
 0x4d9   :  { %v1464_v14 = vmul.f32 %v8454_v21, %v8452_v57  ;;  %v8456_v1 = vpop.eup %8455  ;;  %v9941_v57 = vld [vmem:[#allocation19_spill] sm:$0xff]  ;;  %v9942_v21 = vld [vmem:[#allocation20_spill] sm:$0xff] }
 0x4da   :  { %v1463_v4 = vmul.f32 %v8456_v1, %v8907_v43  ;;  %v9944_v1 = vld [vmem:[#allocation28_spill] sm:$0xff] }
 0x4dc   :  { %v9104_v30 = vadd.f32 %v1464_v14, %v1463_v4  ;;  %v9943_v14 = vld [vmem:[#allocation21_spill] sm:$0xff] }
 0x4dd   :  { %v9945_v4 = vld [vmem:[#allocation29_spill] sm:$0xff] }
 0x4de   :  { %7437 = vmatmul.mubr.msk.f32.vlgmr.msra.gmra.mrb[26].mxu0 %vm366_vm2, %v9104_v30 }
 0x4df   :  { %7807 = vmatpush1.bf16.msra.mxu0 %v8905_v42  ;;  %1680 = vmatprep.mubr.f32.mxu0 %v9932_v40 }
 0x4e0   :  { %7809 = vmatprep.subr.bf16.mxu0 %v8909_v44 }
 0x4e3   :  { %7811 = vmatpush1.bf16.msra.mxu0 %v8914_v52 }
 0x4e4   :  { %7813 = vmatprep.subr.bf16.mxu0 %v8918_v53 }
 0x4e7   :  { %7815 = vmatpush1.bf16.msra.mxu0 %v8921_v58 }
 0x4e8   :  { %7817 = vmatprep.subr.bf16.mxu0 %v8930_v18 }
 0x4eb   :  { %7819 = vmatpush1.bf16.msra.mxu0 %v8932_v20 }
 0x4ec   :  { %7439 = vmatprep.subr.mxu0 %v9932_v40 }
 0x5b1   :  { %v1537_v43 = vpop.f32.mrb[26].mxu0 }
 0x5b2   :  { %v1538_v23 = vadd.f32 %v1537_v43, %v8941_v26  ;;  %v7438_v0 = vpop.f32.mrb[27].mxu0 }
 0x5b3   :  { %v9946_v0 = vld [vmem:[#allocation25_spill] sm:$0xff] }
 0x5b4   :  { %v1541_v12 = vmax.f32 %v1538_v23, 0.0 }
 0x5b6   :  { %7165 = vmatmul.mubr.msk.f32.vlgmr.msra.gmra.mrb[22].mxu1 %vm701_vm3, %v1541_v12  ;;  %7166 = vmatmul.mubr.msk.f32.vlgmr.msra.gmra.mrb[28].mxu0 %vm701_vm3, %v1541_v12 }
 0x5b7   :  { %7823 = vmatpush1.bf16.msra.mxu1 %v9934_v10  ;;  %7440 = vmatpush3.msra.mxu0 %v9935_v2 }
 0x5b8   :  { %7825 = vmatprep.subr.bf16.mxu1 %v9936_v24  ;;  %7441 = vmatprep.mubr.msk.f32.mxu0 %vm8732_vm1, %v9932_v40 }
 0x5b9   :  { %1751 = vmatprep.mubr.f32.mxu1 %v9932_v40  ;;  %7444 = vmatprep.subr.mxu0 %v9932_v40 }
 0x5ba   :  { %7442 = vmatmul.mubr.msk.f32.vlgmr.msra.gmra.mrb[30].mxu0 %vm942_vm4, %v9101_v60 }
 0x5bb   :  { %7827 = vmatpush1.bf16.msra.mxu1 %v9937_v54  ;;  %7445 = vmatpush3.msra.mxu0 %v9938_v46 }
 0x5bc   :  { %7829 = vmatprep.subr.bf16.mxu1 %v9939_v3  ;;  %7446 = vmatprep.mubr.msk.f32.mxu0 %vm8732_vm1, %v9932_v40 }
 0x5bd   :  { %7837 = vmatprep.subr.bf16.mxu0 %v9940_v38  ;;  %v9948_v38 = vld [vmem:[#allocation27_spill] sm:$0xff] }
 0x5bf   :  { %7831 = vmatpush1.bf16.msra.mxu1 %v9941_v57 }
 0x5c0   :  { %7833 = vmatprep.subr.bf16.mxu1 %v9942_v21 }
 0x5c3   :  { %7835 = vmatpush1.bf16.msra.mxu1 %v9943_v14 }
 0x5c4   :  { %7848 = vmatprep.subr.bf16.mxu1 %v9930_v13 }
 0x5c6   :  { %7167 = vmatmul.mubr.msk.f32.vlgmr.msra.gmra.mrb[24].mxu1 %vm701_vm3, %v1541_v12 }
 0x5c7   :  { %7850 = vmatpush3.bf16.msra.mxu1 %v9944_v1  ;;  %7461 = vmatprep.mubr.msk.f32.mxu1 %vm8732_vm1, %v9932_v40  ;;  %v9947_v1 = vld [vmem:[#allocation26_spill] sm:$0xff] }
 0x5c8   :  { %7851 = vmatprep.subr.bf16.mxu1 %v9930_v13 }
 0x5cb   :  { %7853 = vmatpush3.bf16.msra.mxu1 %v9945_v4 }
 0x5cc   :  { %7854 = vmatprep.subr.bf16.mxu1 %v9930_v13 }
 0x5cf   :  { %7856 = vmatpush3.bf16.msra.mxu1 %v9039_v34 }
 0x5d0   :  { %7862 = vmatprep.subr.bf16.mxu1 %v8770_v22 }
 0x689   :  { %v1611_v43 = vpop.f32.mrb[22].mxu1  ;;  %v1682_v23 = vpop.f32.mrb[28].mxu0 }
 0x68a   :  { %v1612_v14 = vadd.f32 %v1611_v43, %v9946_v0  ;;  %v1613_v12 = vpop.f32.mrb[23].mxu1  ;;  %v1684_v21 = vpop.f32.mrb[29].mxu0  ;;  %v1683_v3 = vadd.f32 %v1682_v23, %v9948_v38 }
 0x68b   :  { %v1614_v57 = vadd.f32 %v1613_v12, %v9947_v1 }
 0x68d   :  { %v1758_v46 = vmax.f32 %v1612_v14, %v1614_v57  ;;  %v1849_v54 = vpop.f32.mrb[30].mxu0 }
 0x68e   :  { %v7443_v24 = vpop.f32.mrb[31].mxu0 }
 0x68f   :  { %v1759_v4 = vmax.f32 %v1758_v46, %v1683_v3  ;;  %v1685_v24 = vadd.f32 %v1684_v21, %v9014_v36 }
 0x691   :  { %v1760_v2 = vsub.f32 %v1612_v14, %v1759_v4  ;;  %v1763_v10 = vsub.f32 %v1614_v57, %v1759_v4  ;;  %v1766_v26 = vsub.f32 %v1683_v3, %v1759_v4 }
 0x693   :  { %v1761_v34 = vmul.f32 1.442695, %v1760_v2  ;;  %v1764_v20 = vmul.f32 1.442695, %v1763_v10  ;;  %v1767_v22 = vmul.f32 1.442695, %v1766_v26 }
 0x695   :  { %8457 = vpow2.f32 %v1761_v34 }
 0x696   :  { %8459 = vpow2.f32 %v1764_v20 }
 0x697   :  { %8461 = vpow2.f32 %v1767_v22 }
 0x699   :  { %v1753_v43 = vpop.f32.mrb[24].mxu1 }
 0x69a   :  { %v1755_v0 = vpop.f32.mrb[25].mxu1  ;;  %v1754_v46 = vadd.f32 %v1753_v43, %v9016_v51 }
 0x69b   :  { %v1756_v26 = vadd.f32 %v1755_v0, %v9018_v8 }
 0x69f   :  { %v8458_v18 = vpop.eup %8457 }
 0x6a0   :  { %v8460_v58 = vpop.eup %8459 }
 0x6a1   :  { %v1769_v12 = vadd.f32 %v8460_v58, %v8458_v18  ;;  %v8462_v1 = vpop.eup %8461 }
 0x6a3   :  { %v1770_v23 = vadd.f32 %v8462_v1, %v1769_v12 }
 0x6a5   :  { %8463 = vrcp.f32 %v1770_v23 }
 0x6af   :  { %v8464_v38 = vpop.eup %8463 }
 0x6b0   :  { %v1772_v3 = vmul.f32 %v8464_v38, %v8458_v18  ;;  %v1774_v2 = vmul.f32 %v8464_v38, %v8460_v58  ;;  %v1777_v34 = vmul.f32 %v8464_v38, %v8462_v1  ;;  %v8361_v58 = vadd.f32 %v9092_v33, %v9047_v37  ;;  %v9170_v33 = vld [vmem:[#allocation3 + $0xc8] sm:$0xff] }
 0x6b2   :  { %v1773_v20 = vmul.f32 %v1772_v3, %v1685_v24  ;;  %v1775_v22 = vmul.f32 %v1774_v2, %v1754_v46  ;;  %v1778_v10 = vmul.f32 %v1777_v34, %v1756_v26  ;;  %v7163_v18 = vmul.f32 -1.442695, %v8361_v58  ;;  %v9176_v46 = vld [vmem:[#allocation3 + $0xc0] sm:$0xff] }
 0x6b4   :  { %v1776_v57 = vadd.f32 %v1775_v22, %v1773_v20  ;;  %8465 = vpow2.f32 %v7163_v18 }
 0x6b5   :  { %8467 = vtanh.f32 %v9104_v30 }
 0x6b6   :  { %v1779_v14 = vadd.f32 %v1778_v10, %v1776_v57 }
 0x6b8   :  { %7447 = vmatmul.mubr.msk.f32.vlgmr.msra.gmra.mrb[32].mxu0 %vm942_vm4, %v1779_v14 }
 0x6b9   :  { %7839 = vmatpush1.bf16.msra.mxu0 %v9023_v48  ;;  %1995 = vmatprep.mubr.f32.mxu0 %v9932_v40 }
 0x6ba   :  { %7841 = vmatprep.subr.bf16.mxu0 %v9025_v35 }
 0x6bd   :  { %7843 = vmatpush1.bf16.msra.mxu0 %v9029_v61 }
 0x6be   :  { %7845 = vmatprep.subr.bf16.mxu0 %v9034_v47  ;;  %v8466_v38 = vpop.eup %8465 }
 0x6bf   :  { %v1455_v21 = vadd.f32 1.0, %v8466_v38  ;;  %v8468_v23 = vpop.eup %8467 }
 0x6c1   :  { %7847 = vmatpush1.bf16.msra.mxu0 %v9036_v7  ;;  %8469 = vrcp.f32 %v1455_v21 }
 0x6c2   :  { %7858 = vmatprep.subr.bf16.mxu0 %v8765_v17 }
 0x78b   :  { %v1922_v1 = vpop.f32.mrb[32].mxu0 }
 0x78c   :  { %v1923_v4 = vadd.f32 %v1922_v1, %v1849_v54  ;;  %v7448_v0 = vpop.f32.mrb[33].mxu0  ;;  %v8470_v54 = vpop.eup %8469 }
 0x78d   :  { %v1467_v24 = vmul.f32 %v8470_v54, %v8468_v23 }
 0x78e   :  { %v1926_v43 = vadd.f32 %v1923_v4, %v9052_v15 }
 0x790   :  { %v1927_v12 = vmax.f32 %v1926_v43, 0.0 }
 0x792   :  { %7170 = vmatmul.mubr.msk.f32.vlgmr.msra.gmra.mrb[34].mxu0 %vm1127_vm5, %v1927_v12  ;;  %7462 = vmatmul.mubr.msk.f32.vlgmr.msra.gmra.mrb[26].mxu1 %vm1127_vm5, %v1927_v12 }
 0x793   :  { %7860 = vmatpush1.bf16.msra.mxu0 %v8767_v19  ;;  %7864 = vmatpush1.bf16.msra.mxu1 %v8780_v27 }
 0x794   :  { %2102 = vmatprep.subr.mxu0 %v9170_v33  ;;  %2173 = vmatprep.subr.mxu1 %v8790_v29 }
 0x795   :  { %2162 = vmatprep.mubr.f32.mxu0 %v9932_v40  ;;  %2233 = vmatprep.mubr.f32.mxu1 %v9932_v40 }
 0x797   :  { %2103 = vmatpush1.msra.mxu0 %v9176_v46  ;;  %2174 = vmatpush1.msra.mxu1 %v8797_v31 }
 0x798   :  { %7174 = vmatmul.mubr.msk.f32.vlgmr.msra.gmra.mrb[4].mxu0 %vm366_vm2, %v1467_v24  ;;  %7175 = vmatmul.mubr.msk.f32.vlgmr.msra.gmra.mrb[4].mxu1 %vm366_vm2, %v1467_v24 }
 0x799   :  { %7865 = vmatprep.subr.bf16.mxu0 %v9930_v13  ;;  %7470 = vmatprep.mubr.msk.f32.mxu0 %vm8732_vm1, %v9932_v40 }
 0x79a   :  { %7867 = vmatpush3.bf16.msra.mxu0 %v8845_v39  ;;  %7869 = vmatprep.subr.bf16.mxu1 %v8854_v45 }
 0x79b   :  { %7468 = vmatprep.subr.mxu0 %v9932_v40  ;;  %7871 = vmatpush1.bf16.msra.mxu1 %v8857_v49 }
 0x79c   :  { %7873 = vmatprep.subr.bf16.mxu1 %v8864_v55  ;;  %2409 = vmatprep.mubr.f32.mxu1 %v9932_v40 }
 0x79e   :  { %7469 = vmatpush3.msra.mxu0 %v8852_v41 }
 0x79f   :  { %7885 = vmatprep.subr.bf16.mxu0 %v8859_v50  ;;  %7875 = vmatpush1.bf16.msra.mxu1 %v8866_v56 }
 0x7a0   :  { %7877 = vmatprep.subr.bf16.mxu1 %v8869_v59 }
 0x7a3   :  { %7879 = vmatpush1.bf16.msra.mxu1 %v8872_v62 }
 0x7a4   :  { %7881 = vmatprep.subr.bf16.mxu1 %v8925_v63 }
 0x7a7   :  { %7883 = vmatpush1.bf16.msra.mxu1 %v8927_v11 }
 0x7a8   :  { %7901 = vmatprep.subr.bf16.mxu1 %v8935_v25 }
 0x865   :  { %v1997_v29 = vpop.f32.mrb[34].mxu0  ;;  %v2068_v31 = vpop.f32.mrb[26].mxu1 }
 0x866   :  { %v2069_v3 = vadd.f32 %v2068_v31, %v9085_v28  ;;  %v1999_v2 = vpop.f32.mrb[35].mxu0  ;;  %v7463_v41 = vpop.f32.mrb[27].mxu1  ;;  %v1998_v1 = vadd.f32 %v1997_v29, %v9097_v9 }
 0x867   :  { %v2000_v26 = vadd.f32 %v1999_v2, %v9088_v32 }
 0x868   :  { %v7173_v34 = vmul.f32 -1.442695, %v2069_v3 }
 0x869   :  { %v7172_v20 = vmul.f32 -1.442695, %v2000_v26 }
 0x86a   :  { %8471 = vpow2.f32 %v7173_v34 }
 0x86b   :  { %8473 = vpow2.f32 %v7172_v20  ;;  %v2164_v22 = vpop.f32.mrb[4].mxu0  ;;  %v9201_v10 = vpop.f32.mrb[4].mxu1 }
 0x86c   :  { %v8347_v57 = vadd.f32 %v2164_v22, %v8888_v5  ;;  %v2166_v14 = vpop.f32.mrb[5].mxu0  ;;  %v2237_v58 = vpop.f32.mrb[5].mxu1 }
 0x86d   :  { %v8348_v18 = vadd.f32 %v2166_v14, %v8892_v6  ;;  %v8364_v23 = vadd.f32 %v2237_v58, %v8902_v16 }
 0x86e   :  { %v7176_v38 = vmul.f32 -1.442695, %v8347_v57 }
 0x86f   :  { %v7177_v21 = vmul.f32 -1.442695, %v8348_v18 }
 0x870   :  { %8475 = vpow2.f32 %v7176_v38 }
 0x871   :  { %8477 = vpow2.f32 %v7177_v21  ;;  %v9950_v21 = vld [vmem:[#allocation11_spill] sm:$0xff] }
 0x872   :  { %8479 = vtanh.f32 %v1998_v1 }
 0x874   :  { %v8472_v4 = vpop.eup %8471 }
 0x875   :  { %v8474_v0 = vpop.eup %8473  ;;  %v2080_v43 = vadd.f32 1.0, %v8472_v4  ;;  %v9952_v4 = vld [vmem:[#allocation14_spill] sm:$0xff] }
 0x876   :  { %v2079_v12 = vadd.f32 1.0, %v8474_v0 }
 0x877   :  { %8481 = vrcp.f32 %v2080_v43 }
 0x878   :  { %8483 = vrcp.f32 %v2079_v12 }
 0x879   :  { %8485 = vtanh.f32 %v8364_v23  ;;  %v9953_v23 = vld [vmem:[#allocation15_spill] sm:$0xff] }
 0x87a   :  { %v8476_v54 = vpop.eup %8475 }
 0x87b   :  { %v2253_v24 = vadd.f32 1.0, %v8476_v54  ;;  %v8478_v31 = vpop.eup %8477  ;;  %v9954_v54 = vld [vmem:[#allocation22_spill] sm:$0xff] }
 0x87c   :  { %v2254_v3 = vadd.f32 1.0, %v8478_v31  ;;  %v8480_v2 = vpop.eup %8479  ;;  %v9956_v31 = vld [vmem:[#allocation17_spill] sm:$0xff] }
 0x87d   :  { %8487 = vrcp.f32 %v2253_v24  ;;  %v9955_v24 = vld [vmem:[#allocation16_spill] sm:$0xff] }
 0x87e   :  { %8489 = vrcp.f32 %v2254_v3  ;;  %v9957_v3 = vld [vmem:[#allocation23_spill] sm:$0xff] }
 0x881   :  { %v8482_v41 = vpop.eup %8481 }
 0x882   :  { %v8484_v29 = vpop.eup %8483  ;;  %v2086_v26 = vmul.f32 %v8482_v41, %v8480_v2  ;;  %v9958_v2 = vld [vmem:[#allocation18_spill] sm:$0xff]  ;;  %v9959_v41 = vld [vmem:[#allocation24_spill] sm:$0xff] }
 0x883   :  { %v2085_v34 = vmul.f32 %v8484_v29, %v9101_v60  ;;  %v8486_v22 = vpop.eup %8485  ;;  %v9949_v60 = vld [vmem:[#allocation8_spill] sm:$0xff]  ;;  %v9960_v29 = vld [vmem:[#allocation19_spill] sm:$0xff] }
 0x885   :  { %v9208_v20 = vadd.f32 %v2086_v26, %v2085_v34  ;;  %v9961_v26 = vld [vmem:[#allocation20_spill] sm:$0xff]  ;;  %v9962_v34 = vld [vmem:[#allocation21_spill] sm:$0xff] }
 0x887   :  { %v8488_v57 = vpop.eup %8487 }
 0x888   :  { %v2264_v14 = vmul.f32 %v8488_v57, %v8486_v22  ;;  %v8490_v18 = vpop.eup %8489  ;;  %v9963_v22 = vld [vmem:[#allocation28_spill] sm:$0xff]  ;;  %v9964_v57 = vld [vmem:[#allocation29_spill] sm:$0xff] }
 0x889   :  { %v2263_v58 = vmul.f32 %v8490_v18, %v9104_v30  ;;  %v9951_v30 = vld [vmem:[#allocation12_spill] sm:$0xff]  ;;  %v9966_v18 = vld [vmem:[#allocation7_spill] sm:$0xff] }
 0x88b   :  { %v9211_v38 = vadd.f32 %v2264_v14, %v2263_v58  ;;  %v9965_v14 = vld [vmem:[#allocation30_spill] sm:$0xff] }
 0x88d   :  { %7471 = vmatmul.mubr.msk.f32.vlgmr.msra.gmra.mrb[36].mxu0 %vm366_vm2, %v9211_v38 }
 0x88e   :  { %7887 = vmatpush1.bf16.msra.mxu0 %v8905_v42  ;;  %2480 = vmatprep.mubr.f32.mxu0 %v9932_v40 }
 0x88f   :  { %7889 = vmatprep.subr.bf16.mxu0 %v8909_v44 }
 0x892   :  { %7891 = vmatpush1.bf16.msra.mxu0 %v8914_v52 }
 0x893   :  { %7893 = vmatprep.subr.bf16.mxu0 %v8918_v53 }
 0x896   :  { %7895 = vmatpush1.bf16.msra.mxu0 %v9949_v60 }
 0x897   :  { %7897 = vmatprep.subr.bf16.mxu0 %v9950_v21 }
 0x89a   :  { %7899 = vmatpush1.bf16.msra.mxu0 %v9951_v30 }
 0x89b   :  { %7473 = vmatprep.subr.mxu0 %v9932_v40 }
 0x960   :  { %v2337_v1 = vpop.f32.mrb[36].mxu0 }
 0x961   :  { %v2338_v0 = vadd.f32 %v2337_v1, %v9952_v4  ;;  %v7472_v43 = vpop.f32.mrb[37].mxu0  ;;  %v9967_v4 = vld [vmem:[#allocation25_spill] sm:$0xff] }
 0x963   :  { %v2341_v12 = vmax.f32 %v2338_v0, 0.0 }
 0x965   :  { %7180 = vmatmul.mubr.msk.f32.vlgmr.msra.gmra.mrb[28].mxu1 %vm701_vm3, %v2341_v12  ;;  %7181 = vmatmul.mubr.msk.f32.vlgmr.msra.gmra.mrb[38].mxu0 %vm701_vm3, %v2341_v12 }
 0x966   :  { %7903 = vmatpush1.bf16.msra.mxu1 %v9953_v23  ;;  %7474 = vmatpush3.msra.mxu0 %v9954_v54  ;;  %v9968_v54 = vld [vmem:[#allocation26_spill] sm:$0xff] }
 0x967   :  { %7905 = vmatprep.subr.bf16.mxu1 %v9955_v24  ;;  %7475 = vmatprep.mubr.msk.f32.mxu0 %vm8732_vm1, %v9932_v40 }
 0x968   :  { %2551 = vmatprep.mubr.f32.mxu1 %v9932_v40  ;;  %7478 = vmatprep.subr.mxu0 %v9932_v40 }
 0x969   :  { %7476 = vmatmul.mubr.msk.f32.vlgmr.msra.gmra.mrb[40].mxu0 %vm942_vm4, %v9208_v20 }
 0x96a   :  { %7907 = vmatpush1.bf16.msra.mxu1 %v9956_v31  ;;  %7479 = vmatpush3.msra.mxu0 %v9957_v3 }
 0x96b   :  { %7909 = vmatprep.subr.bf16.mxu1 %v9958_v2  ;;  %7480 = vmatprep.mubr.msk.f32.mxu0 %vm8732_vm1, %v9932_v40 }
 0x96c   :  { %7917 = vmatprep.subr.bf16.mxu0 %v9959_v41 }
 0x96e   :  { %7911 = vmatpush1.bf16.msra.mxu1 %v9960_v29 }
 0x96f   :  { %7913 = vmatprep.subr.bf16.mxu1 %v9961_v26 }
 0x972   :  { %7915 = vmatpush1.bf16.msra.mxu1 %v9962_v34 }
 0x973   :  { %7928 = vmatprep.subr.bf16.mxu1 %v9930_v13 }
 0x975   :  { %7182 = vmatmul.mubr.msk.f32.vlgmr.msra.gmra.mrb[30].mxu1 %vm701_vm3, %v2341_v12 }
 0x976   :  { %7930 = vmatpush3.bf16.msra.mxu1 %v9963_v22  ;;  %7495 = vmatprep.mubr.msk.f32.mxu1 %vm8732_vm1, %v9932_v40  ;;  %v9969_v22 = vld [vmem:[#allocation27_spill] sm:$0xff] }
 0x977   :  { %7931 = vmatprep.subr.bf16.mxu1 %v9930_v13 }
 0x97a   :  { %7933 = vmatpush3.bf16.msra.mxu1 %v9964_v57 }
 0x97b   :  { %7934 = vmatprep.subr.bf16.mxu1 %v9930_v13 }
 0x97e   :  { %7936 = vmatpush3.bf16.msra.mxu1 %v9965_v14 }
 0x97f   :  { %7942 = vmatprep.subr.bf16.mxu1 %v9966_v18 }
 0xa38   :  { %v2411_v58 = vpop.f32.mrb[28].mxu1  ;;  %v2482_v1 = vpop.f32.mrb[38].mxu0 }
 0xa39   :  { %v2412_v0 = vadd.f32 %v2411_v58, %v9967_v4  ;;  %v2413_v43 = vpop.f32.mrb[29].mxu1  ;;  %v2484_v12 = vpop.f32.mrb[39].mxu0  ;;  %v2483_v34 = vadd.f32 %v2482_v1, %v9969_v22 }
 0xa3a   :  { %v2414_v3 = vadd.f32 %v2413_v43, %v9968_v54 }
 0xa3c   :  { %v2558_v26 = vmax.f32 %v2412_v0, %v2414_v3  ;;  %v2649_v29 = vpop.f32.mrb[40].mxu0 }
 0xa3d   :  { %v7477_v41 = vpop.f32.mrb[41].mxu0 }
 0xa3e   :  { %v2559_v57 = vmax.f32 %v2558_v26, %v2483_v34  ;;  %v2485_v41 = vadd.f32 %v2484_v12, %v9014_v36 }
 0xa40   :  { %v2560_v2 = vsub.f32 %v2412_v0, %v2559_v57  ;;  %v2563_v31 = vsub.f32 %v2414_v3, %v2559_v57  ;;  %v2566_v24 = vsub.f32 %v2483_v34, %v2559_v57 }
 0xa42   :  { %v2561_v14 = vmul.f32 1.442695, %v2560_v2  ;;  %v2564_v23 = vmul.f32 1.442695, %v2563_v31  ;;  %v2567_v18 = vmul.f32 1.442695, %v2566_v24 }
 0xa44   :  { %8491 = vpow2.f32 %v2561_v14 }
 0xa45   :  { %8493 = vpow2.f32 %v2564_v23 }
 0xa46   :  { %8495 = vpow2.f32 %v2567_v18 }
 0xa48   :  { %v2553_v58 = vpop.f32.mrb[30].mxu1 }
 0xa49   :  { %v2555_v4 = vpop.f32.mrb[31].mxu1  ;;  %v2554_v26 = vadd.f32 %v2553_v58, %v9016_v51 }
 0xa4a   :  { %v2556_v24 = vadd.f32 %v2555_v4, %v9018_v8 }
 0xa4e   :  { %v8492_v25 = vpop.eup %8491 }
 0xa4f   :  { %v8494_v11 = vpop.eup %8493 }
 0xa50   :  { %v2569_v43 = vadd.f32 %v8494_v11, %v8492_v25  ;;  %v8496_v54 = vpop.eup %8495 }
 0xa52   :  { %v2570_v1 = vadd.f32 %v8496_v54, %v2569_v43 }
 0xa54   :  { %8497 = vrcp.f32 %v2570_v1 }
 0xa5e   :  { %v8498_v22 = vpop.eup %8497 }
 0xa5f   :  { %v2572_v34 = vmul.f32 %v8498_v22, %v8492_v25  ;;  %v2574_v2 = vmul.f32 %v8498_v22, %v8494_v11  ;;  %v2577_v31 = vmul.f32 %v8498_v22, %v8496_v54  ;;  %v8363_v11 = vadd.f32 %v9201_v10, %v9047_v37  ;;  %v9278_v10 = vld [vmem:[#allocation3 + $0xd8] sm:$0xff] }
 0xa61   :  { %v2573_v23 = vmul.f32 %v2572_v34, %v2485_v41  ;;  %v2575_v57 = vmul.f32 %v2574_v2, %v2554_v26  ;;  %v2578_v14 = vmul.f32 %v2577_v31, %v2556_v24  ;;  %v7178_v25 = vmul.f32 -1.442695, %v8363_v11  ;;  %v9284_v41 = vld [vmem:[#allocation3 + $0xd0] sm:$0xff]  ;;  %v9298_v26 = vld [vmem:[#allocation3 + $0x180] sm:$0xff] }
 0xa63   :  { %v2576_v18 = vadd.f32 %v2575_v57, %v2573_v23  ;;  %8499 = vpow2.f32 %v7178_v25 }
 0xa64   :  { %8501 = vtanh.f32 %v9211_v38 }
 0xa65   :  { %v2579_v0 = vadd.f32 %v2578_v14, %v2576_v18 }
 0xa67   :  { %7481 = vmatmul.mubr.msk.f32.vlgmr.msra.gmra.mrb[42].mxu0 %vm942_vm4, %v2579_v0 }
 0xa68   :  { %7919 = vmatpush1.bf16.msra.mxu0 %v9023_v48  ;;  %2795 = vmatprep.mubr.f32.mxu0 %v9932_v40 }
 0xa69   :  { %7921 = vmatprep.subr.bf16.mxu0 %v9025_v35 }
 0xa6c   :  { %7923 = vmatpush1.bf16.msra.mxu0 %v9029_v61 }
 0xa6d   :  { %7925 = vmatprep.subr.bf16.mxu0 %v9034_v47  ;;  %v8500_v22 = vpop.eup %8499 }
 0xa6e   :  { %v2255_v4 = vadd.f32 1.0, %v8500_v22  ;;  %v8502_v1 = vpop.eup %8501 }
 0xa70   :  { %7927 = vmatpush1.bf16.msra.mxu0 %v9036_v7  ;;  %8503 = vrcp.f32 %v2255_v4 }
 0xa71   :  { %7938 = vmatprep.subr.bf16.mxu0 %v8765_v17 }
 0xb3a   :  { %v2722_v12 = vpop.f32.mrb[42].mxu0 }
 0xb3b   :  { %v2723_v54 = vadd.f32 %v2722_v12, %v2649_v29  ;;  %v7482_v3 = vpop.f32.mrb[43].mxu0  ;;  %v8504_v29 = vpop.eup %8503 }
 0xb3d   :  { %v2726_v58 = vadd.f32 %v2723_v54, %v9052_v15  ;;  %v2267_v15 = vmul.f32 %v8504_v29, %v8502_v1 }
 0xb3f   :  { %v2727_v43 = vmax.f32 %v2726_v58, 0.0 }
 0xb41   :  { %7185 = vmatmul.mubr.msk.f32.vlgmr.msra.gmra.mrb[44].mxu0 %vm1127_vm5, %v2727_v43  ;;  %7496 = vmatmul.mubr.msk.f32.vlgmr.msra.gmra.mrb[32].mxu1 %vm1127_vm5, %v2727_v43 }
 0xb42   :  { %7940 = vmatpush1.bf16.msra.mxu0 %v8767_v19  ;;  %7944 = vmatpush1.bf16.msra.mxu1 %v8780_v27 }
 0xb43   :  { %2902 = vmatprep.subr.mxu0 %v9170_v33  ;;  %2973 = vmatprep.subr.mxu1 %v9278_v10 }
 0xb44   :  { %2962 = vmatprep.mubr.f32.mxu0 %v9932_v40  ;;  %3033 = vmatprep.mubr.f32.mxu1 %v9932_v40 }
 0xb46   :  { %2903 = vmatpush1.msra.mxu0 %v9176_v46  ;;  %2974 = vmatpush1.msra.mxu1 %v9284_v41 }
 0xb47   :  { %7189 = vmatmul.mubr.msk.f32.vlgmr.msra.gmra.mrb[6].mxu0 %vm366_vm2, %v2267_v15  ;;  %7190 = vmatmul.mubr.msk.f32.vlgmr.msra.gmra.mrb[6].mxu1 %vm366_vm2, %v2267_v15 }
 0xb48   :  { %7945 = vmatprep.subr.bf16.mxu0 %v9930_v13  ;;  %7504 = vmatprep.mubr.msk.f32.mxu0 %vm8732_vm1, %v9932_v40 }
 0xb49   :  { %7947 = vmatpush3.bf16.msra.mxu0 %v8845_v39  ;;  %7965 = vmatprep.subr.bf16.mxu1 %v8859_v50 }
 0xb4a   :  { %7502 = vmatprep.subr.mxu0 %v9932_v40  ;;  %7967 = vmatpush1.bf16.msra.mxu1 %v8905_v42 }
 0xb4b   :  { %7969 = vmatprep.subr.bf16.mxu1 %v8909_v44  ;;  %3280 = vmatprep.mubr.f32.mxu1 %v9932_v40 }
 0xb4d   :  { %7503 = vmatpush3.msra.mxu0 %v9298_v26 }
 0xb4e   :  { %7949 = vmatprep.subr.bf16.mxu0 %v8854_v45  ;;  %7971 = vmatpush1.bf16.msra.mxu1 %v8914_v52 }
 0xb4f   :  { %7973 = vmatprep.subr.bf16.mxu1 %v8918_v53 }
 0xb52   :  { %7975 = vmatpush1.bf16.msra.mxu1 %v9949_v60 }
 0xb53   :  { %7977 = vmatprep.subr.bf16.mxu1 %v9950_v21 }
 0xb56   :  { %7979 = vmatpush1.bf16.msra.mxu1 %v9951_v30 }
 0xb57   :  { %7507 = vmatprep.subr.mxu1 %v9932_v40 }
 0xc14   :  { %v2797_v34 = vpop.f32.mrb[44].mxu0  ;;  %v2868_v2 = vpop.f32.mrb[32].mxu1 }
 0xc15   :  { %v2869_v24 = vadd.f32 %v2868_v2, %v9085_v28  ;;  %v2799_v31 = vpop.f32.mrb[45].mxu0  ;;  %v7497_v23 = vpop.f32.mrb[33].mxu1  ;;  %v2798_v58 = vadd.f32 %v2797_v34, %v9097_v9 }
 0xc16   :  { %v2800_v57 = vadd.f32 %v2799_v31, %v9088_v32 }
 0xc17   :  { %v7188_v14 = vmul.f32 -1.442695, %v2869_v24 }
 0xc18   :  { %v7187_v18 = vmul.f32 -1.442695, %v2800_v57 }
 0xc19   :  { %8505 = vpow2.f32 %v7188_v14 }
 0xc1a   :  { %8507 = vpow2.f32 %v7187_v18  ;;  %v2964_v0 = vpop.f32.mrb[6].mxu0  ;;  %v9310_v11 = vpop.f32.mrb[6].mxu1 }
 0xc1b   :  { %v8349_v25 = vadd.f32 %v2964_v0, %v8888_v5  ;;  %v2966_v22 = vpop.f32.mrb[7].mxu0  ;;  %v3037_v4 = vpop.f32.mrb[7].mxu1 }
 0xc1c   :  { %v8350_v12 = vadd.f32 %v2966_v22, %v8892_v6  ;;  %v8366_v2 = vadd.f32 %v3037_v4, %v8902_v16 }
 0xc1d   :  { %v7191_v54 = vmul.f32 -1.442695, %v8349_v25 }
 0xc1e   :  { %v7192_v3 = vmul.f32 -1.442695, %v8350_v12 }
 0xc1f   :  { %8509 = vpow2.f32 %v7191_v54 }
 0xc20   :  { %8511 = vpow2.f32 %v7192_v3 }
 0xc21   :  { %8513 = vtanh.f32 %v2798_v58 }
 0xc23   :  { %v8506_v43 = vpop.eup %8505 }
 0xc24   :  { %v8508_v1 = vpop.eup %8507  ;;  %v2880_v29 = vadd.f32 1.0, %v8506_v43 }
 0xc25   :  { %v2879_v15 = vadd.f32 1.0, %v8508_v1 }
 0xc26   :  { %8515 = vrcp.f32 %v2880_v29  ;;  %v9333_v29 = vld [vmem:[#allocation3 + $0x1b0] ss:$0 sm:$0xff] }
 0xc27   :  { %8517 = vrcp.f32 %v2879_v15  ;;  %9972 = vst [vmem:[#allocation8_spill] sm:$0xff] %v9333_v29 }
 0xc28   :  { %8519 = vtanh.f32 %v8366_v2 }
 0xc29   :  { %v8510_v24 = vpop.eup %8509 }
 0xc2a   :  { %v3053_v31 = vadd.f32 1.0, %v8510_v24  ;;  %v8512_v23 = vpop.eup %8511 }
 0xc2b   :  { %v3054_v57 = vadd.f32 1.0, %v8512_v23  ;;  %v8514_v14 = vpop.eup %8513  ;;  %v9339_v23 = vld [vmem:[#allocation3 + $0x3c0] sm:$0xff] }
 0xc2c   :  { %8521 = vrcp.f32 %v3053_v31  ;;  %v9973_v31 = vld [vmem:[#allocation15_spill] sm:$0xff]  ;;  %9974 = vst [vmem:[#allocation11_spill] sm:$0xff] %v9339_v23 }
 0xc2d   :  { %8523 = vrcp.f32 %v3054_v57  ;;  %v9975_v57 = vld [vmem:[#allocation16_spill] sm:$0xff] }
 0xc30   :  { %v8516_v18 = vpop.eup %8515 }
 0xc31   :  { %v8518_v34 = vpop.eup %8517  ;;  %v2886_v0 = vmul.f32 %v8516_v18, %v8514_v14  ;;  %v9976_v14 = vld [vmem:[#allocation17_spill] sm:$0xff]  ;;  %v9350_v18 = vld [vmem:[#allocation3 + $0x390] sm:$0xff] }
 0xc32   :  { %v2885_v25 = vmul.f32 %v8518_v34, %v9208_v20  ;;  %v8520_v12 = vpop.eup %8519  ;;  %v9970_v20 = vld [vmem:[#allocation10_spill] sm:$0xff]  ;;  %9977 = vst [vmem:[#allocation12_spill] sm:$0xff] %v9350_v18 }
 0xc33   :  { %v9978_v34 = vld [vmem:[#allocation18_spill] sm:$0xff] }
 0xc34   :  { %v9317_v22 = vadd.f32 %v2886_v0, %v2885_v25  ;;  %v9979_v0 = vld [vmem:[#allocation24_spill] sm:$0xff]  ;;  %v9980_v25 = vld [vmem:[#allocation19_spill] sm:$0xff] }
 0xc36   :  { %v8522_v54 = vpop.eup %8521 }
 0xc37   :  { %v3064_v3 = vmul.f32 %v8522_v54, %v8520_v12  ;;  %v8524_v58 = vpop.eup %8523  ;;  %v9981_v12 = vld [vmem:[#allocation20_spill] sm:$0xff]  ;;  %v9982_v54 = vld [vmem:[#allocation21_spill] sm:$0xff] }
 0xc38   :  { %v3063_v4 = vmul.f32 %v8524_v58, %v9211_v38  ;;  %v9971_v38 = vld [vmem:[#allocation13_spill] sm:$0xff] }
 0xc39   :  { %v9984_v58 = vld [vmem:[#allocation29_spill] sm:$0xff] }
 0xc3a   :  { %v9320_v43 = vadd.f32 %v3064_v3, %v3063_v4  ;;  %v9983_v3 = vld [vmem:[#allocation28_spill] sm:$0xff]  ;;  %v9985_v4 = vld [vmem:[#allocation30_spill] sm:$0xff] }
 0xc3c   :  { %7505 = vmatmul.mubr.msk.f32.vlgmr.msra.gmra.mrb[46].mxu0 %vm366_vm2, %v9320_v43 }
 0xc3d   :  { %7951 = vmatpush1.bf16.msra.mxu0 %v8857_v49  ;;  %3209 = vmatprep.mubr.f32.mxu0 %v9932_v40 }
 0xc3e   :  { %7953 = vmatprep.subr.bf16.mxu0 %v8864_v55 }
 0xc41   :  { %7955 = vmatpush1.bf16.msra.mxu0 %v8866_v56 }
 0xc42   :  { %7957 = vmatprep.subr.bf16.mxu0 %v8869_v59 }
 0xc45   :  { %7959 = vmatpush1.bf16.msra.mxu0 %v8872_v62 }
 0xc46   :  { %7961 = vmatprep.subr.bf16.mxu0 %v8925_v63 }
 0xc49   :  { %7963 = vmatpush1.bf16.msra.mxu0 %v9970_v20 }
 0xc4a   :  { %7981 = vmatprep.subr.bf16.mxu0 %v9971_v38 }
 0xd0f   :  { %v3137_v1 = vpop.f32.mrb[46].mxu0 }
 0xd10   :  { %v3138_v15 = vadd.f32 %v9333_v29, %v3137_v1  ;;  %v7506_v2 = vpop.f32.mrb[47].mxu0 }
 0xd11   :  { %v9986_v2 = vld [vmem:[#allocation25_spill] sm:$0xff] }
 0xd12   :  { %v3141_v24 = vmax.f32 %v3138_v15, 0.0 }
 0xd14   :  { %7195 = vmatmul.mubr.msk.f32.vlgmr.msra.gmra.mrb[48].mxu0 %vm701_vm3, %v3141_v24  ;;  %7196 = vmatmul.mubr.msk.f32.vlgmr.msra.gmra.mrb[34].mxu1 %vm701_vm3, %v3141_v24 }
 0xd15   :  { %7983 = vmatpush1.bf16.msra.mxu0 %v9973_v31  ;;  %7508 = vmatpush3.msra.mxu1 %v9339_v23 }
 0xd16   :  { %7985 = vmatprep.subr.bf16.mxu0 %v9975_v57  ;;  %7509 = vmatprep.mubr.msk.f32.mxu1 %vm8732_vm1, %v9932_v40 }
 0xd17   :  { %3351 = vmatprep.mubr.f32.mxu0 %v9932_v40  ;;  %7512 = vmatprep.subr.mxu1 %v9932_v40 }
 0xd18   :  { %7510 = vmatmul.mubr.msk.f32.vlgmr.msra.gmra.mrb[36].mxu1 %vm942_vm4, %v9317_v22 }
 0xd19   :  { %7987 = vmatpush1.bf16.msra.mxu0 %v9976_v14  ;;  %7513 = vmatpush3.msra.mxu1 %v9350_v18 }
 0xd1a   :  { %7989 = vmatprep.subr.bf16.mxu0 %v9978_v34  ;;  %7514 = vmatprep.mubr.msk.f32.mxu1 %vm8732_vm1, %v9932_v40 }
 0xd1b   :  { %7997 = vmatprep.subr.bf16.mxu1 %v9979_v0  ;;  %v9988_v0 = vld [vmem:[#allocation27_spill] sm:$0xff] }
 0xd1d   :  { %7991 = vmatpush1.bf16.msra.mxu0 %v9980_v25 }
 0xd1e   :  { %7993 = vmatprep.subr.bf16.mxu0 %v9981_v12 }
 0xd21   :  { %7995 = vmatpush1.bf16.msra.mxu0 %v9982_v54 }
 0xd22   :  { %8008 = vmatprep.subr.bf16.mxu0 %v9930_v13 }
 0xd24   :  { %7197 = vmatmul.mubr.msk.f32.vlgmr.msra.gmra.mrb[50].mxu0 %vm701_vm3, %v3141_v24 }
 0xd25   :  { %8010 = vmatpush3.bf16.msra.mxu0 %v9983_v3  ;;  %7529 = vmatprep.mubr.msk.f32.mxu0 %vm8732_vm1, %v9932_v40  ;;  %v9987_v3 = vld [vmem:[#allocation26_spill] sm:$0xff] }
 0xd26   :  { %8011 = vmatprep.subr.bf16.mxu0 %v9930_v13 }
 0xd29   :  { %8013 = vmatpush3.bf16.msra.mxu0 %v9984_v58 }
 0xd2a   :  { %8014 = vmatprep.subr.bf16.mxu0 %v9930_v13 }
 0xd2d   :  { %8016 = vmatpush3.bf16.msra.mxu0 %v9985_v4 }
 0xd2e   :  { %8018 = vmatprep.subr.bf16.mxu0 %v8765_v17 }
 0xde7   :  { %v3211_v1 = vpop.f32.mrb[48].mxu0  ;;  %v3282_v15 = vpop.f32.mrb[34].mxu1 }
 0xde8   :  { %v3212_v54 = vadd.f32 %v3211_v1, %v9986_v2  ;;  %v3213_v24 = vpop.f32.mrb[49].mxu0  ;;  %v3284_v12 = vpop.f32.mrb[35].mxu1  ;;  %v3283_v34 = vadd.f32 %v3282_v15, %v9988_v0 }
 0xde9   :  { %v3214_v25 = vadd.f32 %v3213_v24, %v9987_v3 }
 0xdeb   :  { %v3358_v18 = vmax.f32 %v3212_v54, %v3214_v25  ;;  %v3449_v14 = vpop.f32.mrb[36].mxu1 }
 0xdec   :  { %v7511_v57 = vpop.f32.mrb[37].mxu1 }
 0xded   :  { %v3359_v58 = vmax.f32 %v3358_v18, %v3283_v34  ;;  %v3285_v57 = vadd.f32 %v3284_v12, %v9014_v36 }
 0xdef   :  { %v3360_v23 = vsub.f32 %v3212_v54, %v3359_v58  ;;  %v3363_v31 = vsub.f32 %v3214_v25, %v3359_v58  ;;  %v3366_v29 = vsub.f32 %v3283_v34, %v3359_v58 }
 0xdf1   :  { %v3361_v4 = vmul.f32 1.442695, %v3360_v23  ;;  %v3364_v38 = vmul.f32 1.442695, %v3363_v31  ;;  %v3367_v17 = vmul.f32 1.442695, %v3366_v29 }
 0xdf3   :  { %8525 = vpow2.f32 %v3361_v4 }
 0xdf4   :  { %8527 = vpow2.f32 %v3364_v38 }
 0xdf5   :  { %8529 = vpow2.f32 %v3367_v17 }
 0xdf7   :  { %v3353_v1 = vpop.f32.mrb[50].mxu0 }
 0xdf8   :  { %v3355_v2 = vpop.f32.mrb[51].mxu0  ;;  %v3354_v18 = vadd.f32 %v3353_v1, %v9016_v51 }
 0xdf9   :  { %v3356_v29 = vadd.f32 %v3355_v2, %v9018_v8 }
 0xdfd   :  { %v8526_v20 = vpop.eup %8525 }
 0xdfe   :  { %v8528_v63 = vpop.eup %8527 }
 0xdff   :  { %v3369_v24 = vadd.f32 %v8528_v63, %v8526_v20  ;;  %v8530_v3 = vpop.eup %8529 }
 0xe01   :  { %v3370_v15 = vadd.f32 %v8530_v3, %v3369_v24  ;;  %v9387_v24 = vld [vmem:[#allocation3 + $0x3f0] ss:$0 sm:$0xff] }
 0xe03   :  { %8531 = vrcp.f32 %v3370_v15 }
 0xe0d   :  { %v8532_v0 = vpop.eup %8531 }
 0xe0e   :  { %v3372_v34 = vmul.f32 %v8532_v0, %v8526_v20  ;;  %v3374_v23 = vmul.f32 %v8532_v0, %v8528_v63  ;;  %v3377_v31 = vmul.f32 %v8532_v0, %v8530_v3  ;;  %v9989_v63 = vld [vmem:[#allocation7_spill] sm:$0xff]  ;;  %v8365_v20 = vadd.f32 %v9310_v11, %v9047_v37 }
 0xe10   :  { %v3373_v38 = vmul.f32 %v3372_v34, %v3285_v57  ;;  %v3375_v17 = vmul.f32 %v3374_v23, %v3354_v18  ;;  %v3378_v25 = vmul.f32 %v3377_v31, %v3356_v29  ;;  %v7193_v0 = vmul.f32 -1.442695, %v8365_v20 }
 0xe12   :  { %v3376_v54 = vadd.f32 %v3375_v17, %v3373_v38  ;;  %8533 = vpow2.f32 %v7193_v0 }
 0xe13   :  { %8535 = vtanh.f32 %v9320_v43 }
 0xe14   :  { %v3379_v58 = vadd.f32 %v3378_v25, %v3376_v54 }
 0xe16   :  { %7515 = vmatmul.mubr.msk.f32.vlgmr.msra.gmra.mrb[38].mxu1 %vm942_vm4, %v3379_v58 }
 0xe17   :  { %7999 = vmatpush1.bf16.msra.mxu1 %v9023_v48  ;;  %3595 = vmatprep.mubr.f32.mxu1 %v9932_v40 }
 0xe18   :  { %8001 = vmatprep.subr.bf16.mxu1 %v9025_v35 }
 0xe1b   :  { %8003 = vmatpush1.bf16.msra.mxu1 %v9029_v61 }
 0xe1c   :  { %8005 = vmatprep.subr.bf16.mxu1 %v9034_v47  ;;  %v8534_v12 = vpop.eup %8533 }
 0xe1d   :  { %v3055_v3 = vadd.f32 1.0, %v8534_v12  ;;  %v8536_v11 = vpop.eup %8535 }
 0xe1f   :  { %8007 = vmatpush1.bf16.msra.mxu1 %v9036_v7  ;;  %8537 = vrcp.f32 %v3055_v3 }
 0xe20   :  { %8022 = vmatprep.subr.bf16.mxu1 %v9989_v63 }
 0xee9   :  { %v3522_v4 = vpop.f32.mrb[38].mxu1 }
 0xeea   :  { %v3523_v2 = vadd.f32 %v3522_v4, %v3449_v14  ;;  %v7516_v1 = vpop.f32.mrb[39].mxu1  ;;  %v8538_v14 = vpop.eup %8537 }
 0xeeb   :  { %v3067_v18 = vmul.f32 %v8538_v14, %v8536_v11 }
 0xeec   :  { %v3526_v15 = vadd.f32 %v9387_v24, %v3523_v2 }
 0xeee   :  { %v3527_v57 = vmax.f32 %v3526_v15, 0.0 }
 0xef0   :  { %7200 = vmatmul.mubr.msk.f32.vlgmr.msra.gmra.mrb[40].mxu1 %vm1127_vm5, %v3527_v57  ;;  %7530 = vmatmul.mubr.msk.f32.vlgmr.msra.gmra.mrb[52].mxu0 %vm1127_vm5, %v3527_v57 }
 0xef1   :  { %8020 = vmatpush1.bf16.msra.mxu0 %v8767_v19  ;;  %8024 = vmatpush1.bf16.msra.mxu1 %v8780_v27 }
 0xef2   :  { %3702 = vmatprep.subr.mxu0 %v9170_v33  ;;  %3773 = vmatprep.subr.mxu1 %v9278_v10 }
 0xef3   :  { %3762 = vmatprep.mubr.f32.mxu0 %v9932_v40  ;;  %3833 = vmatprep.mubr.f32.mxu1 %v9932_v40 }
 0xef5   :  { %3703 = vmatpush1.msra.mxu0 %v9176_v46  ;;  %3774 = vmatpush1.msra.mxu1 %v9284_v41 }
 0xef6   :  { %7204 = vmatmul.mubr.msk.f32.vlgmr.msra.gmra.mrb[8].mxu0 %vm366_vm2, %v3067_v18  ;;  %7205 = vmatmul.mubr.msk.f32.vlgmr.msra.gmra.mrb[8].mxu1 %vm366_vm2, %v3067_v18 }
 0xef7   :  { %8025 = vmatprep.subr.bf16.mxu1 %v9930_v13  ;;  %7538 = vmatprep.mubr.msk.f32.mxu1 %vm8732_vm1, %v9932_v40 }
 0xef8   :  { %8027 = vmatpush3.bf16.msra.mxu1 %v8845_v39  ;;  %8045 = vmatprep.subr.bf16.mxu0 %v8859_v50 }
 0xef9   :  { %7536 = vmatprep.subr.mxu1 %v9932_v40  ;;  %8047 = vmatpush1.bf16.msra.mxu0 %v8905_v42 }
 0xefa   :  { %8049 = vmatprep.subr.bf16.mxu0 %v8909_v44  ;;  %4080 = vmatprep.mubr.f32.mxu0 %v9932_v40 }
 0xefc   :  { %7537 = vmatpush3.msra.mxu1 %v9298_v26 }
 0xefd   :  { %8029 = vmatprep.subr.bf16.mxu1 %v8854_v45  ;;  %8051 = vmatpush1.bf16.msra.mxu0 %v8914_v52 }
 0xefe   :  { %8053 = vmatprep.subr.bf16.mxu0 %v8918_v53 }
 0xf01   :  { %8055 = vmatpush1.bf16.msra.mxu0 %v9949_v60 }
 0xf02   :  { %8057 = vmatprep.subr.bf16.mxu0 %v9950_v21 }
 0xf05   :  { %8059 = vmatpush1.bf16.msra.mxu0 %v9951_v30 }
 0xf06   :  { %7541 = vmatprep.subr.mxu0 %v9932_v40 }
 0xfc3   :  { %v3597_v33 = vpop.f32.mrb[40].mxu1  ;;  %v3668_v46 = vpop.f32.mrb[52].mxu0 }
 0xfc4   :  { %v3669_v34 = vadd.f32 %v3668_v46, %v9085_v28  ;;  %v3599_v23 = vpop.f32.mrb[41].mxu1  ;;  %v7531_v29 = vpop.f32.mrb[53].mxu0  ;;  %v3598_v2 = vadd.f32 %v3597_v33, %v9097_v9 }
 0xfc5   :  { %v3600_v31 = vadd.f32 %v3599_v23, %v9088_v32 }
 0xfc6   :  { %v7203_v38 = vmul.f32 -1.442695, %v3669_v34 }
 0xfc7   :  { %v7202_v17 = vmul.f32 -1.442695, %v3600_v31 }
 0xfc8   :  { %8539 = vpow2.f32 %v7203_v38 }
 0xfc9   :  { %8541 = vpow2.f32 %v7202_v17  ;;  %v3764_v25 = vpop.f32.mrb[8].mxu0  ;;  %v9421_v54 = vpop.f32.mrb[8].mxu1 }
 0xfca   :  { %v8351_v58 = vadd.f32 %v3764_v25, %v8888_v5  ;;  %v3766_v20 = vpop.f32.mrb[9].mxu0  ;;  %v3837_v0 = vpop.f32.mrb[9].mxu1 }
 0xfcb   :  { %v8352_v12 = vadd.f32 %v3766_v20, %v8892_v6  ;;  %v8368_v14 = vadd.f32 %v3837_v0, %v8902_v16 }
 0xfcc   :  { %v7206_v3 = vmul.f32 -1.442695, %v8351_v58 }
 0xfcd   :  { %v7207_v4 = vmul.f32 -1.442695, %v8352_v12 }
 0xfce   :  { %8543 = vpow2.f32 %v7206_v3 }
 0xfcf   :  { %8545 = vpow2.f32 %v7207_v4 }
 0xfd0   :  { %8547 = vtanh.f32 %v3598_v2  ;;  %v9992_v2 = vld [vmem:[#allocation13_spill] sm:$0xff] }
 0xfd2   :  { %v8540_v1 = vpop.eup %8539 }
 0xfd3   :  { %v8542_v15 = vpop.eup %8541  ;;  %v3680_v57 = vadd.f32 1.0, %v8540_v1 }
 0xfd4   :  { %v3679_v11 = vadd.f32 1.0, %v8542_v15  ;;  %v9993_v15 = vld [vmem:[#allocation8_spill] sm:$0xff] }
 0xfd5   :  { %8549 = vrcp.f32 %v3680_v57 }
 0xfd6   :  { %8551 = vrcp.f32 %v3679_v11 }
 0xfd7   :  { %8553 = vtanh.f32 %v8368_v14 }
 0xfd8   :  { %v8544_v18 = vpop.eup %8543 }
 0xfd9   :  { %v3853_v46 = vadd.f32 1.0, %v8544_v18  ;;  %v8546_v34 = vpop.eup %8545  ;;  %v9994_v18 = vld [vmem:[#allocation15_spill] sm:$0xff] }
 0xfda   :  { %v3854_v23 = vadd.f32 1.0, %v8546_v34  ;;  %v8548_v29 = vpop.eup %8547  ;;  %v9996_v34 = vld [vmem:[#allocation16_spill] sm:$0xff] }
 0xfdb   :  { %8555 = vrcp.f32 %v3853_v46  ;;  %v9995_v46 = vld [vmem:[#allocation11_spill] sm:$0xff] }
 0xfdc   :  { %8557 = vrcp.f32 %v3854_v23  ;;  %v9997_v23 = vld [vmem:[#allocation17_spill] sm:$0xff] }
 0xfdf   :  { %v8550_v31 = vpop.eup %8549 }
 0xfe0   :  { %v8552_v33 = vpop.eup %8551  ;;  %v3686_v38 = vmul.f32 %v8550_v31, %v8548_v29  ;;  %v9998_v29 = vld [vmem:[#allocation12_spill] sm:$0xff]  ;;  %v9999_v31 = vld [vmem:[#allocation18_spill] sm:$0xff] }
 0xfe1   :  { %v3685_v17 = vmul.f32 %v8552_v33, %v9317_v22  ;;  %v8554_v58 = vpop.eup %8553  ;;  %v9990_v22 = vld [vmem:[#allocation9_spill] sm:$0xff]  ;;  %v10000_v33 = vld [vmem:[#allocation24_spill] sm:$0xff] }
 0xfe3   :  { %v9428_v25 = vadd.f32 %v3686_v38, %v3685_v17  ;;  %v10001_v38 = vld [vmem:[#allocation19_spill] sm:$0xff]  ;;  %v10002_v17 = vld [vmem:[#allocation20_spill] sm:$0xff] }
 0xfe5   :  { %v8556_v20 = vpop.eup %8555 }
 0xfe6   :  { %v3864_v12 = vmul.f32 %v8556_v20, %v8554_v58  ;;  %v8558_v3 = vpop.eup %8557  ;;  %v10003_v58 = vld [vmem:[#allocation21_spill] sm:$0xff]  ;;  %v10004_v20 = vld [vmem:[#allocation28_spill] sm:$0xff] }
 0xfe7   :  { %v3863_v0 = vmul.f32 %v8558_v3, %v9320_v43  ;;  %v9991_v43 = vld [vmem:[#allocation10_spill] sm:$0xff] }
 0xfe8   :  { %v10006_v3 = vld [vmem:[#allocation30_spill] sm:$0xff] }
 0xfe9   :  { %v9431_v4 = vadd.f32 %v3864_v12, %v3863_v0  ;;  %v10005_v12 = vld [vmem:[#allocation29_spill] sm:$0xff] }
 0xfeb   :  { %7539 = vmatmul.mubr.msk.f32.vlgmr.msra.gmra.mrb[42].mxu1 %vm366_vm2, %v9431_v4 }
 0xfec   :  { %8031 = vmatpush1.bf16.msra.mxu1 %v8857_v49  ;;  %4009 = vmatprep.mubr.f32.mxu1 %v9932_v40 }
 0xfed   :  { %8033 = vmatprep.subr.bf16.mxu1 %v8864_v55 }
 0xff0   :  { %8035 = vmatpush1.bf16.msra.mxu1 %v8866_v56 }
 0xff1   :  { %8037 = vmatprep.subr.bf16.mxu1 %v8869_v59 }
 0xff4   :  { %8039 = vmatpush1.bf16.msra.mxu1 %v8872_v62 }
 0xff5   :  { %8041 = vmatprep.subr.bf16.mxu1 %v9990_v22 }
 0xff8   :  { %8043 = vmatpush1.bf16.msra.mxu1 %v9991_v43 }
 0xff9   :  { %8061 = vmatprep.subr.bf16.mxu1 %v9992_v2 }
0x10be   :  { %v3937_v1 = vpop.f32.mrb[42].mxu1 }
0x10bf   :  { %v3938_v57 = vadd.f32 %v9993_v15, %v3937_v1  ;;  %v7540_v11 = vpop.f32.mrb[43].mxu1 }
0x10c1   :  { %v3941_v14 = vmax.f32 %v3938_v57, 0.0  ;;  %v10007_v57 = vld [vmem:[#allocation25_spill] sm:$0xff] }
0x10c3   :  { %7210 = vmatmul.mubr.msk.f32.vlgmr.msra.gmra.mrb[44].mxu1 %vm701_vm3, %v3941_v14  ;;  %7211 = vmatmul.mubr.msk.f32.vlgmr.msra.gmra.mrb[54].mxu0 %vm701_vm3, %v3941_v14 }
0x10c4   :  { %8063 = vmatpush1.bf16.msra.mxu1 %v9994_v18  ;;  %7542 = vmatpush3.msra.mxu0 %v9995_v46 }
0x10c5   :  { %8065 = vmatprep.subr.bf16.mxu1 %v9996_v34  ;;  %7543 = vmatprep.mubr.msk.f32.mxu0 %vm8732_vm1, %v9932_v40 }
0x10c6   :  { %4151 = vmatprep.mubr.f32.mxu1 %v9932_v40  ;;  %7546 = vmatprep.subr.mxu0 %v9932_v40 }
0x10c7   :  { %7544 = vmatmul.mubr.msk.f32.vlgmr.msra.gmra.mrb[56].mxu0 %vm942_vm4, %v9428_v25 }
0x10c8   :  { %8067 = vmatpush1.bf16.msra.mxu1 %v9997_v23  ;;  %7547 = vmatpush3.msra.mxu0 %v9998_v29 }
0x10c9   :  { %8069 = vmatprep.subr.bf16.mxu1 %v9999_v31  ;;  %7548 = vmatprep.mubr.msk.f32.mxu0 %vm8732_vm1, %v9932_v40 }
0x10ca   :  { %8077 = vmatprep.subr.bf16.mxu0 %v10000_v33 }
0x10cc   :  { %8071 = vmatpush1.bf16.msra.mxu1 %v10001_v38  ;;  %v10009_v38 = vld [vmem:[#allocation27_spill] sm:$0xff] }
0x10cd   :  { %8073 = vmatprep.subr.bf16.mxu1 %v10002_v17 }
0x10d0   :  { %8075 = vmatpush1.bf16.msra.mxu1 %v10003_v58 }
0x10d1   :  { %8088 = vmatprep.subr.bf16.mxu1 %v9930_v13 }
0x10d3   :  { %7212 = vmatmul.mubr.msk.f32.vlgmr.msra.gmra.mrb[46].mxu1 %vm701_vm3, %v3941_v14 }
0x10d4   :  { %8090 = vmatpush3.bf16.msra.mxu1 %v10004_v20  ;;  %7563 = vmatprep.mubr.msk.f32.mxu1 %vm8732_vm1, %v9932_v40  ;;  %v10008_v20 = vld [vmem:[#allocation26_spill] sm:$0xff] }
0x10d5   :  { %8091 = vmatprep.subr.bf16.mxu1 %v9930_v13 }
0x10d8   :  { %8093 = vmatpush3.bf16.msra.mxu1 %v10005_v12 }
0x10d9   :  { %8094 = vmatprep.subr.bf16.mxu1 %v9930_v13 }
0x10dc   :  { %8096 = vmatpush3.bf16.msra.mxu1 %v10006_v3 }
0x10dd   :  { %8102 = vmatprep.subr.bf16.mxu1 %v9989_v63 }
0x1196   :  { %v4011_v0 = vpop.f32.mrb[44].mxu1  ;;  %v4082_v1 = vpop.f32.mrb[54].mxu0 }
0x1197   :  { %v4012_v11 = vadd.f32 %v4011_v0, %v10007_v57  ;;  %v4013_v14 = vpop.f32.mrb[45].mxu1  ;;  %v4084_v58 = vpop.f32.mrb[55].mxu0  ;;  %v4083_v33 = vadd.f32 %v4082_v1, %v10009_v38 }
0x1198   :  { %v4014_v17 = vadd.f32 %v4013_v14, %v10008_v20 }
0x119a   :  { %v4158_v31 = vmax.f32 %v4012_v11, %v4014_v17  ;;  %v4249_v29 = vpop.f32.mrb[56].mxu0 }
0x119b   :  { %v7545_v23 = vpop.f32.mrb[57].mxu0 }
0x119c   :  { %v4159_v12 = vmax.f32 %v4158_v31, %v4083_v33  ;;  %v4085_v23 = vadd.f32 %v4084_v58, %v9014_v36 }
0x119e   :  { %v4160_v34 = vsub.f32 %v4012_v11, %v4159_v12  ;;  %v4163_v46 = vsub.f32 %v4014_v17, %v4159_v12  ;;  %v4166_v18 = vsub.f32 %v4083_v33, %v4159_v12 }
0x11a0   :  { %v4161_v3 = vmul.f32 1.442695, %v4160_v34  ;;  %v4164_v15 = vmul.f32 1.442695, %v4163_v46  ;;  %v4167_v63 = vmul.f32 1.442695, %v4166_v18 }
0x11a2   :  { %8559 = vpow2.f32 %v4161_v3 }
0x11a3   :  { %8561 = vpow2.f32 %v4164_v15 }
0x11a4   :  { %8563 = vpow2.f32 %v4167_v63 }
0x11a6   :  { %v4153_v0 = vpop.f32.mrb[46].mxu1 }
0x11a7   :  { %v4155_v57 = vpop.f32.mrb[47].mxu1  ;;  %v4154_v31 = vadd.f32 %v4153_v0, %v9016_v51 }
0x11a8   :  { %v4156_v18 = vadd.f32 %v4155_v57, %v9018_v8 }
0x11ac   :  { %v8560_v2 = vpop.eup %8559 }
0x11ad   :  { %v8562_v43 = vpop.eup %8561 }
0x11ae   :  { %v4169_v14 = vadd.f32 %v8562_v43, %v8560_v2  ;;  %v8564_v20 = vpop.eup %8563 }
0x11b0   :  { %v4170_v1 = vadd.f32 %v8564_v20, %v4169_v14 }
0x11b2   :  { %8565 = vrcp.f32 %v4170_v1 }
0x11bc   :  { %v8566_v38 = vpop.eup %8565 }
0x11bd   :  { %v4172_v33 = vmul.f32 %v8566_v38, %v8560_v2  ;;  %v4174_v34 = vmul.f32 %v8566_v38, %v8562_v43  ;;  %v4177_v46 = vmul.f32 %v8566_v38, %v8564_v20  ;;  %v10010_v43 = vld [vmem:[#allocation6_spill] sm:$0xff]  ;;  %v8367_v2 = vadd.f32 %v9421_v54, %v9047_v37  ;;  %v9497_v54 = vld [vmem:[#allocation3 + $0xc8] sm:$0xff] }
0x11bf   :  { %v4173_v15 = vmul.f32 %v4172_v33, %v4085_v23  ;;  %v4175_v63 = vmul.f32 %v4174_v34, %v4154_v31  ;;  %v4178_v17 = vmul.f32 %v4177_v46, %v4156_v18  ;;  %v7208_v38 = vmul.f32 -1.442695, %v8367_v2  ;;  %v9503_v33 = vld [vmem:[#allocation3 + $0xc0] sm:$0xff] }
0x11c1   :  { %v4176_v12 = vadd.f32 %v4175_v63, %v4173_v15  ;;  %8567 = vpow2.f32 %v7208_v38 }
0x11c2   :  { %8569 = vtanh.f32 %v9431_v4 }
0x11c3   :  { %v4179_v3 = vadd.f32 %v4178_v17, %v4176_v12 }
0x11c5   :  { %7549 = vmatmul.mubr.msk.f32.vlgmr.msra.gmra.mrb[58].mxu0 %vm942_vm4, %v4179_v3 }
0x11c6   :  { %8079 = vmatpush1.bf16.msra.mxu0 %v9023_v48  ;;  %4395 = vmatprep.mubr.f32.mxu0 %v9932_v40 }
0x11c7   :  { %8081 = vmatprep.subr.bf16.mxu0 %v9025_v35 }
0x11ca   :  { %8083 = vmatpush1.bf16.msra.mxu0 %v9029_v61 }
0x11cb   :  { %8085 = vmatprep.subr.bf16.mxu0 %v9034_v47  ;;  %v8568_v58 = vpop.eup %8567 }
0x11cc   :  { %v3855_v20 = vadd.f32 1.0, %v8568_v58  ;;  %v8570_v23 = vpop.eup %8569 }
0x11ce   :  { %8087 = vmatpush1.bf16.msra.mxu0 %v9036_v7  ;;  %8571 = vrcp.f32 %v3855_v20 }
0x11cf   :  { %8098 = vmatprep.subr.bf16.mxu0 %v10010_v43 }
0x1298   :  { %v4322_v57 = vpop.f32.mrb[58].mxu0 }
0x1299   :  { %v4323_v11 = vadd.f32 %v4322_v57, %v4249_v29  ;;  %v7550_v0 = vpop.f32.mrb[59].mxu0  ;;  %v8572_v29 = vpop.eup %8571 }
0x129a   :  { %v3867_v31 = vmul.f32 %v8572_v29, %v8570_v23 }
0x129b   :  { %v4326_v14 = vadd.f32 %v9387_v24, %v4323_v11 }
0x129d   :  { %v4327_v1 = vmax.f32 %v4326_v14, 0.0 }
0x129f   :  { %7215 = vmatmul.mubr.msk.f32.vlgmr.msra.gmra.mrb[60].mxu0 %vm1127_vm5, %v4327_v1  ;;  %7564 = vmatmul.mubr.msk.f32.vlgmr.msra.gmra.mrb[48].mxu1 %vm1127_vm5, %v4327_v1 }
0x12a0   :  { %8100 = vmatpush1.bf16.msra.mxu0 %v8767_v19  ;;  %8104 = vmatpush1.bf16.msra.mxu1 %v8780_v27 }
0x12a1   :  { %4502 = vmatprep.subr.mxu0 %v9497_v54  ;;  %4573 = vmatprep.subr.mxu1 %v9278_v10 }
0x12a2   :  { %4562 = vmatprep.mubr.f32.mxu0 %v9932_v40  ;;  %4633 = vmatprep.mubr.f32.mxu1 %v9932_v40 }
0x12a4   :  { %4503 = vmatpush1.msra.mxu0 %v9503_v33  ;;  %4574 = vmatpush1.msra.mxu1 %v9284_v41 }
0x12a5   :  { %7219 = vmatmul.mubr.msk.f32.vlgmr.msra.gmra.mrb[10].mxu0 %vm366_vm2, %v3867_v31  ;;  %7220 = vmatmul.mubr.msk.f32.vlgmr.msra.gmra.mrb[10].mxu1 %vm366_vm2, %v3867_v31 }
0x12a6   :  { %8105 = vmatprep.subr.bf16.mxu0 %v9930_v13  ;;  %7572 = vmatprep.mubr.msk.f32.mxu0 %vm8732_vm1, %v9932_v40 }
0x12a7   :  { %8107 = vmatpush3.bf16.msra.mxu0 %v8845_v39  ;;  %8125 = vmatprep.subr.bf16.mxu1 %v8859_v50 }
0x12a8   :  { %7570 = vmatprep.subr.mxu0 %v9932_v40  ;;  %8127 = vmatpush1.bf16.msra.mxu1 %v8905_v42 }
0x12a9   :  { %8129 = vmatprep.subr.bf16.mxu1 %v8909_v44  ;;  %4880 = vmatprep.mubr.f32.mxu1 %v9932_v40 }
0x12ab   :  { %7571 = vmatpush3.msra.mxu0 %v9298_v26 }
0x12ac   :  { %8109 = vmatprep.subr.bf16.mxu0 %v8854_v45  ;;  %8131 = vmatpush1.bf16.msra.mxu1 %v8914_v52 }
0x12ad   :  { %8133 = vmatprep.subr.bf16.mxu1 %v8918_v53 }
0x12b0   :  { %8135 = vmatpush1.bf16.msra.mxu1 %v9949_v60 }
0x12b1   :  { %8137 = vmatprep.subr.bf16.mxu1 %v9950_v21 }
0x12b4   :  { %8139 = vmatpush1.bf16.msra.mxu1 %v9951_v30 }
0x12b5   :  { %7575 = vmatprep.subr.mxu1 %v9932_v40 }
0x1372   :  { %v4397_v10 = vpop.f32.mrb[60].mxu0  ;;  %v4468_v41 = vpop.f32.mrb[48].mxu1 }
0x1373   :  { %v4469_v34 = vadd.f32 %v4468_v41, %v9085_v28  ;;  %v4399_v18 = vpop.f32.mrb[61].mxu0  ;;  %v7565_v26 = vpop.f32.mrb[49].mxu1  ;;  %v4398_v11 = vadd.f32 %v4397_v10, %v9097_v9 }
0x1374   :  { %v4400_v46 = vadd.f32 %v4399_v18, %v9088_v32 }
0x1375   :  { %v7218_v15 = vmul.f32 -1.442695, %v4469_v34 }
0x1376   :  { %v7217_v63 = vmul.f32 -1.442695, %v4400_v46 }
0x1377   :  { %8573 = vpow2.f32 %v7218_v15 }
0x1378   :  { %8575 = vpow2.f32 %v7217_v63  ;;  %v4564_v17 = vpop.f32.mrb[10].mxu0  ;;  %v9528_v12 = vpop.f32.mrb[10].mxu1 }
0x1379   :  { %v8353_v3 = vadd.f32 %v4564_v17, %v8888_v5  ;;  %v4566_v2 = vpop.f32.mrb[11].mxu0  ;;  %v4637_v38 = vpop.f32.mrb[11].mxu1 }
0x137a   :  { %v8354_v58 = vadd.f32 %v4566_v2, %v8892_v6  ;;  %v8370_v29 = vadd.f32 %v4637_v38, %v8902_v16 }
0x137b   :  { %v7221_v20 = vmul.f32 -1.442695, %v8353_v3 }
0x137c   :  { %v7222_v57 = vmul.f32 -1.442695, %v8354_v58 }
0x137d   :  { %8577 = vpow2.f32 %v7221_v20 }
0x137e   :  { %8579 = vpow2.f32 %v7222_v57 }
0x137f   :  { %8581 = vtanh.f32 %v4398_v11 }
0x1381   :  { %v8574_v0 = vpop.eup %8573 }
0x1382   :  { %v8576_v14 = vpop.eup %8575  ;;  %v4480_v1 = vadd.f32 1.0, %v8574_v0  ;;  %v10013_v0 = vld [vmem:[#allocation8_spill] sm:$0xff] }
0x1383   :  { %v4479_v23 = vadd.f32 1.0, %v8576_v14 }
0x1384   :  { %8583 = vrcp.f32 %v4480_v1 }
0x1385   :  { %8585 = vrcp.f32 %v4479_v23 }
0x1386   :  { %8587 = vtanh.f32 %v8370_v29  ;;  %v10014_v29 = vld [vmem:[#allocation15_spill] sm:$0xff] }
0x1387   :  { %v8578_v31 = vpop.eup %8577 }
0x1388   :  { %v4653_v41 = vadd.f32 1.0, %v8578_v31  ;;  %v8580_v34 = vpop.eup %8579  ;;  %v10015_v31 = vld [vmem:[#allocation11_spill] sm:$0xff] }
0x1389   :  { %v4654_v18 = vadd.f32 1.0, %v8580_v34  ;;  %v8582_v26 = vpop.eup %8581  ;;  %v10017_v34 = vld [vmem:[#allocation17_spill] sm:$0xff] }
0x138a   :  { %8589 = vrcp.f32 %v4653_v41  ;;  %v10016_v41 = vld [vmem:[#allocation16_spill] sm:$0xff] }
0x138b   :  { %8591 = vrcp.f32 %v4654_v18  ;;  %v10018_v18 = vld [vmem:[#allocation12_spill] sm:$0xff] }
0x138e   :  { %v8584_v46 = vpop.eup %8583 }
0x138f   :  { %v8586_v10 = vpop.eup %8585  ;;  %v4486_v15 = vmul.f32 %v8584_v46, %v8582_v26  ;;  %v10019_v26 = vld [vmem:[#allocation18_spill] sm:$0xff]  ;;  %v10020_v46 = vld [vmem:[#allocation24_spill] sm:$0xff] }
0x1390   :  { %v4485_v63 = vmul.f32 %v8586_v10, %v9428_v25  ;;  %v8588_v3 = vpop.eup %8587  ;;  %v10011_v25 = vld [vmem:[#allocation10_spill] sm:$0xff]  ;;  %v10021_v10 = vld [vmem:[#allocation19_spill] sm:$0xff] }
0x1392   :  { %v9535_v17 = vadd.f32 %v4486_v15, %v4485_v63  ;;  %v10022_v15 = vld [vmem:[#allocation20_spill] sm:$0xff]  ;;  %v10023_v63 = vld [vmem:[#allocation21_spill] sm:$0xff] }
0x1394   :  { %v8590_v2 = vpop.eup %8589 }
0x1395   :  { %v4664_v58 = vmul.f32 %v8590_v2, %v8588_v3  ;;  %v8592_v20 = vpop.eup %8591  ;;  %v10024_v3 = vld [vmem:[#allocation28_spill] sm:$0xff]  ;;  %v10025_v2 = vld [vmem:[#allocation29_spill] sm:$0xff] }
0x1396   :  { %v4663_v38 = vmul.f32 %v8592_v20, %v9431_v4  ;;  %v10012_v4 = vld [vmem:[#allocation13_spill] sm:$0xff] }
0x1398   :  { %v9538_v57 = vadd.f32 %v4664_v58, %v4663_v38  ;;  %v10026_v58 = vld [vmem:[#allocation30_spill] sm:$0xff] }
0x139a   :  { %7573 = vmatmul.mubr.msk.f32.vlgmr.msra.gmra.mrb[62].mxu0 %vm366_vm2, %v9538_v57 }
0x139b   :  { %8111 = vmatpush1.bf16.msra.mxu0 %v8857_v49  ;;  %4809 = vmatprep.mubr.f32.mxu0 %v9932_v40 }
0x139c   :  { %8113 = vmatprep.subr.bf16.mxu0 %v8864_v55 }
0x139f   :  { %8115 = vmatpush1.bf16.msra.mxu0 %v8866_v56 }
0x13a0   :  { %8117 = vmatprep.subr.bf16.mxu0 %v8869_v59 }
0x13a3   :  { %8119 = vmatpush1.bf16.msra.mxu0 %v8872_v62 }
0x13a4   :  { %8121 = vmatprep.subr.bf16.mxu0 %v9990_v22 }
0x13a7   :  { %8123 = vmatpush1.bf16.msra.mxu0 %v10011_v25 }
0x13a8   :  { %8141 = vmatprep.subr.bf16.mxu0 %v10012_v4 }
0x146d   :  { %v4737_v11 = vpop.f32.mrb[62].mxu0 }
0x146e   :  { %v4738_v14 = vadd.f32 %v10013_v0, %v4737_v11  ;;  %v7574_v1 = vpop.f32.mrb[63].mxu0  ;;  %v10027_v11 = vld [vmem:[#allocation25_spill] sm:$0xff] }
0x1470   :  { %v4741_v23 = vmax.f32 %v4738_v14, 0.0 }
0x1472   :  { %7225 = vmatmul.mubr.msk.f32.vlgmr.msra.gmra.mrb[64].mxu0 %vm701_vm3, %v4741_v23  ;;  %7226 = vmatmul.mubr.msk.f32.vlgmr.msra.gmra.mrb[50].mxu1 %vm701_vm3, %v4741_v23 }
0x1473   :  { %8143 = vmatpush1.bf16.msra.mxu0 %v10014_v29  ;;  %7576 = vmatpush3.msra.mxu1 %v10015_v31 }
0x1474   :  { %8145 = vmatprep.subr.bf16.mxu0 %v10016_v41  ;;  %7577 = vmatprep.mubr.msk.f32.mxu1 %vm8732_vm1, %v9932_v40 }
0x1475   :  { %4951 = vmatprep.mubr.f32.mxu0 %v9932_v40  ;;  %7580 = vmatprep.subr.mxu1 %v9932_v40 }
0x1476   :  { %7578 = vmatmul.mubr.msk.f32.vlgmr.msra.gmra.mrb[52].mxu1 %vm942_vm4, %v9535_v17 }
0x1477   :  { %8147 = vmatpush1.bf16.msra.mxu0 %v10017_v34  ;;  %7581 = vmatpush3.msra.mxu1 %v10018_v18  ;;  %v10029_v18 = vld [vmem:[#allocation27_spill] sm:$0xff] }
0x1478   :  { %8149 = vmatprep.subr.bf16.mxu0 %v10019_v26  ;;  %7582 = vmatprep.mubr.msk.f32.mxu1 %vm8732_vm1, %v9932_v40 }
0x1479   :  { %8157 = vmatprep.subr.bf16.mxu1 %v10020_v46 }
0x147b   :  { %8151 = vmatpush1.bf16.msra.mxu0 %v10021_v10 }
0x147c   :  { %8153 = vmatprep.subr.bf16.mxu0 %v10022_v15 }
0x147f   :  { %8155 = vmatpush1.bf16.msra.mxu0 %v10023_v63 }
0x1480   :  { %8168 = vmatprep.subr.bf16.mxu0 %v9930_v13 }
0x1482   :  { %7227 = vmatmul.mubr.msk.f32.vlgmr.msra.gmra.mrb[66].mxu0 %vm701_vm3, %v4741_v23  ;;  %v10028_v23 = vld [vmem:[#allocation26_spill] sm:$0xff] }
0x1483   :  { %8170 = vmatpush3.bf16.msra.mxu0 %v10024_v3  ;;  %7597 = vmatprep.mubr.msk.f32.mxu0 %vm8732_vm1, %v9932_v40 }
0x1484   :  { %8171 = vmatprep.subr.bf16.mxu0 %v9930_v13 }
0x1487   :  { %8173 = vmatpush3.bf16.msra.mxu0 %v10025_v2 }
0x1488   :  { %8174 = vmatprep.subr.bf16.mxu0 %v9930_v13 }
0x148b   :  { %8176 = vmatpush3.bf16.msra.mxu0 %v10026_v58 }
0x148c   :  { %8178 = vmatprep.subr.bf16.mxu0 %v10010_v43 }
0x1545   :  { %v4811_v20 = vpop.f32.mrb[64].mxu0  ;;  %v4882_v38 = vpop.f32.mrb[50].mxu1 }
0x1546   :  { %v4812_v0 = vadd.f32 %v4811_v20, %v10027_v11  ;;  %v4813_v14 = vpop.f32.mrb[65].mxu0  ;;  %v4884_v1 = vpop.f32.mrb[51].mxu1  ;;  %v4883_v3 = vadd.f32 %v4882_v38, %v10029_v18 }
0x1547   :  { %v4814_v31 = vadd.f32 %v4813_v14, %v10028_v23 }
0x1549   :  { %v4958_v63 = vmax.f32 %v4812_v0, %v4814_v31  ;;  %v5049_v15 = vpop.f32.mrb[52].mxu1 }
0x154a   :  { %v7579_v10 = vpop.f32.mrb[53].mxu1 }
0x154b   :  { %v4959_v2 = vmax.f32 %v4958_v63, %v4883_v3  ;;  %v4885_v10 = vadd.f32 %v4884_v1, %v9014_v36 }
0x154d   :  { %v4960_v46 = vsub.f32 %v4812_v0, %v4959_v2  ;;  %v4963_v26 = vsub.f32 %v4814_v31, %v4959_v2  ;;  %v4966_v34 = vsub.f32 %v4883_v3, %v4959_v2 }
0x154f   :  { %v4961_v58 = vmul.f32 1.442695, %v4960_v46  ;;  %v4964_v41 = vmul.f32 1.442695, %v4963_v26  ;;  %v4967_v43 = vmul.f32 1.442695, %v4966_v34 }
0x1551   :  { %8593 = vpow2.f32 %v4961_v58 }
0x1552   :  { %8595 = vpow2.f32 %v4964_v41 }
0x1553   :  { %8597 = vpow2.f32 %v4967_v43 }
0x1555   :  { %v4953_v20 = vpop.f32.mrb[66].mxu0 }
0x1556   :  { %v4955_v11 = vpop.f32.mrb[67].mxu0  ;;  %v4954_v63 = vadd.f32 %v4953_v20, %v9016_v51 }
0x1557   :  { %v4956_v34 = vadd.f32 %v4955_v11, %v9018_v8 }
0x155b   :  { %v8594_v29 = vpop.eup %8593 }
0x155c   :  { %v8596_v4 = vpop.eup %8595 }
0x155d   :  { %v4969_v14 = vadd.f32 %v8596_v4, %v8594_v29  ;;  %v8598_v23 = vpop.eup %8597 }
0x155f   :  { %v4970_v38 = vadd.f32 %v8598_v23, %v4969_v14 }
0x1561   :  { %8599 = vrcp.f32 %v4970_v38 }
0x156b   :  { %v8600_v18 = vpop.eup %8599 }
0x156c   :  { %v4972_v3 = vmul.f32 %v8600_v18, %v8594_v29  ;;  %v4974_v46 = vmul.f32 %v8600_v18, %v8596_v4  ;;  %v4977_v26 = vmul.f32 %v8600_v18, %v8598_v23  ;;  %v10030_v4 = vld [vmem:[#allocation7_spill] sm:$0xff]  ;;  %v8369_v29 = vadd.f32 %v9528_v12, %v9047_v37 }
0x156d   :  { %v9605_v12 = vld [vmem:[#allocation3 + $0xd8] sm:$0xff] }
0x156e   :  { %v4973_v41 = vmul.f32 %v4972_v3, %v4885_v10  ;;  %v4975_v43 = vmul.f32 %v4974_v46, %v4954_v63  ;;  %v4978_v2 = vmul.f32 %v4977_v26, %v4956_v34  ;;  %v7223_v11 = vmul.f32 -1.442695, %v8369_v29  ;;  %v9611_v63 = vld [vmem:[#allocation3 + $0xd0] sm:$0xff]  ;;  %v9625_v3 = vld [vmem:[#allocation3 + $0x180] sm:$0xff] }
0x1570   :  { %v4976_v58 = vadd.f32 %v4975_v43, %v4973_v41  ;;  %8601 = vpow2.f32 %v7223_v11 }
0x1571   :  { %8603 = vtanh.f32 %v9538_v57 }
0x1572   :  { %v4979_v0 = vadd.f32 %v4978_v2, %v4976_v58 }
0x1574   :  { %7583 = vmatmul.mubr.msk.f32.vlgmr.msra.gmra.mrb[54].mxu1 %vm942_vm4, %v4979_v0 }
0x1575   :  { %8159 = vmatpush1.bf16.msra.mxu1 %v9023_v48  ;;  %5195 = vmatprep.mubr.f32.mxu1 %v9932_v40 }
0x1576   :  { %8161 = vmatprep.subr.bf16.mxu1 %v9025_v35 }
0x1579   :  { %8163 = vmatpush1.bf16.msra.mxu1 %v9029_v61 }
0x157a   :  { %8165 = vmatprep.subr.bf16.mxu1 %v9034_v47  ;;  %v8602_v1 = vpop.eup %8601 }
0x157b   :  { %v4655_v23 = vadd.f32 1.0, %v8602_v1  ;;  %v8604_v10 = vpop.eup %8603 }
0x157d   :  { %8167 = vmatpush1.bf16.msra.mxu1 %v9036_v7  ;;  %8605 = vrcp.f32 %v4655_v23 }
0x157e   :  { %8182 = vmatprep.subr.bf16.mxu1 %v10030_v4 }
0x1647   :  { %v5122_v31 = vpop.f32.mrb[54].mxu1 }
0x1648   :  { %v5123_v18 = vadd.f32 %v5122_v31, %v5049_v15  ;;  %v7584_v20 = vpop.f32.mrb[55].mxu1  ;;  %v8606_v15 = vpop.eup %8605 }
0x164a   :  { %v5126_v14 = vadd.f32 %v9387_v24, %v5123_v18  ;;  %v4667_v24 = vmul.f32 %v8606_v15, %v8604_v10 }
0x164c   :  { %v5127_v38 = vmax.f32 %v5126_v14, 0.0 }
0x164e   :  { %7230 = vmatmul.mubr.msk.f32.vlgmr.msra.gmra.mrb[56].mxu1 %vm1127_vm5, %v5127_v38  ;;  %7598 = vmatmul.mubr.msk.f32.vlgmr.msra.gmra.mrb[68].mxu0 %vm1127_vm5, %v5127_v38 }
0x164f   :  { %8180 = vmatpush1.bf16.msra.mxu0 %v8767_v19  ;;  %8184 = vmatpush1.bf16.msra.mxu1 %v8780_v27 }
0x1650   :  { %5302 = vmatprep.subr.mxu0 %v9497_v54  ;;  %5373 = vmatprep.subr.mxu1 %v9605_v12 }
0x1651   :  { %5362 = vmatprep.mubr.f32.mxu0 %v9932_v40  ;;  %5433 = vmatprep.mubr.f32.mxu1 %v9932_v40 }
0x1653   :  { %5303 = vmatpush1.msra.mxu0 %v9503_v33  ;;  %5374 = vmatpush1.msra.mxu1 %v9611_v63 }
0x1654   :  { %7234 = vmatmul.mubr.msk.f32.vlgmr.msra.gmra.mrb[12].mxu0 %vm366_vm2, %v4667_v24  ;;  %7235 = vmatmul.mubr.msk.f32.vlgmr.msra.gmra.mrb[12].mxu1 %vm366_vm2, %v4667_v24 }
0x1655   :  { %8185 = vmatprep.subr.bf16.mxu1 %v9930_v13  ;;  %7606 = vmatprep.mubr.msk.f32.mxu1 %vm8732_vm1, %v9932_v40 }
0x1656   :  { %8187 = vmatpush3.bf16.msra.mxu1 %v8845_v39  ;;  %8205 = vmatprep.subr.bf16.mxu0 %v8859_v50 }
0x1657   :  { %7604 = vmatprep.subr.mxu1 %v9932_v40  ;;  %8207 = vmatpush1.bf16.msra.mxu0 %v8905_v42 }
0x1658   :  { %8209 = vmatprep.subr.bf16.mxu0 %v8909_v44  ;;  %5680 = vmatprep.mubr.f32.mxu0 %v9932_v40 }
0x165a   :  { %7605 = vmatpush3.msra.mxu1 %v9625_v3 }
0x165b   :  { %8189 = vmatprep.subr.bf16.mxu1 %v8854_v45  ;;  %8211 = vmatpush1.bf16.msra.mxu0 %v8914_v52 }
0x165c   :  { %8213 = vmatprep.subr.bf16.mxu0 %v8918_v53 }
0x165f   :  { %8215 = vmatpush1.bf16.msra.mxu0 %v9949_v60 }
0x1660   :  { %8217 = vmatprep.subr.bf16.mxu0 %v9950_v21 }
0x1663   :  { %8219 = vmatpush1.bf16.msra.mxu0 %v9951_v30 }
0x1664   :  { %7609 = vmatprep.subr.mxu0 %v9932_v40 }
0x1721   :  { %v5197_v46 = vpop.f32.mrb[56].mxu1  ;;  %v5268_v34 = vpop.f32.mrb[68].mxu0 }
0x1722   :  { %v5269_v26 = vadd.f32 %v5268_v34, %v9085_v28  ;;  %v5199_v41 = vpop.f32.mrb[57].mxu1  ;;  %v7599_v43 = vpop.f32.mrb[69].mxu0  ;;  %v5198_v38 = vadd.f32 %v5197_v46, %v9097_v9 }
0x1723   :  { %v5200_v2 = vadd.f32 %v5199_v41, %v9088_v32 }
0x1724   :  { %v7233_v58 = vmul.f32 -1.442695, %v5269_v26 }
0x1725   :  { %v7232_v0 = vmul.f32 -1.442695, %v5200_v2 }
0x1726   :  { %8607 = vpow2.f32 %v7233_v58 }
0x1727   :  { %8609 = vpow2.f32 %v7232_v0  ;;  %v5364_v29 = vpop.f32.mrb[12].mxu0  ;;  %v9637_v11 = vpop.f32.mrb[12].mxu1 }
0x1728   :  { %v8355_v1 = vadd.f32 %v5364_v29, %v8888_v5  ;;  %v5366_v23 = vpop.f32.mrb[13].mxu0  ;;  %v5437_v31 = vpop.f32.mrb[13].mxu1 }
0x1729   :  { %v8356_v18 = vadd.f32 %v5366_v23, %v8892_v6  ;;  %v8372_v26 = vadd.f32 %v5437_v31, %v8902_v16 }
0x172a   :  { %v7236_v20 = vmul.f32 -1.442695, %v8355_v1 }
0x172b   :  { %v7237_v14 = vmul.f32 -1.442695, %v8356_v18 }
0x172c   :  { %8611 = vpow2.f32 %v7236_v20 }
0x172d   :  { %8613 = vpow2.f32 %v7237_v14 }
0x172e   :  { %8615 = vtanh.f32 %v5198_v38 }
0x1730   :  { %v8608_v10 = vpop.eup %8607 }
0x1731   :  { %v8610_v15 = vpop.eup %8609  ;;  %v5280_v24 = vadd.f32 1.0, %v8608_v10 }
0x1732   :  { %v5279_v34 = vadd.f32 1.0, %v8610_v15 }
0x1733   :  { %8617 = vrcp.f32 %v5280_v24  ;;  %v9660_v24 = vld [vmem:[#allocation3 + $0x1b0] ss:$0 sm:$0xff] }
0x1734   :  { %8619 = vrcp.f32 %v5279_v34  ;;  %10032 = vst [vmem:[#allocation14_spill] sm:$0xff] %v9660_v24 }
0x1735   :  { %8621 = vtanh.f32 %v8372_v26 }
0x1736   :  { %v8612_v41 = vpop.eup %8611 }
0x1737   :  { %v5453_v43 = vadd.f32 1.0, %v8612_v41  ;;  %v8614_v2 = vpop.eup %8613 }
0x1738   :  { %v5454_v58 = vadd.f32 1.0, %v8614_v2  ;;  %v8616_v0 = vpop.eup %8615  ;;  %v9666_v2 = vld [vmem:[#allocation3 + $0x3c0] sm:$0xff] }
0x1739   :  { %8623 = vrcp.f32 %v5453_v43  ;;  %v10033_v43 = vld [vmem:[#allocation15_spill] sm:$0xff]  ;;  %10034 = vst [vmem:[#allocation22_spill] sm:$0xff] %v9666_v2 }
0x173a   :  { %8625 = vrcp.f32 %v5454_v58  ;;  %v10035_v58 = vld [vmem:[#allocation16_spill] sm:$0xff] }
0x173d   :  { %v8618_v29 = vpop.eup %8617 }
0x173e   :  { %v8620_v46 = vpop.eup %8619  ;;  %v5286_v1 = vmul.f32 %v8618_v29, %v8616_v0  ;;  %v10036_v0 = vld [vmem:[#allocation17_spill] sm:$0xff]  ;;  %v9677_v29 = vld [vmem:[#allocation3 + $0x390] sm:$0xff] }
0x173f   :  { %v5285_v23 = vmul.f32 %v8620_v46, %v9535_v17  ;;  %v8622_v20 = vpop.eup %8621  ;;  %v10031_v17 = vld [vmem:[#allocation13_spill] sm:$0xff]  ;;  %10037 = vst [vmem:[#allocation23_spill] sm:$0xff] %v9677_v29  ;;  %v10038_v46 = vld [vmem:[#allocation18_spill] sm:$0xff] }
0x1741   :  { %v9644_v18 = vadd.f32 %v5286_v1, %v5285_v23  ;;  %v10039_v1 = vld [vmem:[#allocation24_spill] sm:$0xff]  ;;  %v10040_v23 = vld [vmem:[#allocation19_spill] sm:$0xff] }
0x1743   :  { %v8624_v14 = vpop.eup %8623 }
0x1744   :  { %v5464_v38 = vmul.f32 %v8624_v14, %v8622_v20  ;;  %v8626_v10 = vpop.eup %8625  ;;  %v10041_v20 = vld [vmem:[#allocation20_spill] sm:$0xff]  ;;  %v10042_v14 = vld [vmem:[#allocation21_spill] sm:$0xff] }
0x1745   :  { %v5463_v31 = vmul.f32 %v8626_v10, %v9538_v57  ;;  %v10044_v10 = vld [vmem:[#allocation29_spill] sm:$0xff] }
0x1747   :  { %v9647_v15 = vadd.f32 %v5464_v38, %v5463_v31  ;;  %v10043_v38 = vld [vmem:[#allocation28_spill] sm:$0xff]  ;;  %v10045_v31 = vld [vmem:[#allocation30_spill] sm:$0xff] }
0x1749   :  { %7607 = vmatmul.mubr.msk.f32.vlgmr.msra.gmra.mrb[58].mxu1 %vm366_vm2, %v9647_v15 }
0x174a   :  { %8191 = vmatpush1.bf16.msra.mxu1 %v8857_v49  ;;  %5609 = vmatprep.mubr.f32.mxu1 %v9932_v40 }
0x174b   :  { %8193 = vmatprep.subr.bf16.mxu1 %v8864_v55 }
0x174e   :  { %8195 = vmatpush1.bf16.msra.mxu1 %v8866_v56 }
0x174f   :  { %8197 = vmatprep.subr.bf16.mxu1 %v8869_v59 }
0x1752   :  { %8199 = vmatpush1.bf16.msra.mxu1 %v8872_v62 }
0x1753   :  { %8201 = vmatprep.subr.bf16.mxu1 %v9990_v22 }
0x1756   :  { %8203 = vmatpush1.bf16.msra.mxu1 %v10011_v25 }
0x1757   :  { %8221 = vmatprep.subr.bf16.mxu1 %v10031_v17 }
0x181c   :  { %v5537_v57 = vpop.f32.mrb[58].mxu1 }
0x181d   :  { %v5538_v34 = vadd.f32 %v9660_v24, %v5537_v57  ;;  %v7608_v26 = vpop.f32.mrb[59].mxu1 }
0x181e   :  { %v10046_v26 = vld [vmem:[#allocation25_spill] sm:$0xff] }
0x181f   :  { %v5541_v41 = vmax.f32 %v5538_v34, 0.0 }
0x1821   :  { %7240 = vmatmul.mubr.msk.f32.vlgmr.msra.gmra.mrb[60].mxu1 %vm701_vm3, %v5541_v41  ;;  %7241 = vmatmul.mubr.msk.f32.vlgmr.msra.gmra.mrb[70].mxu0 %vm701_vm3, %v5541_v41 }
0x1822   :  { %8223 = vmatpush1.bf16.msra.mxu1 %v10033_v43  ;;  %7610 = vmatpush3.msra.mxu0 %v9666_v2 }
0x1823   :  { %8225 = vmatprep.subr.bf16.mxu1 %v10035_v58  ;;  %7611 = vmatprep.mubr.msk.f32.mxu0 %vm8732_vm1, %v9932_v40 }
0x1824   :  { %5751 = vmatprep.mubr.f32.mxu1 %v9932_v40  ;;  %7614 = vmatprep.subr.mxu0 %v9932_v40 }
0x1825   :  { %7612 = vmatmul.mubr.msk.f32.vlgmr.msra.gmra.mrb[72].mxu0 %vm942_vm4, %v9644_v18 }
0x1826   :  { %8227 = vmatpush1.bf16.msra.mxu1 %v10036_v0  ;;  %7615 = vmatpush3.msra.mxu0 %v9677_v29 }
0x1827   :  { %8229 = vmatprep.subr.bf16.mxu1 %v10038_v46  ;;  %7616 = vmatprep.mubr.msk.f32.mxu0 %vm8732_vm1, %v9932_v40 }
0x1828   :  { %8237 = vmatprep.subr.bf16.mxu0 %v10039_v1  ;;  %v10048_v1 = vld [vmem:[#allocation27_spill] sm:$0xff] }
0x182a   :  { %8231 = vmatpush1.bf16.msra.mxu1 %v10040_v23 }
0x182b   :  { %8233 = vmatprep.subr.bf16.mxu1 %v10041_v20 }
0x182e   :  { %8235 = vmatpush1.bf16.msra.mxu1 %v10042_v14 }
0x182f   :  { %8248 = vmatprep.subr.bf16.mxu1 %v9930_v13 }
0x1831   :  { %7242 = vmatmul.mubr.msk.f32.vlgmr.msra.gmra.mrb[62].mxu1 %vm701_vm3, %v5541_v41 }
0x1832   :  { %8250 = vmatpush3.bf16.msra.mxu1 %v10043_v38  ;;  %7631 = vmatprep.mubr.msk.f32.mxu1 %vm8732_vm1, %v9932_v40  ;;  %v10047_v38 = vld [vmem:[#allocation26_spill] sm:$0xff] }
0x1833   :  { %8251 = vmatprep.subr.bf16.mxu1 %v9930_v13 }
0x1836   :  { %8253 = vmatpush3.bf16.msra.mxu1 %v10044_v10 }
0x1837   :  { %8254 = vmatprep.subr.bf16.mxu1 %v9930_v13 }
0x183a   :  { %8256 = vmatpush3.bf16.msra.mxu1 %v10045_v31 }
0x183b   :  { %8262 = vmatprep.subr.bf16.mxu1 %v10030_v4 }
0x18f4   :  { %v5611_v57 = vpop.f32.mrb[60].mxu1  ;;  %v5682_v34 = vpop.f32.mrb[70].mxu0 }
0x18f5   :  { %v5612_v14 = vadd.f32 %v5611_v57, %v10046_v26  ;;  %v5613_v41 = vpop.f32.mrb[61].mxu1  ;;  %v5684_v20 = vpop.f32.mrb[71].mxu0  ;;  %v5683_v46 = vadd.f32 %v5682_v34, %v10048_v1 }
0x18f6   :  { %v5614_v23 = vadd.f32 %v5613_v41, %v10047_v38 }
0x18f8   :  { %v5758_v29 = vmax.f32 %v5612_v14, %v5614_v23  ;;  %v5849_v0 = vpop.f32.mrb[72].mxu0 }
0x18f9   :  { %v7613_v58 = vpop.f32.mrb[73].mxu0 }
0x18fa   :  { %v5759_v10 = vmax.f32 %v5758_v29, %v5683_v46  ;;  %v5685_v58 = vadd.f32 %v5684_v20, %v9014_v36 }
0x18fc   :  { %v5760_v2 = vsub.f32 %v5612_v14, %v5759_v10  ;;  %v5763_v43 = vsub.f32 %v5614_v23, %v5759_v10  ;;  %v5766_v24 = vsub.f32 %v5683_v46, %v5759_v10 }
0x18fe   :  { %v5761_v31 = vmul.f32 1.442695, %v5760_v2  ;;  %v5764_v17 = vmul.f32 1.442695, %v5763_v43  ;;  %v5767_v4 = vmul.f32 1.442695, %v5766_v24 }
0x1900   :  { %8627 = vpow2.f32 %v5761_v31 }
0x1901   :  { %8629 = vpow2.f32 %v5764_v17 }
0x1902   :  { %8631 = vpow2.f32 %v5767_v4 }
0x1904   :  { %v5753_v57 = vpop.f32.mrb[62].mxu1 }
0x1905   :  { %v5755_v26 = vpop.f32.mrb[63].mxu1  ;;  %v5754_v29 = vadd.f32 %v5753_v57, %v9016_v51 }
0x1906   :  { %v5756_v24 = vadd.f32 %v5755_v26, %v9018_v8 }
0x190a   :  { %v8628_v25 = vpop.eup %8627 }
0x190b   :  { %v8630_v22 = vpop.eup %8629 }
0x190c   :  { %v5769_v41 = vadd.f32 %v8630_v22, %v8628_v25  ;;  %v8632_v38 = vpop.eup %8631 }
0x190e   :  { %v5770_v34 = vadd.f32 %v8632_v38, %v5769_v41  ;;  %v9714_v41 = vld [vmem:[#allocation3 + $0x3f0] ss:$0 sm:$0xff] }
0x1910   :  { %8633 = vrcp.f32 %v5770_v34 }
0x191a   :  { %v8634_v1 = vpop.eup %8633 }
0x191b   :  { %v5772_v46 = vmul.f32 %v8634_v1, %v8628_v25  ;;  %v5774_v2 = vmul.f32 %v8634_v1, %v8630_v22  ;;  %v5777_v43 = vmul.f32 %v8634_v1, %v8632_v38  ;;  %v10049_v22 = vld [vmem:[#allocation6_spill] sm:$0xff]  ;;  %v8371_v25 = vadd.f32 %v9637_v11, %v9047_v37 }
0x191d   :  { %v5773_v17 = vmul.f32 %v5772_v46, %v5685_v58  ;;  %v5775_v23 = vmul.f32 %v5774_v2, %v5754_v29  ;;  %v5778_v14 = vmul.f32 %v5777_v43, %v5756_v24  ;;  %v7238_v1 = vmul.f32 -1.442695, %v8371_v25 }
0x191f   :  { %v5776_v10 = vadd.f32 %v5775_v23, %v5773_v17  ;;  %8635 = vpow2.f32 %v7238_v1 }
0x1920   :  { %8637 = vtanh.f32 %v9647_v15 }
0x1921   :  { %v5779_v31 = vadd.f32 %v5778_v14, %v5776_v10 }
0x1923   :  { %7617 = vmatmul.mubr.msk.f32.vlgmr.msra.gmra.mrb[74].mxu0 %vm942_vm4, %v5779_v31 }
0x1924   :  { %8239 = vmatpush1.bf16.msra.mxu0 %v9023_v48  ;;  %5995 = vmatprep.mubr.f32.mxu0 %v9932_v40 }
0x1925   :  { %8241 = vmatprep.subr.bf16.mxu0 %v9025_v35 }
0x1928   :  { %8243 = vmatpush1.bf16.msra.mxu0 %v9029_v61 }
0x1929   :  { %8245 = vmatprep.subr.bf16.mxu0 %v9034_v47  ;;  %v8636_v20 = vpop.eup %8635 }
0x192a   :  { %v5455_v38 = vadd.f32 1.0, %v8636_v20  ;;  %v8638_v11 = vpop.eup %8637 }
0x192c   :  { %8247 = vmatpush1.bf16.msra.mxu0 %v9036_v7  ;;  %8639 = vrcp.f32 %v5455_v38 }
0x192d   :  { %8258 = vmatprep.subr.bf16.mxu0 %v10049_v22 }
0x19f6   :  { %v5922_v26 = vpop.f32.mrb[74].mxu0 }
0x19f7   :  { %v5923_v4 = vadd.f32 %v5922_v26, %v5849_v0  ;;  %v7618_v57 = vpop.f32.mrb[75].mxu0  ;;  %v8640_v0 = vpop.eup %8639 }
0x19f8   :  { %v5467_v29 = vmul.f32 %v8640_v0, %v8638_v11 }
0x19f9   :  { %v5926_v34 = vadd.f32 %v9714_v41, %v5923_v4 }
0x19fb   :  { %v5927_v58 = vmax.f32 %v5926_v34, 0.0 }
0x19fd   :  { %7245 = vmatmul.mubr.msk.f32.vlgmr.msra.gmra.mrb[76].mxu0 %vm1127_vm5, %v5927_v58  ;;  %7632 = vmatmul.mubr.msk.f32.vlgmr.msra.gmra.mrb[64].mxu1 %vm1127_vm5, %v5927_v58 }
0x19fe   :  { %8260 = vmatpush1.bf16.msra.mxu0 %v8767_v19  ;;  %8264 = vmatpush1.bf16.msra.mxu1 %v8780_v27 }
0x19ff   :  { %6102 = vmatprep.subr.mxu0 %v9497_v54  ;;  %6173 = vmatprep.subr.mxu1 %v9605_v12 }
0x1a00   :  { %6162 = vmatprep.mubr.f32.mxu0 %v9932_v40  ;;  %6233 = vmatprep.mubr.f32.mxu1 %v9932_v40 }
0x1a02   :  { %6103 = vmatpush1.msra.mxu0 %v9503_v33  ;;  %6174 = vmatpush1.msra.mxu1 %v9611_v63 }
0x1a03   :  { %7249 = vmatmul.mubr.msk.f32.vlgmr.msra.gmra.mrb[14].mxu0 %vm366_vm2, %v5467_v29  ;;  %7250 = vmatmul.mubr.msk.f32.vlgmr.msra.gmra.mrb[14].mxu1 %vm366_vm2, %v5467_v29 }
0x1a04   :  { %8265 = vmatprep.subr.bf16.mxu0 %v9930_v13  ;;  %7640 = vmatprep.mubr.msk.f32.mxu0 %vm8732_vm1, %v9932_v40 }
0x1a05   :  { %8267 = vmatpush3.bf16.msra.mxu0 %v8845_v39  ;;  %8285 = vmatprep.subr.bf16.mxu1 %v8859_v50 }
0x1a06   :  { %7638 = vmatprep.subr.mxu0 %v9932_v40  ;;  %8287 = vmatpush1.bf16.msra.mxu1 %v8905_v42 }
0x1a07   :  { %8289 = vmatprep.subr.bf16.mxu1 %v8909_v44  ;;  %6480 = vmatprep.mubr.f32.mxu1 %v9932_v40 }
0x1a09   :  { %7639 = vmatpush3.msra.mxu0 %v9625_v3 }
0x1a0a   :  { %8269 = vmatprep.subr.bf16.mxu0 %v8854_v45  ;;  %8291 = vmatpush1.bf16.msra.mxu1 %v8914_v52 }
0x1a0b   :  { %8293 = vmatprep.subr.bf16.mxu1 %v8918_v53 }
0x1a0e   :  { %8295 = vmatpush1.bf16.msra.mxu1 %v9949_v60 }
0x1a0f   :  { %8297 = vmatprep.subr.bf16.mxu1 %v9950_v21 }
0x1a12   :  { %8299 = vmatpush1.bf16.msra.mxu1 %v9951_v30 }
0x1a13   :  { %7643 = vmatprep.subr.mxu1 %v9932_v40 }
0x1ad0   :  { %v5997_v19 = vpop.f32.mrb[76].mxu0  ;;  %v6068_v27 = vpop.f32.mrb[64].mxu1 }
0x1ad1   :  { %v6069_v39 = vadd.f32 %v6068_v27, %v9085_v28  ;;  %v5999_v50 = vpop.f32.mrb[77].mxu0  ;;  %v7633_v42 = vpop.f32.mrb[65].mxu1  ;;  %v5998_v3 = vadd.f32 %v5997_v19, %v9097_v9  ;;  %v10051_v27 = vld [vmem:[#allocation10_spill] sm:$0xff] }
0x1ad2   :  { %v6000_v45 = vadd.f32 %v5999_v50, %v9088_v32  ;;  %v10053_v50 = vld [vmem:[#allocation14_spill] sm:$0xff] }
0x1ad3   :  { %v7248_v44 = vmul.f32 -1.442695, %v6069_v39  ;;  %v10052_v39 = vld [vmem:[#allocation13_spill] sm:$0xff] }
0x1ad4   :  { %v7247_v52 = vmul.f32 -1.442695, %v6000_v45 }
0x1ad5   :  { %8641 = vpow2.f32 %v7248_v44  ;;  %v10057_v44 = vld [vmem:[#allocation17_spill] sm:$0xff] }
0x1ad6   :  { %8643 = vpow2.f32 %v7247_v52  ;;  %v6164_v53 = vpop.f32.mrb[14].mxu0  ;;  %v6235_v60 = vpop.f32.mrb[14].mxu1  ;;  %v10058_v52 = vld [vmem:[#allocation23_spill] sm:$0xff] }
0x1ad7   :  { %v8357_v21 = vadd.f32 %v6164_v53, %v8888_v5  ;;  %v6166_v54 = vpop.f32.mrb[15].mxu0  ;;  %v6237_v30 = vpop.f32.mrb[15].mxu1  ;;  %v8373_v2 = vadd.f32 %v6235_v60, %v9047_v37  ;;  %v10059_v53 = vld [vmem:[#allocation18_spill] sm:$0xff]  ;;  %v10060_v60 = vld [vmem:[#allocation24_spill] sm:$0xff] }
0x1ad8   :  { %v8358_v33 = vadd.f32 %v6166_v54, %v8892_v6  ;;  %v8374_v5 = vadd.f32 %v6237_v30, %v8902_v16  ;;  %v10062_v54 = vld [vmem:[#allocation20_spill] sm:$0xff]  ;;  %v10063_v30 = vld [vmem:[#allocation21_spill] sm:$0xff] }
0x1ad9   :  { %v7251_v12 = vmul.f32 -1.442695, %v8357_v21  ;;  %v7253_v23 = vmul.f32 -1.442695, %v8373_v2  ;;  %v10061_v21 = vld [vmem:[#allocation19_spill] sm:$0xff]  ;;  %v10067_v2 = vld [vmem:[#allocation25_spill] sm:$0xff] }
0x1ada   :  { %v7252_v63 = vmul.f32 -1.442695, %v8358_v33  ;;  %v10064_v33 = vld [vmem:[#allocation28_spill] sm:$0xff] }
0x1adb   :  { %8645 = vpow2.f32 %v7251_v12  ;;  %v10065_v12 = vld [vmem:[#allocation29_spill] sm:$0xff] }
0x1adc   :  { %8647 = vpow2.f32 %v7252_v63  ;;  %v10066_v63 = vld [vmem:[#allocation30_spill] sm:$0xff] }
0x1add   :  { %8649 = vtanh.f32 %v5998_v3 }
0x1adf   :  { %v8642_v46 = vpop.eup %8641 }
0x1ae0   :  { %v8644_v24 = vpop.eup %8643  ;;  %v6080_v43 = vadd.f32 1.0, %v8642_v46 }
0x1ae1   :  { %v6079_v17 = vadd.f32 1.0, %v8644_v24 }
0x1ae2   :  { %8651 = vrcp.f32 %v6080_v43 }
0x1ae3   :  { %8653 = vrcp.f32 %v6079_v17 }
0x1ae4   :  { %8655 = vtanh.f32 %v8374_v5  ;;  %v10068_v5 = vld [vmem:[#allocation26_spill] sm:$0xff] }
0x1ae5   :  { %v8646_v14 = vpop.eup %8645  ;;  %8657 = vpow2.f32 %v7253_v23 }
0x1ae6   :  { %v6253_v6 = vadd.f32 1.0, %v8646_v14  ;;  %v8648_v10 = vpop.eup %8647  ;;  %v10069_v14 = vld [vmem:[#allocation27_spill] sm:$0xff] }
0x1ae7   :  { %v6254_v31 = vadd.f32 1.0, %v8648_v10  ;;  %v8650_v22 = vpop.eup %8649 }
0x1ae8   :  { %8659 = vrcp.f32 %v6253_v6 }
0x1ae9   :  { %8661 = vrcp.f32 %v6254_v31 }
0x1aec   :  { %v8652_v25 = vpop.eup %8651 }
0x1aed   :  { %v8654_v37 = vpop.eup %8653  ;;  %v6086_v1 = vmul.f32 %v8652_v25, %v8650_v22 }
0x1aee   :  { %v6085_v20 = vmul.f32 %v8654_v37, %v9644_v18  ;;  %v8656_v38 = vpop.eup %8655 }
0x1aef   :  { %v8658_v16 = vpop.eup %8657 }
0x1af0   :  { %v9754_v26 = vadd.f32 %v6086_v1, %v6085_v20  ;;  %v6255_v58 = vadd.f32 1.0, %v8658_v16 }
0x1af2   :  { %v8660_v4 = vpop.eup %8659  ;;  %8663 = vrcp.f32 %v6255_v58 }
0x1af3   :  { %v6264_v57 = vmul.f32 %v8660_v4, %v8656_v38  ;;  %v8662_v34 = vpop.eup %8661 }
0x1af4   :  { %v6263_v11 = vmul.f32 %v8662_v34, %v9647_v15  ;;  %v10050_v15 = vld [vmem:[#allocation9_spill] sm:$0xff] }
0x1af6   :  { %v6265_v0 = vadd.f32 %v6264_v57, %v6263_v11 }
0x1af8   :  { %8665 = vtanh.f32 %v6265_v0  ;;  %7641 = vmatmul.mubr.msk.f32.vlgmr.msra.gmra.mrb[78].mxu0 %vm366_vm2, %v6265_v0 }
0x1af9   :  { %8271 = vmatpush1.bf16.msra.mxu0 %v8857_v49  ;;  %6409 = vmatprep.mubr.f32.mxu0 %v9932_v40 }
0x1afa   :  { %8273 = vmatprep.subr.bf16.mxu0 %v8864_v55 }
0x1afc   :  { %v8664_v18 = vpop.eup %8663 }
0x1afd   :  { %8275 = vmatpush1.bf16.msra.mxu0 %v8866_v56  ;;  %v10054_v56 = vld [vmem:[#allocation15_spill] sm:$0xff] }
0x1afe   :  { %8277 = vmatprep.subr.bf16.mxu0 %v8869_v59  ;;  %v10055_v59 = vld [vmem:[#allocation22_spill] sm:$0xff] }
0x1b01   :  { %8279 = vmatpush1.bf16.msra.mxu0 %v8872_v62  ;;  %v10056_v62 = vld [vmem:[#allocation16_spill] sm:$0xff] }
0x1b02   :  { %v8666_v29 = vpop.eup %8665  ;;  %8281 = vmatprep.subr.bf16.mxu0 %v10050_v15 }
0x1b03   :  { %v9765_v19 = vmul.f32 %v8666_v29, %v8664_v18 }
0x1b05   :  { %8283 = vmatpush1.bf16.msra.mxu0 %v10051_v27 }
0x1b06   :  { %8301 = vmatprep.subr.bf16.mxu0 %v10052_v39 }
0x1bcb   :  { %v6337_v49 = vpop.f32.mrb[78].mxu0 }
0x1bcc   :  { %v6338_v42 = vadd.f32 %v10053_v50, %v6337_v49  ;;  %v7642_v55 = vpop.f32.mrb[79].mxu0 }
0x1bce   :  { %v6341_v45 = vmax.f32 %v6338_v42, 0.0 }
0x1bd0   :  { %7255 = vmatmul.mubr.msk.f32.vlgmr.msra.gmra.mrb[80].mxu0 %vm701_vm3, %v6341_v45  ;;  %7256 = vmatmul.mubr.msk.f32.vlgmr.msra.gmra.mrb[66].mxu1 %vm701_vm3, %v6341_v45 }
0x1bd1   :  { %8303 = vmatpush1.bf16.msra.mxu0 %v10054_v56  ;;  %7644 = vmatpush3.msra.mxu1 %v10055_v59 }
0x1bd2   :  { %8305 = vmatprep.subr.bf16.mxu0 %v10056_v62  ;;  %7645 = vmatprep.mubr.msk.f32.mxu1 %vm8732_vm1, %v9932_v40 }
0x1bd3   :  { %6551 = vmatprep.mubr.f32.mxu0 %v9932_v40  ;;  %7648 = vmatprep.subr.mxu1 %v9932_v40 }
0x1bd4   :  { %7646 = vmatmul.mubr.msk.f32.vlgmr.msra.gmra.mrb[68].mxu1 %vm942_vm4, %v9754_v26 }
0x1bd5   :  { %8307 = vmatpush1.bf16.msra.mxu0 %v10057_v44  ;;  %7649 = vmatpush3.msra.mxu1 %v10058_v52 }
0x1bd6   :  { %8309 = vmatprep.subr.bf16.mxu0 %v10059_v53  ;;  %7650 = vmatprep.mubr.msk.f32.mxu1 %vm8732_vm1, %v9932_v40 }
0x1bd7   :  { %8317 = vmatprep.subr.bf16.mxu1 %v10060_v60 }
0x1bd9   :  { %8311 = vmatpush1.bf16.msra.mxu0 %v10061_v21 }
0x1bda   :  { %8313 = vmatprep.subr.bf16.mxu0 %v10062_v54 }
0x1bdd   :  { %8315 = vmatpush1.bf16.msra.mxu0 %v10063_v30 }
0x1bde   :  { %8328 = vmatprep.subr.bf16.mxu0 %v9930_v13 }
0x1be0   :  { %7257 = vmatmul.mubr.msk.f32.vlgmr.msra.gmra.mrb[82].mxu0 %vm701_vm3, %v6341_v45 }
0x1be1   :  { %8330 = vmatpush3.bf16.msra.mxu0 %v10064_v33  ;;  %7665 = vmatprep.mubr.msk.f32.mxu0 %vm8732_vm1, %v9932_v40 }
0x1be2   :  { %8331 = vmatprep.subr.bf16.mxu0 %v9930_v13 }
0x1be5   :  { %8333 = vmatpush3.bf16.msra.mxu0 %v10065_v12 }
0x1be6   :  { %8334 = vmatprep.subr.bf16.mxu0 %v9930_v13 }
0x1be9   :  { %8336 = vmatpush3.bf16.msra.mxu0 %v10066_v63 }
0x1bea   :  { %8340 = vmatprep.subr.bf16.mxu0 %v9930_v13 }
0x1ca3   :  { %v6411_v3 = vpop.f32.mrb[80].mxu0  ;;  %v6482_v46 = vpop.f32.mrb[66].mxu1 }
0x1ca4   :  { %v6412_v24 = vadd.f32 %v6411_v3, %v10067_v2  ;;  %v6413_v43 = vpop.f32.mrb[81].mxu0  ;;  %v6484_v17 = vpop.f32.mrb[67].mxu1  ;;  %v6483_v6 = vadd.f32 %v6482_v46, %v10069_v14  ;;  %v6889_v2 = vld [vmem:[#allocation3 + $0x5a0] sm:$0xff]  ;;  %v7042_v14 = vld [vmem:[#allocation3 + $0x690] sm:$0xff] }
0x1ca5   :  { %v6414_v23 = vadd.f32 %v6413_v43, %v10068_v5  ;;  %v6485_v27 = vadd.f32 %v6484_v17, %v9014_v36 }
0x1ca7   :  { %v6558_v10 = vmax.f32 %v6412_v24, %v6414_v23  ;;  %v6649_v31 = vpop.f32.mrb[68].mxu1 }
0x1ca8   :  { %v7647_v22 = vpop.f32.mrb[69].mxu1 }
0x1ca9   :  { %v6559_v25 = vmax.f32 %v6558_v10, %v6483_v6  ;;  %v7038_v22 = vld [vmem:[#allocation3 + $0x630] ss:$0 sm:$0xff] }
0x1cab   :  { %v6560_v37 = vsub.f32 %v6412_v24, %v6559_v25  ;;  %v6563_v1 = vsub.f32 %v6414_v23, %v6559_v25  ;;  %v6566_v20 = vsub.f32 %v6483_v6, %v6559_v25  ;;  %v7041_v23 = vld [vmem:[#allocation3 + $0x660] sm:$0xff] }
0x1cac   :  { %v8341_v6 = vpack.c.bf16 %v7042_v14, %v7041_v23 }
0x1cad   :  { %v6561_v38 = vmul.f32 1.442695, %v6560_v37  ;;  %v6564_v16 = vmul.f32 1.442695, %v6563_v1  ;;  %v6567_v4 = vmul.f32 1.442695, %v6566_v20 }
0x1caf   :  { %8667 = vpow2.f32 %v6561_v38 }
0x1cb0   :  { %8669 = vpow2.f32 %v6564_v16 }
0x1cb1   :  { %8671 = vpow2.f32 %v6567_v4 }
0x1cb3   :  { %v6553_v57 = vpop.f32.mrb[82].mxu0 }
0x1cb4   :  { %v6555_v34 = vpop.f32.mrb[83].mxu0  ;;  %v6554_v39 = vadd.f32 %v6553_v57, %v9016_v51 }
0x1cb5   :  { %v6556_v42 = vadd.f32 %v6555_v34, %v9018_v8 }
0x1cb9   :  { %v8668_v58 = vpop.eup %8667 }
0x1cba   :  { %v8670_v11 = vpop.eup %8669 }
0x1cbb   :  { %v6569_v0 = vadd.f32 %v8670_v11, %v8668_v58  ;;  %v8672_v18 = vpop.eup %8671 }
0x1cbd   :  { %v6570_v29 = vadd.f32 %v8672_v18, %v6569_v0 }
0x1cbf   :  { %8673 = vrcp.f32 %v6570_v29 }
0x1cc9   :  { %v8674_v15 = vpop.eup %8673 }
0x1cca   :  { %v6572_v49 = vmul.f32 %v8674_v15, %v8668_v58  ;;  %v6574_v50 = vmul.f32 %v8674_v15, %v8670_v11  ;;  %v6577_v55 = vmul.f32 %v8674_v15, %v8672_v18 }
0x1ccc   :  { %v6573_v45 = vmul.f32 %v6572_v49, %v6485_v27  ;;  %v6575_v56 = vmul.f32 %v6574_v50, %v6554_v39  ;;  %v6578_v59 = vmul.f32 %v6577_v55, %v6556_v42 }
0x1cce   :  { %v6576_v62 = vadd.f32 %v6575_v56, %v6573_v45 }
0x1cd0   :  { %v6579_v44 = vadd.f32 %v6578_v59, %v6576_v62 }
0x1cd2   :  { %7651 = vmatmul.mubr.msk.f32.vlgmr.msra.gmra.mrb[70].mxu1 %vm942_vm4, %v6579_v44 }
0x1cd3   :  { %8319 = vmatpush1.bf16.msra.mxu1 %v9023_v48  ;;  %6795 = vmatprep.mubr.f32.mxu1 %v9932_v40  ;;  %v6891_v48 = vld [vmem:[#allocation3 + $0x600] sm:$0xff] }
0x1cd4   :  { %8321 = vmatprep.subr.bf16.mxu1 %v9025_v35 }
0x1cd7   :  { %8323 = vmatpush1.bf16.msra.mxu1 %v9029_v61 }
0x1cd8   :  { %8325 = vmatprep.subr.bf16.mxu1 %v9034_v47 }
0x1cdb   :  { %8327 = vmatpush1.bf16.msra.mxu1 %v9036_v7 }
0x1cdc   :  { %7668 = vmatprep.subr.mxu1 %v9932_v40 }
0x1da5   :  { %v6722_v36 = vpop.f32.mrb[70].mxu1 }
0x1da6   :  { %v6723_v51 = vadd.f32 %v6722_v36, %v6649_v31  ;;  %v7652_v8 = vpop.f32.mrb[71].mxu1 }
0x1da8   :  { %v6726_v52 = vadd.f32 %v9714_v41, %v6723_v51 }
0x1daa   :  { %v6727_v53 = vmax.f32 %v6726_v52, 0.0 }
0x1dac   :  { %7260 = vmatmul.mubr.msk.f32.vlgmr.msra.gmra.mrb[72].mxu1 %vm1127_vm5, %v6727_v53  ;;  %7666 = vmatmul.mubr.msk.f32.vlgmr.msra.gmra.mrb[84].mxu0 %vm1127_vm5, %v6727_v53 }
0x1dad   :  { %7670 = vmatprep.mubr.msk.f32.mxu1 %vm8732_vm1, %v9932_v40  ;;  %7686 = vmatprep.mubr.msk.f32.mxu0 %vm8732_vm1, %v9932_v40 }
0x1dae   :  { %7669 = vmatpush3.msra.mxu1 %v6891_v48  ;;  %8342 = vmatpush3.bf16.msra.mxu0 %v8341_v6 }
0x1daf   :  { %8337 = vmatprep.subr.bf16.mxu1 %v9930_v13 }
0x1e7f   :  { %v6797_v35 = vpop.f32.mrb[72].mxu1  ;;  %v6868_v61 = vpop.f32.mrb[84].mxu0 }
0x1e80   :  { %v6869_v47 = vadd.f32 %v6868_v61, %v9085_v28  ;;  %v6799_v7 = vpop.f32.mrb[73].mxu1  ;;  %v7667_v41 = vpop.f32.mrb[85].mxu0  ;;  %v6798_v30 = vadd.f32 %v6797_v35, %v9097_v9  ;;  %v6888_v28 = vld [vmem:[#allocation3 + $0x570] sm:$0xff] }
0x1e81   :  { %v6800_v60 = vadd.f32 %v6799_v7, %v9088_v32  ;;  %v8338_v17 = vpack.c.bf16 %v6889_v2, %v6888_v28  ;;  %v6890_v9 = vld [vmem:[#allocation3 + $0x5d0] sm:$0xff] }
0x1e82   :  { %v7263_v21 = vmul.f32 -1.442695, %v6869_v47 }
0x1e83   :  { %v7262_v54 = vmul.f32 -1.442695, %v6800_v60 }
0x1e84   :  { %8675 = vpow2.f32 %v7263_v21 }
0x1e85   :  { %8677 = vpow2.f32 %v7262_v54 }
0x1e86   :  { %8679 = vtanh.f32 %v6798_v30 }
0x1e8e   :  { %v8676_v33 = vpop.eup %8675 }
0x1e8f   :  { %v8678_v12 = vpop.eup %8677  ;;  %v6880_v63 = vadd.f32 1.0, %v8676_v33 }
0x1e90   :  { %v6879_v3 = vadd.f32 1.0, %v8678_v12  ;;  %v8680_v13 = vpop.eup %8679 }
0x1e91   :  { %8681 = vrcp.f32 %v6880_v63 }
0x1e92   :  { %8683 = vrcp.f32 %v6879_v3 }
0x1e9b   :  { %v8682_v46 = vpop.eup %8681 }
0x1e9c   :  { %v8684_v24 = vpop.eup %8683  ;;  %v6886_v43 = vmul.f32 %v8682_v46, %v8680_v13 }
0x1e9d   :  { %v6885_v32 = vmul.f32 %v8684_v24, %v9754_v26 }
0x1e9f   :  { %v6887_v5 = vadd.f32 %v6886_v43, %v6885_v32 }
0x1ea1   :  { %7671 = vmatmul.mubr.msk.f32.vlgmr.msra.gmra.mrb[74].mxu1 %vm942_vm4, %v6887_v5 }
0x1ea2   :  { %8339 = vmatpush3.bf16.msra.mxu1 %v8338_v17  ;;  %7679 = vmatprep.mubr.msk.f32.mxu1 %vm8732_vm1, %v9932_v40 }
0x1ea3   :  { %7677 = vmatprep.subr.mxu1 %v9932_v40  ;;  %v7043_v40 = vld [vmem:[#allocation3 + $0x6c0] ss:$0 sm:$0xff] }
0x1ea6   :  { %7678 = vmatpush3.msra.mxu1 %v6890_v9 }
0x1ea7   :  { %7680 = vmatmul.mubr.msk.f32.vlgmr.msra.gmra.mrb[76].mxu1 %vm366_vm2, %v9765_v19 }
0x1f74   :  { %v6961_v26 = vpop.f32.mrb[74].mxu1 }
0x1f75   :  { %v7672_v10 = vpop.f32.mrb[75].mxu1 }
0x1f7a   :  { %v7034_v31 = vpop.f32.mrb[76].mxu1 }
0x1f7b   :  { %v7035_v25 = vadd.f32 %v7034_v31, %v6961_v26  ;;  %v7681_v37 = vpop.f32.mrb[77].mxu1 }
0x1f7d   :  { %v7039_v1 = vadd.f32 %v7038_v22, %v7035_v25 }
0x1f7f   :  { %v7040_v20 = vmax.f32 %v7039_v1, 0.0 }
0x1f81   :  { %7687 = vmatmul.mubr.msk.f32.vlgmr.msra.gmra.mrb[86].mxu0 %vm64_vm0, %v7040_v20 }
0x2054   :  { %v7113_v38 = vpop.f32.mrb[86].mxu0 }
0x2055   :  { %v7114_v16 = vadd.f32 %v7113_v38, %v7043_v40  ;;  %v7688_v4 = vpop.f32.mrb[87].mxu0 }
0x2057   :  { %7118 = vst.msk [vmem:[%s9838_s2] sm:$0xff] %vm7117_vm6, %v7114_v16 }
0x2058   :  { %7123 = vsyncpa [#allocation4], 1 }

</bundles_post_ra>
